<compile_context>
chip_gen: v7x
topology: tpu7x:2x2x1
jax: 0.10.0
libtpu: 0.0.40
codegen_flags: <defaults>
</compile_context>

<pallas_src>
import functools

import jax
import jax.numpy as jnp
from jax.experimental import pallas as pl
from jax.experimental.pallas import tpu as pltpu

LANE = 128     # channel padding target (TPU lane width)
_EPS = 1e-5    # BatchNorm eps (torch default)


# ------------------------------ helpers ------------------------------------

def _round_up(x, m):
    return (x + m - 1) // m * m


def _pick_row_tile_h(H, W, target_rows=1024):
    """Largest divisor of H whose tile has <= target_rows matmul rows."""
    cap = max(1, target_rows // max(W, 1))
    best = 1
    for d in range(1, min(cap, H) + 1):
        if H % d == 0:
            best = d
    return best


def _pick_row_tile_flat(M, target=1024):
    """Row tile for the elementwise pass: multiple of 8, divides M, >=2 steps."""
    cap = min(target, M if M <= 16 else max(8, M // 2))
    best = None
    for d in range(8, cap + 1, 8):
        if M % d == 0:
            best = d
    return best if best is not None else M


# --------------------------- Pallas kernels --------------------------------

def _conv_bn_stats_kernel(
        x_hbm, w_ref, b_ref, s_ref, t_ref,       # inputs
        y_ref, stats_ref,                         # outputs
        slab_in, slab, acc_ref, sem,              # scratch
        *, th, W, H, fuse_input_bn_relu):
    """3x3 conv (stride 1, pad 1) + bias over one (th rows x W) tile of image n.

    Optionally applies the previous layer's BN affine + ReLU to the input slab
    as it is loaded (fuse_input_bn_relu).  Also emits per-tile column sums and
    sums-of-squares of the pre-BN conv output for the next BatchNorm.
    """
    n = pl.program_id(0)
    t = pl.program_id(1)
    r0 = t * th
    cin_p = slab.shape[-1]
    cout_p = acc_ref.shape[-1]

    # ---- halo-slab DMA from HBM (rows r0-1 .. r0+th, clamped) --------------
    # TODO(synk): double-buffer the slab DMA across row tiles to hide latency.
    body = pltpu.make_async_copy(
        x_hbm.at[n, pl.ds(r0, th)], slab_in.at[pl.ds(1, th)], sem.at[0])
    top = pltpu.make_async_copy(
        x_hbm.at[n, pl.ds(jnp.maximum(r0 - 1, 0), 1)],
        slab_in.at[pl.ds(0, 1)], sem.at[1])
    bot = pltpu.make_async_copy(
        x_hbm.at[n, pl.ds(jnp.minimum(r0 + th, H - 1), 1)],
        slab_in.at[pl.ds(th + 1, 1)], sem.at[2])
    body.start()
    top.start()
    bot.start()
    body.wait()
    top.wait()
    bot.wait()

    # ---- build zero-padded f32 working slab (fused BN+ReLU on load) -------
    vals = slab_in[...].astype(jnp.float32)              # (th+2, W, Cin_p)
    if fuse_input_bn_relu:
        vals = jnp.maximum(vals * s_ref[...] + t_ref[...], 0.0)
    slab[:, 1:1 + W, :] = vals

    zero_row = jnp.zeros((1, W + 2, cin_p), jnp.float32)

    @pl.when(t == 0)
    def _():                                   # top image border -> zero pad
        slab[0:1, :, :] = zero_row

    @pl.when(t == pl.num_programs(1) - 1)
    def _():                                   # bottom image border -> zero pad
        slab[th + 1:th + 2, :, :] = zero_row

    zero_col = jnp.zeros((th + 2, 1, cin_p), jnp.float32)
    slab[:, 0:1, :] = zero_col                 # left / right zero padding
    slab[:, W + 1:W + 2, :] = zero_col

    # ---- 3x3 conv: 9 shifted (th*W, Cin) x (Cin, Cout) matmuls ------------
    acc_ref[...] = jnp.zeros((th * W, cout_p), jnp.float32) + b_ref[...]
    for dy in range(3):
        for dx in range(3):
            a = slab[dy:dy + th, dx:dx + W, :]            # (th, W, Cin_p) f32
            a2 = a.reshape(th * W, cin_p).astype(jnp.bfloat16)
            acc_ref[...] += jnp.dot(a2, w_ref[dy * 3 + dx],
                                    preferred_element_type=jnp.float32)

    out = acc_ref[...]

    # ---- fused per-tile BatchNorm statistics -------------------------------
    colsum = jnp.sum(out, axis=0, keepdims=True)          # (1, Cout_p)
    colsq = jnp.sum(out * out, axis=0, keepdims=True)     # (1, Cout_p)
    stats_ref[0, 0] = jnp.concatenate([colsum, colsq], axis=0)

    # lane-dense (Cout padded to 128) bf16 store of the pre-BN conv output
    y_ref[0] = out.reshape(th, W, cout_p).astype(y_ref.dtype)


def _bn_relu_kernel(y_ref, s_ref, t_ref, o_ref):
    y = y_ref[...].astype(jnp.float32)
    o_ref[...] = jnp.maximum(y * s_ref[...] + t_ref[...], 0.0)


# --------------------------- kernel wrappers --------------------------------

def conv3x3_bn_stats(x, w9, bias, scale, shift, *, fuse_input_bn_relu,
                     out_dtype=jnp.bfloat16, row_target=1024):
    """Fused 3x3 conv + bias (+ optional fused input BN/ReLU) + BN stats.

    x:     (N, H, W, Cin_p) bf16, channels padded to a multiple of 128
    w9:    (9, Cin_p, Cout_p) bf16 (tap index = ky*3+kx)
    bias:  (1, Cout_p) f32
    scale, shift: (1, Cin_p) f32 BN affine of the previous layer (only used
        when fuse_input_bn_relu=True).
    Returns (y, stats): y (N, H, W, Cout_p) pre-BN conv output (bf16),
        stats (N, T, 2, Cout_p) f32 per-row-tile [sum, sum_sq].
    """
    N, H, W, Cin_p = x.shape
    Cout_p = w9.shape[-1]
    assert W % 8 == 0, "width must be a multiple of 8 (TPU sublane tile)"
    # TODO(synk): mask the stats + output columns to lift the W % 8 requirement.
    assert Cin_p % LANE == 0 and Cout_p % LANE == 0

    th = _pick_row_tile_h(H, W, row_target)
    T = H // th

    kernel = functools.partial(
        _conv_bn_stats_kernel, th=th, W=W, H=H,
        fuse_input_bn_relu=fuse_input_bn_relu)

    # TODO(synk): for very large Cin (>~512) add a Cin-chunk grid axis
    # ("arbitrary", f32 accumulator) so the slab fits v7x's 64 MiB VMEM.
    return pl.pallas_call(
        kernel,
        out_shape=(
            jax.ShapeDtypeStruct((N, H, W, Cout_p), out_dtype),
            jax.ShapeDtypeStruct((N, T, 2, Cout_p), jnp.float32),
        ),
        grid_spec=pltpu.PrefetchScalarGridSpec(
            num_scalar_prefetch=0,
            grid=(N, T),
            in_specs=[
                pl.BlockSpec(memory_space=pl.ANY),                    # x (manual halo DMA)
                pl.BlockSpec((9, Cin_p, Cout_p), lambda n, t: (0, 0, 0)),
                pl.BlockSpec((1, Cout_p), lambda n, t: (0, 0)),
                pl.BlockSpec((1, Cin_p), lambda n, t: (0, 0)),
                pl.BlockSpec((1, Cin_p), lambda n, t: (0, 0)),
            ],
            out_specs=(
                pl.BlockSpec((1, th, W, Cout_p), lambda n, t: (n, t, 0, 0)),
                pl.BlockSpec((1, 1, 2, Cout_p), lambda n, t: (n, t, 0, 0)),
            ),
            scratch_shapes=[
                pltpu.VMEM((th + 2, W, Cin_p), jnp.bfloat16),     # DMA landing slab
                pltpu.VMEM((th + 2, W + 2, Cin_p), jnp.float32),  # zero-padded slab
                pltpu.VMEM((th * W, Cout_p), jnp.float32),        # f32 accumulator
                pltpu.SemaphoreType.DMA((3,)),
            ]),
        compiler_params=pltpu.CompilerParams(
            dimension_semantics=("parallel", "parallel")),
    )(x, w9, bias, scale, shift)


def bn_relu(y, scale, shift, *, row_target=1024):
    """Final fused per-channel affine (BatchNorm) + ReLU, lane-dense."""
    M, C = y.shape
    tm = _pick_row_tile_flat(M, row_target)
    return pl.pallas_call(
        _bn_relu_kernel,
        out_shape=jax.ShapeDtypeStruct((M, C), jnp.float32),
        grid_spec=pltpu.PrefetchScalarGridSpec(
            num_scalar_prefetch=0,
            grid=(pl.cdiv(M, tm),),
            in_specs=[
                pl.BlockSpec((tm, C), lambda i: (i, 0)),
                pl.BlockSpec((1, C), lambda i: (0, 0)),
                pl.BlockSpec((1, C), lambda i: (0, 0)),
            ],
            out_specs=pl.BlockSpec((tm, C), lambda i: (i, 0)),
        ),
        compiler_params=pltpu.CompilerParams(
            dimension_semantics=("parallel",)),
    )(y, scale, shift)


# ------------------------------ JAX glue ------------------------------------

def _bn_affine_from_stats(stats, gamma_p, beta_p, count, eps=_EPS):
    """Finish BN from fused per-tile [sum, sum_sq] stats (f32 accumulation)."""
    s = jnp.sum(stats[:, :, 0, :], axis=(0, 1))
    sq = jnp.sum(stats[:, :, 1, :], axis=(0, 1))
    mean = s / count
    var = jnp.maximum(sq / count - mean * mean, 0.0)   # biased, as torch BN
    inv = jax.lax.rsqrt(var + eps)
    scale = gamma_p * inv
    shift = beta_p - mean * scale
    return (scale.reshape(1, -1).astype(jnp.float32),
            shift.reshape(1, -1).astype(jnp.float32))


def _pad_conv_params(w, b, cin_p, cout_p):
    """torch (Cout,Cin,3,3) weight -> (9, Cin_p, Cout_p) bf16 + (1, Cout_p) bias."""
    cout, cin, kh, kw = w.shape
    w9 = jnp.transpose(w, (2, 3, 1, 0)).reshape(kh * kw, cin, cout)
    w9 = jnp.pad(w9, ((0, 0), (0, cin_p - cin), (0, cout_p - cout)))
    b_p = jnp.pad(b, (0, cout_p - cout)).reshape(1, cout_p)
    return w9.astype(jnp.bfloat16), b_p.astype(jnp.float32)


def _pad_bn_params(gamma, beta, cout_p):
    c = gamma.shape[0]
    g = jnp.pad(gamma, (0, cout_p - c), constant_values=1.0)
    b = jnp.pad(beta, (0, cout_p - c))
    return g.astype(jnp.float32), b.astype(jnp.float32)


def _interp_matrix(out_size, in_size):
    """Bilinear interpolation matrix for align_corners=True."""
    if in_size == 1:
        return jnp.ones((out_size, 1), jnp.float32)
    src = jnp.arange(out_size, dtype=jnp.float32) * (in_size - 1) / (out_size - 1)
    i0 = jnp.clip(jnp.floor(src).astype(jnp.int32), 0, in_size - 2)
    frac = src - i0.astype(jnp.float32)
    rows = jnp.arange(out_size)
    A = jnp.zeros((out_size, in_size), jnp.float32)
    A = A.at[rows, i0].add(1.0 - frac)
    A = A.at[rows, i0 + 1].add(frac)
    return A


def up_forward(x1_nchw, x2_nchw, params):
    """Forward of Up(in_channels, out_channels, bilinear=True)."""
    x1 = x1_nchw.astype(jnp.float32)
    x2 = x2_nchw.astype(jnp.float32)
    N, C1, H1, W1 = x1.shape
    _, C2, H2, W2 = x2.shape

    # bilinear upsample x2 in each spatial dim, align_corners=True
    A_h = _interp_matrix(2 * H1, H1)
    A_w = _interp_matrix(2 * W1, W1)
    x1_up = jnp.einsum('ph,nchw,qw->ncpq', A_h, x1, A_w)

    # F.pad to match x2 spatially
    diffY = H2 - x1_up.shape[2]
    diffX = W2 - x1_up.shape[3]
    x1_up = jnp.pad(
        x1_up,
        ((0, 0), (0, 0),
         (diffY // 2, diffY - diffY // 2),
         (diffX // 2, diffX - diffX // 2)))

    # torch.cat([x2, x1], dim=1), NCHW -> NHWC, channel-pad to 128 lanes, bf16.
    # TODO(synk): fold the concat/transpose into the first conv's slab DMA
    # (two channel-offset sources) to remove this boundary XLA pass.
    x = jnp.concatenate([x2, x1_up], axis=1)
    x = jnp.transpose(x, (0, 2, 3, 1))
    Cin = C1 + C2
    Cin_p = _round_up(Cin, LANE)
    x = jnp.pad(x, ((0, 0), (0, 0), (0, 0), (0, Cin_p - Cin)))
    x = x.astype(jnp.bfloat16)

    (w1, b1, g1, bt1), (w2, b2, g2, bt2) = params
    Cout = w1.shape[0]
    Cout_p = _round_up(Cout, LANE)

    w1p, b1p = _pad_conv_params(w1, b1, Cin_p, Cout_p)
    w2p, b2p = _pad_conv_params(w2, b2, Cout_p, Cout_p)
    g1p, bt1p = _pad_bn_params(g1, bt1, Cout_p)
    g2p, bt2p = _pad_bn_params(g2, bt2, Cout_p)

    count = float(N * H2 * W2)
    ident_s = jnp.ones((1, Cin_p), jnp.float32)
    ident_t = jnp.zeros((1, Cin_p), jnp.float32)

    # layer 1: conv1 + fused BN1 statistics (no input activation)
    y1, st1 = conv3x3_bn_stats(x, w1p, b1p, ident_s, ident_t,
                               fuse_input_bn_relu=False)
    sc1, sh1 = _bn_affine_from_stats(st1, g1p, bt1p, count)

    # layer 2: BN1+ReLU fused into the input-slab load, conv2 + BN2 statistics
    y2, st2 = conv3x3_bn_stats(y1, w2p, b2p, sc1, sh1,
                               fuse_input_bn_relu=True)
    sc2, sh2 = _bn_affine_from_stats(st2, g2p, bt2p, count)

    # final BN2 + ReLU (lane-dense elementwise pass over the padded channels)
    act = bn_relu(y2.reshape(N * H2 * W2, Cout_p), sc2, sh2)
    act = act.reshape(N, H2, W2, Cout_p)[..., :Cout]
    return jnp.transpose(act, (0, 3, 1, 2))


def init_params(key, in_channels, out_channels):
    """Deterministic parameter init for DoubleConv (2x conv + BN)."""
    k1, k2 = jax.random.split(key)
    params = []
    for k, cin in ((k1, in_channels), (k2, out_channels)):
        w = 0.1 * jax.random.normal(k, (out_channels, cin, 3, 3), jnp.float32)
        b = jnp.zeros((out_channels,), jnp.float32)
        gamma = jnp.ones((out_channels,), jnp.float32)
        beta = jnp.zeros((out_channels,), jnp.float32)
        params.append((w, b, gamma, beta))
    return params


# --------------------------------- main --------------------------------------

if __name__ == "__main__":
    in_channels = 8      # channels of cat([x2, x1])
    out_channels = 4
    N = 2
    H2 = W2 = 16         # x2 spatial; x1 is half that (standard UNet skip)

    key = jax.random.PRNGKey(0)
    kx1, kx2, kp = jax.random.split(key, 3)
    x1 = jax.random.normal(kx1, (N, in_channels // 2, H2 // 2, W2 // 2),
                           jnp.float32)
    x2 = jax.random.normal(kx2, (N, in_channels // 2, H2, W2), jnp.float32)
    params = init_params(kp, in_channels, out_channels)

    fwd = jax.jit(functools.partial(up_forward, params=params))
    out = fwd(x1, x2)
    jax.block_until_ready(out)
    assert out.shape == (N, out_channels, H2, W2), out.shape
    print("KERNEL_OK")
</pallas_src>

<mosaic_0001>
module attributes {stable_mosaic.version = 11 : i64} {
  func.func private @main(%arg0: i32) attributes {dimension_semantics = [#tpu.dimension_semantics<core_parallel>], iteration_bounds = array<i64: 2>, tpu.core_type = #tpu.core_type<sc_scalar_subcore>, window_params = []} {
    return
  }
}

module attributes {stable_mosaic.version = 11 : i64} {
  func.func private @main(%arg0: i32) attributes {dimension_semantics = [#tpu.dimension_semantics<core_parallel>], iteration_bounds = array<i64: 2>, tpu.core_type = #tpu.core_type<sc_scalar_subcore>, window_params = []} {
    return
  }
}

module attributes {stable_mosaic.version = 11 : i64} {
  func.func @_conv_bn_stats_kernel(%arg0: i32, %arg1: i32, %arg2: memref<2x16x16x128xbf16, #tpu.memory_space<any>>, %arg3: memref<9x128x128xbf16, #tpu.memory_space<vmem>>, %arg4: memref<1x128xf32, #tpu.memory_space<vmem>>, %arg5: memref<1x128xf32, #tpu.memory_space<vmem>>, %arg6: memref<1x128xf32, #tpu.memory_space<vmem>>, %arg7: memref<1x16x16x128xbf16, #tpu.memory_space<vmem>>, %arg8: memref<1x1x2x128xf32, #tpu.memory_space<vmem>>, %arg9: memref<18x16x128xbf16, #tpu.memory_space<vmem>>, %arg10: memref<18x18x128xf32, #tpu.memory_space<vmem>>, %arg11: memref<256x128xf32, #tpu.memory_space<vmem>>, %arg12: memref<3x!tpu.dma_semaphore, #tpu.memory_space<semaphore_mem>>) attributes {dimension_semantics = [#tpu.dimension_semantics<parallel>, #tpu.dimension_semantics<parallel>], iteration_bounds = array<i64: 2, 1>, scalar_prefetch = 0 : i64, scratch_operands = 4 : i64, tpu.core_type = #tpu.core_type<tc>, window_params = [{}, {pipeline_mode = #tpu.pipeline_mode<synchronous>, transform_indices = @transform_1, window_bounds = array<i64: 9, 128, 128>}, {pipeline_mode = #tpu.pipeline_mode<synchronous>, transform_indices = @transform_2, window_bounds = array<i64: 1, 128>}, {pipeline_mode = #tpu.pipeline_mode<synchronous>, transform_indices = @transform_3, window_bounds = array<i64: 1, 128>}, {pipeline_mode = #tpu.pipeline_mode<synchronous>, transform_indices = @transform_4, window_bounds = array<i64: 1, 128>}, {transform_indices = @transform_5, window_bounds = array<i64: 1, 16, 16, 128>}, {transform_indices = @transform_6, window_bounds = array<i64: 1, 1, 2, 128>}]} {
    %c16_i32 = arith.constant 16 : i32
    %0 = arith.muli %arg1, %c16_i32 : i32
    %c1_i32 = arith.constant 1 : i32
    %1 = arith.subi %0, %c1_i32 : i32
    %c0_i32 = arith.constant 0 : i32
    %2 = arith.maxsi %1, %c0_i32 : i32
    %c16_i32_0 = arith.constant 16 : i32
    %3 = arith.addi %0, %c16_i32_0 : i32
    %c15_i32 = arith.constant 15 : i32
    %4 = arith.minsi %3, %c15_i32 : i32
    %c0_i32_1 = arith.constant 0 : i32
    %c0_i32_2 = arith.constant 0 : i32
    %c0_i32_3 = arith.constant 0 : i32
    %5 = tpu.memref_slice %arg2[%arg0, %0, %c0_i32_2, %c0_i32_3] : memref<2x16x16x128xbf16, #tpu.memory_space<any>> -> memref<1x16x16x128xbf16, #tpu.memory_space<any>>
    %6 = tpu.memref_squeeze %5 : memref<1x16x16x128xbf16, #tpu.memory_space<any>> -> memref<16x16x128xbf16, #tpu.memory_space<any>>
    %c1_i32_4 = arith.constant 1 : i32
    %c0_i32_5 = arith.constant 0 : i32
    %c0_i32_6 = arith.constant 0 : i32
    %7 = tpu.memref_slice %arg9[%c1_i32_4, %c0_i32_5, %c0_i32_6] : memref<18x16x128xbf16, #tpu.memory_space<vmem>> -> memref<16x16x128xbf16, #tpu.memory_space<vmem>>
    %8 = tpu.memref_slice %arg12[%c0_i32_1] : memref<3x!tpu.dma_semaphore, #tpu.memory_space<semaphore_mem>> -> memref<1x!tpu.dma_semaphore, #tpu.memory_space<semaphore_mem>>
    %9 = tpu.memref_squeeze %8 : memref<1x!tpu.dma_semaphore, #tpu.memory_space<semaphore_mem>> -> memref<!tpu.dma_semaphore, #tpu.memory_space<semaphore_mem>>
    tpu.enqueue_dma source(%6 : memref<16x16x128xbf16, #tpu.memory_space<any>>) target(%7 : memref<16x16x128xbf16, #tpu.memory_space<vmem>>) target_semaphore(%9 : memref<!tpu.dma_semaphore, #tpu.memory_space<semaphore_mem>>)
    %c1_i32_7 = arith.constant 1 : i32
    %c0_i32_8 = arith.constant 0 : i32
    %c0_i32_9 = arith.constant 0 : i32
    %10 = tpu.memref_slice %arg2[%arg0, %2, %c0_i32_8, %c0_i32_9] : memref<2x16x16x128xbf16, #tpu.memory_space<any>> -> memref<1x1x16x128xbf16, #tpu.memory_space<any>>
    %11 = tpu.memref_squeeze %10 : memref<1x1x16x128xbf16, #tpu.memory_space<any>> -> memref<1x16x128xbf16, #tpu.memory_space<any>>
    %c0_i32_10 = arith.constant 0 : i32
    %c0_i32_11 = arith.constant 0 : i32
    %c0_i32_12 = arith.constant 0 : i32
    %12 = tpu.memref_slice %arg9[%c0_i32_10, %c0_i32_11, %c0_i32_12] : memref<18x16x128xbf16, #tpu.memory_space<vmem>> -> memref<1x16x128xbf16, #tpu.memory_space<vmem>>
    %13 = tpu.memref_slice %arg12[%c1_i32_7] : memref<3x!tpu.dma_semaphore, #tpu.memory_space<semaphore_mem>> -> memref<1x!tpu.dma_semaphore, #tpu.memory_space<semaphore_mem>>
    %14 = tpu.memref_squeeze %13 : memref<1x!tpu.dma_semaphore, #tpu.memory_space<semaphore_mem>> -> memref<!tpu.dma_semaphore, #tpu.memory_space<semaphore_mem>>
    tpu.enqueue_dma source(%11 : memref<1x16x128xbf16, #tpu.memory_space<any>>) target(%12 : memref<1x16x128xbf16, #tpu.memory_space<vmem>>) target_semaphore(%14 : memref<!tpu.dma_semaphore, #tpu.memory_space<semaphore_mem>>)
    %c2_i32 = arith.constant 2 : i32
    %c0_i32_13 = arith.constant 0 : i32
    %c0_i32_14 = arith.constant 0 : i32
    %15 = tpu.memref_slice %arg2[%arg0, %4, %c0_i32_13, %c0_i32_14] : memref<2x16x16x128xbf16, #tpu.memory_space<any>> -> memref<1x1x16x128xbf16, #tpu.memory_space<any>>
    %16 = tpu.memref_squeeze %15 : memref<1x1x16x128xbf16, #tpu.memory_space<any>> -> memref<1x16x128xbf16, #tpu.memory_space<any>>
    %c17_i32 = arith.constant 17 : i32
    %c0_i32_15 = arith.constant 0 : i32
    %c0_i32_16 = arith.constant 0 : i32
    %17 = tpu.memref_slice %arg9[%c17_i32, %c0_i32_15, %c0_i32_16] : memref<18x16x128xbf16, #tpu.memory_space<vmem>> -> memref<1x16x128xbf16, #tpu.memory_space<vmem>>
    %18 = tpu.memref_slice %arg12[%c2_i32] : memref<3x!tpu.dma_semaphore, #tpu.memory_space<semaphore_mem>> -> memref<1x!tpu.dma_semaphore, #tpu.memory_space<semaphore_mem>>
    %19 = tpu.memref_squeeze %18 : memref<1x!tpu.dma_semaphore, #tpu.memory_space<semaphore_mem>> -> memref<!tpu.dma_semaphore, #tpu.memory_space<semaphore_mem>>
    tpu.enqueue_dma source(%16 : memref<1x16x128xbf16, #tpu.memory_space<any>>) target(%17 : memref<1x16x128xbf16, #tpu.memory_space<vmem>>) target_semaphore(%19 : memref<!tpu.dma_semaphore, #tpu.memory_space<semaphore_mem>>)
    %c0_i32_17 = arith.constant 0 : i32
    %c0_i32_18 = arith.constant 0 : i32
    %c0_i32_19 = arith.constant 0 : i32
    %20 = tpu.memref_slice %arg2[%arg0, %0, %c0_i32_18, %c0_i32_19] : memref<2x16x16x128xbf16, #tpu.memory_space<any>> -> memref<1x16x16x128xbf16, #tpu.memory_space<any>>
    %21 = tpu.memref_squeeze %20 : memref<1x16x16x128xbf16, #tpu.memory_space<any>> -> memref<16x16x128xbf16, #tpu.memory_space<any>>
    %c1_i32_20 = arith.constant 1 : i32
    %c0_i32_21 = arith.constant 0 : i32
    %c0_i32_22 = arith.constant 0 : i32
    %22 = tpu.memref_slice %arg9[%c1_i32_20, %c0_i32_21, %c0_i32_22] : memref<18x16x128xbf16, #tpu.memory_space<vmem>> -> memref<16x16x128xbf16, #tpu.memory_space<vmem>>
    %23 = tpu.memref_slice %arg12[%c0_i32_17] : memref<3x!tpu.dma_semaphore, #tpu.memory_space<semaphore_mem>> -> memref<1x!tpu.dma_semaphore, #tpu.memory_space<semaphore_mem>>
    %24 = tpu.memref_squeeze %23 : memref<1x!tpu.dma_semaphore, #tpu.memory_space<semaphore_mem>> -> memref<!tpu.dma_semaphore, #tpu.memory_space<semaphore_mem>>
    tpu.wait_dma2 semaphore(%24 : memref<!tpu.dma_semaphore, #tpu.memory_space<semaphore_mem>>) src(%21 : memref<16x16x128xbf16, #tpu.memory_space<any>>) dst(%22 : memref<16x16x128xbf16, #tpu.memory_space<vmem>>)
    %c1_i32_23 = arith.constant 1 : i32
    %c0_i32_24 = arith.constant 0 : i32
    %c0_i32_25 = arith.constant 0 : i32
    %25 = tpu.memref_slice %arg2[%arg0, %2, %c0_i32_24, %c0_i32_25] : memref<2x16x16x128xbf16, #tpu.memory_space<any>> -> memref<1x1x16x128xbf16, #tpu.memory_space<any>>
    %26 = tpu.memref_squeeze %25 : memref<1x1x16x128xbf16, #tpu.memory_space<any>> -> memref<1x16x128xbf16, #tpu.memory_space<any>>
    %c0_i32_26 = arith.constant 0 : i32
    %c0_i32_27 = arith.constant 0 : i32
    %c0_i32_28 = arith.constant 0 : i32
    %27 = tpu.memref_slice %arg9[%c0_i32_26, %c0_i32_27, %c0_i32_28] : memref<18x16x128xbf16, #tpu.memory_space<vmem>> -> memref<1x16x128xbf16, #tpu.memory_space<vmem>>
    %28 = tpu.memref_slice %arg12[%c1_i32_23] : memref<3x!tpu.dma_semaphore, #tpu.memory_space<semaphore_mem>> -> memref<1x!tpu.dma_semaphore, #tpu.memory_space<semaphore_mem>>
    %29 = tpu.memref_squeeze %28 : memref<1x!tpu.dma_semaphore, #tpu.memory_space<semaphore_mem>> -> memref<!tpu.dma_semaphore, #tpu.memory_space<semaphore_mem>>
    tpu.wait_dma2 semaphore(%29 : memref<!tpu.dma_semaphore, #tpu.memory_space<semaphore_mem>>) src(%26 : memref<1x16x128xbf16, #tpu.memory_space<any>>) dst(%27 : memref<1x16x128xbf16, #tpu.memory_space<vmem>>)
    %c2_i32_29 = arith.constant 2 : i32
    %c0_i32_30 = arith.constant 0 : i32
    %c0_i32_31 = arith.constant 0 : i32
    %30 = tpu.memref_slice %arg2[%arg0, %4, %c0_i32_30, %c0_i32_31] : memref<2x16x16x128xbf16, #tpu.memory_space<any>> -> memref<1x1x16x128xbf16, #tpu.memory_space<any>>
    %31 = tpu.memref_squeeze %30 : memref<1x1x16x128xbf16, #tpu.memory_space<any>> -> memref<1x16x128xbf16, #tpu.memory_space<any>>
    %c17_i32_32 = arith.constant 17 : i32
    %c0_i32_33 = arith.constant 0 : i32
    %c0_i32_34 = arith.constant 0 : i32
    %32 = tpu.memref_slice %arg9[%c17_i32_32, %c0_i32_33, %c0_i32_34] : memref<18x16x128xbf16, #tpu.memory_space<vmem>> -> memref<1x16x128xbf16, #tpu.memory_space<vmem>>
    %33 = tpu.memref_slice %arg12[%c2_i32_29] : memref<3x!tpu.dma_semaphore, #tpu.memory_space<semaphore_mem>> -> memref<1x!tpu.dma_semaphore, #tpu.memory_space<semaphore_mem>>
    %34 = tpu.memref_squeeze %33 : memref<1x!tpu.dma_semaphore, #tpu.memory_space<semaphore_mem>> -> memref<!tpu.dma_semaphore, #tpu.memory_space<semaphore_mem>>
    tpu.wait_dma2 semaphore(%34 : memref<!tpu.dma_semaphore, #tpu.memory_space<semaphore_mem>>) src(%31 : memref<1x16x128xbf16, #tpu.memory_space<any>>) dst(%32 : memref<1x16x128xbf16, #tpu.memory_space<vmem>>)
    %c0 = arith.constant 0 : index
    %c0_35 = arith.constant 0 : index
    %c0_36 = arith.constant 0 : index
    %35 = vector.load %arg9[%c0, %c0_35, %c0_36] : memref<18x16x128xbf16, #tpu.memory_space<vmem>>, vector<18x16x128xbf16>
    %36 = arith.extf %35 : vector<18x16x128xbf16> to vector<18x16x128xf32>
    %c0_37 = arith.constant 0 : index
    %c1 = arith.constant 1 : index
    %c0_38 = arith.constant 0 : index
    %37 = vector.load %arg10[%c0_37, %c1, %c0_38] : memref<18x18x128xf32, #tpu.memory_space<vmem>>, vector<18x16x128xf32>
    tpu.vector_store %arg10[%c0_37, %c1, %c0_38], %36 {strides = array<i32>} : memref<18x18x128xf32, #tpu.memory_space<vmem>>, vector<18x16x128xf32>,
    %cst = arith.constant 0.000000e+00 : f32
    %38 = vector.broadcast %cst : f32 to vector<1x18x128xf32>
    %c0_i32_39 = arith.constant 0 : i32
    %39 = arith.cmpi eq, %arg1, %c0_i32_39 : i32
    %40 = arith.extui %39 : i1 to i32
    %c0_i32_40 = arith.constant 0 : i32
    %41 = arith.cmpi ne, %40, %c0_i32_40 : i32
    scf.if %41 {
      %c0_158 = arith.constant 0 : index
      %c0_159 = arith.constant 0 : index
      %c0_160 = arith.constant 0 : index
      %149 = vector.load %arg10[%c0_158, %c0_159, %c0_160] : memref<18x18x128xf32, #tpu.memory_space<vmem>>, vector<1x18x128xf32>
      tpu.vector_store %arg10[%c0_158, %c0_159, %c0_160], %38 {strides = array<i32>} : memref<18x18x128xf32, #tpu.memory_space<vmem>>, vector<1x18x128xf32>,
    } else {
    }
    %c0_i32_41 = arith.constant 0 : i32
    %42 = arith.cmpi eq, %arg1, %c0_i32_41 : i32
    %43 = arith.extui %42 : i1 to i32
    %c0_i32_42 = arith.constant 0 : i32
    %44 = arith.cmpi ne, %43, %c0_i32_42 : i32
    scf.if %44 {
      %c17_158 = arith.constant 17 : index
      %c0_159 = arith.constant 0 : index
      %c0_160 = arith.constant 0 : index
      %149 = vector.load %arg10[%c17_158, %c0_159, %c0_160] : memref<18x18x128xf32, #tpu.memory_space<vmem>>, vector<1x18x128xf32>
      tpu.vector_store %arg10[%c17_158, %c0_159, %c0_160], %38 {strides = array<i32>} : memref<18x18x128xf32, #tpu.memory_space<vmem>>, vector<1x18x128xf32>,
    } else {
    }
    %cst_43 = arith.constant 0.000000e+00 : f32
    %45 = vector.broadcast %cst_43 : f32 to vector<18x1x128xf32>
    %c0_44 = arith.constant 0 : index
    %c0_45 = arith.constant 0 : index
    %c0_46 = arith.constant 0 : index
    %46 = vector.load %arg10[%c0_44, %c0_45, %c0_46] : memref<18x18x128xf32, #tpu.memory_space<vmem>>, vector<18x1x128xf32>
    tpu.vector_store %arg10[%c0_44, %c0_45, %c0_46], %45 {strides = array<i32>} : memref<18x18x128xf32, #tpu.memory_space<vmem>>, vector<18x1x128xf32>,
    %c0_47 = arith.constant 0 : index
    %c17 = arith.constant 17 : index
    %c0_48 = arith.constant 0 : index
    %47 = vector.load %arg10[%c0_47, %c17, %c0_48] : memref<18x18x128xf32, #tpu.memory_space<vmem>>, vector<18x1x128xf32>
    tpu.vector_store %arg10[%c0_47, %c17, %c0_48], %45 {strides = array<i32>} : memref<18x18x128xf32, #tpu.memory_space<vmem>>, vector<18x1x128xf32>,
    %cst_49 = arith.constant 0.000000e+00 : f32
    %48 = vector.broadcast %cst_49 : f32 to vector<256x128xf32>
    %c0_50 = arith.constant 0 : index
    %c0_51 = arith.constant 0 : index
    %49 = vector.load %arg4[%c0_50, %c0_51] : memref<1x128xf32, #tpu.memory_space<vmem>>, vector<1x128xf32>
    %50 = vector.broadcast %49 : vector<1x128xf32> to vector<256x128xf32>
    %51 = arith.addf %48, %50 : vector<256x128xf32>
    %c0_52 = arith.constant 0 : index
    %c0_53 = arith.constant 0 : index
    %52 = vector.load %arg11[%c0_52, %c0_53] : memref<256x128xf32, #tpu.memory_space<vmem>>, vector<256x128xf32>
    tpu.vector_store %arg11[%c0_52, %c0_53], %51 {strides = array<i32>} : memref<256x128xf32, #tpu.memory_space<vmem>>, vector<256x128xf32>,
    %c0_54 = arith.constant 0 : index
    %c0_55 = arith.constant 0 : index
    %c0_56 = arith.constant 0 : index
    %53 = vector.load %arg10[%c0_54, %c0_55, %c0_56] : memref<18x18x128xf32, #tpu.memory_space<vmem>>, vector<16x16x128xf32>
    %54 = vector.shape_cast %53 : vector<16x16x128xf32> to vector<256x128xf32>
    %55 = arith.truncf %54 : vector<256x128xf32> to vector<256x128xbf16>
    %c0_57 = arith.constant 0 : index
    %c0_58 = arith.constant 0 : index
    %56 = vector.load %arg11[%c0_57, %c0_58] : memref<256x128xf32, #tpu.memory_space<vmem>>, vector<256x128xf32>
    %c0_59 = arith.constant 0 : index
    %c0_60 = arith.constant 0 : index
    %c0_61 = arith.constant 0 : index
    %57 = vector.load %arg3[%c0_59, %c0_60, %c0_61] : memref<9x128x128xbf16, #tpu.memory_space<vmem>>, vector<1x128x128xbf16>
    %58 = vector.shape_cast %57 : vector<1x128x128xbf16> to vector<128x128xbf16>
    %cst_62 = arith.constant dense<0.000000e+00> : vector<256x128xf32>
    %59 = tpu.matmul %55, %58, %cst_62 {dimension_numbers = #tpu.dot_dimension_numbers<[1], [0], [0], [1], [0, 0, 1, 1], [], []>} : vector<256x128xbf16>, vector<128x128xbf16>, vector<256x128xf32> -> vector<256x128xf32>
    %60 = arith.addf %56, %59 : vector<256x128xf32>
    %c0_63 = arith.constant 0 : index
    %c0_64 = arith.constant 0 : index
    %61 = vector.load %arg11[%c0_63, %c0_64] : memref<256x128xf32, #tpu.memory_space<vmem>>, vector<256x128xf32>
    tpu.vector_store %arg11[%c0_63, %c0_64], %60 {strides = array<i32>} : memref<256x128xf32, #tpu.memory_space<vmem>>, vector<256x128xf32>,
    %c0_65 = arith.constant 0 : index
    %c1_66 = arith.constant 1 : index
    %c0_67 = arith.constant 0 : index
    %62 = vector.load %arg10[%c0_65, %c1_66, %c0_67] : memref<18x18x128xf32, #tpu.memory_space<vmem>>, vector<16x16x128xf32>
    %63 = vector.shape_cast %62 : vector<16x16x128xf32> to vector<256x128xf32>
    %64 = arith.truncf %63 : vector<256x128xf32> to vector<256x128xbf16>
    %c0_68 = arith.constant 0 : index
    %c0_69 = arith.constant 0 : index
    %65 = vector.load %arg11[%c0_68, %c0_69] : memref<256x128xf32, #tpu.memory_space<vmem>>, vector<256x128xf32>
    %c1_70 = arith.constant 1 : index
    %c0_71 = arith.constant 0 : index
    %c0_72 = arith.constant 0 : index
    %66 = vector.load %arg3[%c1_70, %c0_71, %c0_72] : memref<9x128x128xbf16, #tpu.memory_space<vmem>>, vector<1x128x128xbf16>
    %67 = vector.shape_cast %66 : vector<1x128x128xbf16> to vector<128x128xbf16>
    %cst_73 = arith.constant dense<0.000000e+00> : vector<256x128xf32>
    %68 = tpu.matmul %64, %67, %cst_73 {dimension_numbers = #tpu.dot_dimension_numbers<[1], [0], [0], [1], [0, 0, 1, 1], [], []>} : vector<256x128xbf16>, vector<128x128xbf16>, vector<256x128xf32> -> vector<256x128xf32>
    %69 = arith.addf %65, %68 : vector<256x128xf32>
    %c0_74 = arith.constant 0 : index
    %c0_75 = arith.constant 0 : index
    %70 = vector.load %arg11[%c0_74, %c0_75] : memref<256x128xf32, #tpu.memory_space<vmem>>, vector<256x128xf32>
    tpu.vector_store %arg11[%c0_74, %c0_75], %69 {strides = array<i32>} : memref<256x128xf32, #tpu.memory_space<vmem>>, vector<256x128xf32>,
    %c0_76 = arith.constant 0 : index
    %c2 = arith.constant 2 : index
    %c0_77 = arith.constant 0 : index
    %71 = vector.load %arg10[%c0_76, %c2, %c0_77] : memref<18x18x128xf32, #tpu.memory_space<vmem>>, vector<16x16x128xf32>
    %72 = vector.shape_cast %71 : vector<16x16x128xf32> to vector<256x128xf32>
    %73 = arith.truncf %72 : vector<256x128xf32> to vector<256x128xbf16>
    %c0_78 = arith.constant 0 : index
    %c0_79 = arith.constant 0 : index
    %74 = vector.load %arg11[%c0_78, %c0_79] : memref<256x128xf32, #tpu.memory_space<vmem>>, vector<256x128xf32>
    %c2_80 = arith.constant 2 : index
    %c0_81 = arith.constant 0 : index
    %c0_82 = arith.constant 0 : index
    %75 = vector.load %arg3[%c2_80, %c0_81, %c0_82] : memref<9x128x128xbf16, #tpu.memory_space<vmem>>, vector<1x128x128xbf16>
    %76 = vector.shape_cast %75 : vector<1x128x128xbf16> to vector<128x128xbf16>
    %cst_83 = arith.constant dense<0.000000e+00> : vector<256x128xf32>
    %77 = tpu.matmul %73, %76, %cst_83 {dimension_numbers = #tpu.dot_dimension_numbers<[1], [0], [0], [1], [0, 0, 1, 1], [], []>} : vector<256x128xbf16>, vector<128x128xbf16>, vector<256x128xf32> -> vector<256x128xf32>
    %78 = arith.addf %74, %77 : vector<256x128xf32>
    %c0_84 = arith.constant 0 : index
    %c0_85 = arith.constant 0 : index
    %79 = vector.load %arg11[%c0_84, %c0_85] : memref<256x128xf32, #tpu.memory_space<vmem>>, vector<256x128xf32>
    tpu.vector_store %arg11[%c0_84, %c0_85], %78 {strides = array<i32>} : memref<256x128xf32, #tpu.memory_space<vmem>>, vector<256x128xf32>,
    %c1_86 = arith.constant 1 : index
    %c0_87 = arith.constant 0 : index
    %c0_88 = arith.constant 0 : index
    %80 = vector.load %arg10[%c1_86, %c0_87, %c0_88] : memref<18x18x128xf32, #tpu.memory_space<vmem>>, vector<16x16x128xf32>
    %81 = vector.shape_cast %80 : vector<16x16x128xf32> to vector<256x128xf32>
    %82 = arith.truncf %81 : vector<256x128xf32> to vector<256x128xbf16>
    %c0_89 = arith.constant 0 : index
    %c0_90 = arith.constant 0 : index
    %83 = vector.load %arg11[%c0_89, %c0_90] : memref<256x128xf32, #tpu.memory_space<vmem>>, vector<256x128xf32>
    %c3 = arith.constant 3 : index
    %c0_91 = arith.constant 0 : index
    %c0_92 = arith.constant 0 : index
    %84 = vector.load %arg3[%c3, %c0_91, %c0_92] : memref<9x128x128xbf16, #tpu.memory_space<vmem>>, vector<1x128x128xbf16>
    %85 = vector.shape_cast %84 : vector<1x128x128xbf16> to vector<128x128xbf16>
    %cst_93 = arith.constant dense<0.000000e+00> : vector<256x128xf32>
    %86 = tpu.matmul %82, %85, %cst_93 {dimension_numbers = #tpu.dot_dimension_numbers<[1], [0], [0], [1], [0, 0, 1, 1], [], []>} : vector<256x128xbf16>, vector<128x128xbf16>, vector<256x128xf32> -> vector<256x128xf32>
    %87 = arith.addf %83, %86 : vector<256x128xf32>
    %c0_94 = arith.constant 0 : index
    %c0_95 = arith.constant 0 : index
    %88 = vector.load %arg11[%c0_94, %c0_95] : memref<256x128xf32, #tpu.memory_space<vmem>>, vector<256x128xf32>
    tpu.vector_store %arg11[%c0_94, %c0_95], %87 {strides = array<i32>} : memref<256x128xf32, #tpu.memory_space<vmem>>, vector<256x128xf32>,
    %c1_96 = arith.constant 1 : index
    %c1_97 = arith.constant 1 : index
    %c0_98 = arith.constant 0 : index
    %89 = vector.load %arg10[%c1_96, %c1_97, %c0_98] : memref<18x18x128xf32, #tpu.memory_space<vmem>>, vector<16x16x128xf32>
    %90 = vector.shape_cast %89 : vector<16x16x128xf32> to vector<256x128xf32>
    %91 = arith.truncf %90 : vector<256x128xf32> to vector<256x128xbf16>
    %c0_99 = arith.constant 0 : index
    %c0_100 = arith.constant 0 : index
    %92 = vector.load %arg11[%c0_99, %c0_100] : memref<256x128xf32, #tpu.memory_space<vmem>>, vector<256x128xf32>
    %c4 = arith.constant 4 : index
    %c0_101 = arith.constant 0 : index
    %c0_102 = arith.constant 0 : index
    %93 = vector.load %arg3[%c4, %c0_101, %c0_102] : memref<9x128x128xbf16, #tpu.memory_space<vmem>>, vector<1x128x128xbf16>
    %94 = vector.shape_cast %93 : vector<1x128x128xbf16> to vector<128x128xbf16>
    %cst_103 = arith.constant dense<0.000000e+00> : vector<256x128xf32>
    %95 = tpu.matmul %91, %94, %cst_103 {dimension_numbers = #tpu.dot_dimension_numbers<[1], [0], [0], [1], [0, 0, 1, 1], [], []>} : vector<256x128xbf16>, vector<128x128xbf16>, vector<256x128xf32> -> vector<256x128xf32>
    %96 = arith.addf %92, %95 : vector<256x128xf32>
    %c0_104 = arith.constant 0 : index
    %c0_105 = arith.constant 0 : index
    %97 = vector.load %arg11[%c0_104, %c0_105] : memref<256x128xf32, #tpu.memory_space<vmem>>, vector<256x128xf32>
    tpu.vector_store %arg11[%c0_104, %c0_105], %96 {strides = array<i32>} : memref<256x128xf32, #tpu.memory_space<vmem>>, vector<256x128xf32>,
    %c1_106 = arith.constant 1 : index
    %c2_107 = arith.constant 2 : index
    %c0_108 = arith.constant 0 : index
    %98 = vector.load %arg10[%c1_106, %c2_107, %c0_108] : memref<18x18x128xf32, #tpu.memory_space<vmem>>, vector<16x16x128xf32>
    %99 = vector.shape_cast %98 : vector<16x16x128xf32> to vector<256x128xf32>
    %100 = arith.truncf %99 : vector<256x128xf32> to vector<256x128xbf16>
    %c0_109 = arith.constant 0 : index
    %c0_110 = arith.constant 0 : index
    %101 = vector.load %arg11[%c0_109, %c0_110] : memref<256x128xf32, #tpu.memory_space<vmem>>, vector<256x128xf32>
    %c5 = arith.constant 5 : index
    %c0_111 = arith.constant 0 : index
    %c0_112 = arith.constant 0 : index
    %102 = vector.load %arg3[%c5, %c0_111, %c0_112] : memref<9x128x128xbf16, #tpu.memory_space<vmem>>, vector<1x128x128xbf16>
    %103 = vector.shape_cast %102 : vector<1x128x128xbf16> to vector<128x128xbf16>
    %cst_113 = arith.constant dense<0.000000e+00> : vector<256x128xf32>
    %104 = tpu.matmul %100, %103, %cst_113 {dimension_numbers = #tpu.dot_dimension_numbers<[1], [0], [0], [1], [0, 0, 1, 1], [], []>} : vector<256x128xbf16>, vector<128x128xbf16>, vector<256x128xf32> -> vector<256x128xf32>
    %105 = arith.addf %101, %104 : vector<256x128xf32>
    %c0_114 = arith.constant 0 : index
    %c0_115 = arith.constant 0 : index
    %106 = vector.load %arg11[%c0_114, %c0_115] : memref<256x128xf32, #tpu.memory_space<vmem>>, vector<256x128xf32>
    tpu.vector_store %arg11[%c0_114, %c0_115], %105 {strides = array<i32>} : memref<256x128xf32, #tpu.memory_space<vmem>>, vector<256x128xf32>,
    %c2_116 = arith.constant 2 : index
    %c0_117 = arith.constant 0 : index
    %c0_118 = arith.constant 0 : index
    %107 = vector.load %arg10[%c2_116, %c0_117, %c0_118] : memref<18x18x128xf32, #tpu.memory_space<vmem>>, vector<16x16x128xf32>
    %108 = vector.shape_cast %107 : vector<16x16x128xf32> to vector<256x128xf32>
    %109 = arith.truncf %108 : vector<256x128xf32> to vector<256x128xbf16>
    %c0_119 = arith.constant 0 : index
    %c0_120 = arith.constant 0 : index
    %110 = vector.load %arg11[%c0_119, %c0_120] : memref<256x128xf32, #tpu.memory_space<vmem>>, vector<256x128xf32>
    %c6 = arith.constant 6 : index
    %c0_121 = arith.constant 0 : index
    %c0_122 = arith.constant 0 : index
    %111 = vector.load %arg3[%c6, %c0_121, %c0_122] : memref<9x128x128xbf16, #tpu.memory_space<vmem>>, vector<1x128x128xbf16>
    %112 = vector.shape_cast %111 : vector<1x128x128xbf16> to vector<128x128xbf16>
    %cst_123 = arith.constant dense<0.000000e+00> : vector<256x128xf32>
    %113 = tpu.matmul %109, %112, %cst_123 {dimension_numbers = #tpu.dot_dimension_numbers<[1], [0], [0], [1], [0, 0, 1, 1], [], []>} : vector<256x128xbf16>, vector<128x128xbf16>, vector<256x128xf32> -> vector<256x128xf32>
    %114 = arith.addf %110, %113 : vector<256x128xf32>
    %c0_124 = arith.constant 0 : index
    %c0_125 = arith.constant 0 : index
    %115 = vector.load %arg11[%c0_124, %c0_125] : memref<256x128xf32, #tpu.memory_space<vmem>>, vector<256x128xf32>
    tpu.vector_store %arg11[%c0_124, %c0_125], %114 {strides = array<i32>} : memref<256x128xf32, #tpu.memory_space<vmem>>, vector<256x128xf32>,
    %c2_126 = arith.constant 2 : index
    %c1_127 = arith.constant 1 : index
    %c0_128 = arith.constant 0 : index
    %116 = vector.load %arg10[%c2_126, %c1_127, %c0_128] : memref<18x18x128xf32, #tpu.memory_space<vmem>>, vector<16x16x128xf32>
    %117 = vector.shape_cast %116 : vector<16x16x128xf32> to vector<256x128xf32>
    %118 = arith.truncf %117 : vector<256x128xf32> to vector<256x128xbf16>
    %c0_129 = arith.constant 0 : index
    %c0_130 = arith.constant 0 : index
    %119 = vector.load %arg11[%c0_129, %c0_130] : memref<256x128xf32, #tpu.memory_space<vmem>>, vector<256x128xf32>
    %c7 = arith.constant 7 : index
    %c0_131 = arith.constant 0 : index
    %c0_132 = arith.constant 0 : index
    %120 = vector.load %arg3[%c7, %c0_131, %c0_132] : memref<9x128x128xbf16, #tpu.memory_space<vmem>>, vector<1x128x128xbf16>
    %121 = vector.shape_cast %120 : vector<1x128x128xbf16> to vector<128x128xbf16>
    %cst_133 = arith.constant dense<0.000000e+00> : vector<256x128xf32>
    %122 = tpu.matmul %118, %121, %cst_133 {dimension_numbers = #tpu.dot_dimension_numbers<[1], [0], [0], [1], [0, 0, 1, 1], [], []>} : vector<256x128xbf16>, vector<128x128xbf16>, vector<256x128xf32> -> vector<256x128xf32>
    %123 = arith.addf %119, %122 : vector<256x128xf32>
    %c0_134 = arith.constant 0 : index
    %c0_135 = arith.constant 0 : index
    %124 = vector.load %arg11[%c0_134, %c0_135] : memref<256x128xf32, #tpu.memory_space<vmem>>, vector<256x128xf32>
    tpu.vector_store %arg11[%c0_134, %c0_135], %123 {strides = array<i32>} : memref<256x128xf32, #tpu.memory_space<vmem>>, vector<256x128xf32>,
    %c2_136 = arith.constant 2 : index
    %c2_137 = arith.constant 2 : index
    %c0_138 = arith.constant 0 : index
    %125 = vector.load %arg10[%c2_136, %c2_137, %c0_138] : memref<18x18x128xf32, #tpu.memory_space<vmem>>, vector<16x16x128xf32>
    %126 = vector.shape_cast %125 : vector<16x16x128xf32> to vector<256x128xf32>
    %127 = arith.truncf %126 : vector<256x128xf32> to vector<256x128xbf16>
    %c0_139 = arith.constant 0 : index
    %c0_140 = arith.constant 0 : index
    %128 = vector.load %arg11[%c0_139, %c0_140] : memref<256x128xf32, #tpu.memory_space<vmem>>, vector<256x128xf32>
    %c8 = arith.constant 8 : index
    %c0_141 = arith.constant 0 : index
    %c0_142 = arith.constant 0 : index
    %129 = vector.load %arg3[%c8, %c0_141, %c0_142] : memref<9x128x128xbf16, #tpu.memory_space<vmem>>, vector<1x128x128xbf16>
    %130 = vector.shape_cast %129 : vector<1x128x128xbf16> to vector<128x128xbf16>
    %cst_143 = arith.constant dense<0.000000e+00> : vector<256x128xf32>
    %131 = tpu.matmul %127, %130, %cst_143 {dimension_numbers = #tpu.dot_dimension_numbers<[1], [0], [0], [1], [0, 0, 1, 1], [], []>} : vector<256x128xbf16>, vector<128x128xbf16>, vector<256x128xf32> -> vector<256x128xf32>
    %132 = arith.addf %128, %131 : vector<256x128xf32>
    %c0_144 = arith.constant 0 : index
    %c0_145 = arith.constant 0 : index
    %133 = vector.load %arg11[%c0_144, %c0_145] : memref<256x128xf32, #tpu.memory_space<vmem>>, vector<256x128xf32>
    tpu.vector_store %arg11[%c0_144, %c0_145], %132 {strides = array<i32>} : memref<256x128xf32, #tpu.memory_space<vmem>>, vector<256x128xf32>,
    %c0_146 = arith.constant 0 : index
    %c0_147 = arith.constant 0 : index
    %134 = vector.load %arg11[%c0_146, %c0_147] : memref<256x128xf32, #tpu.memory_space<vmem>>, vector<256x128xf32>
    %cst_148 = arith.constant dense<0.000000e+00> : vector<128xf32>
    %135 = vector.multi_reduction <add>, %134, %cst_148 [0] : vector<256x128xf32> to vector<128xf32>
    %136 = vector.shape_cast %135 : vector<128xf32> to vector<1x128xf32>
    %137 = arith.mulf %134, %134 : vector<256x128xf32>
    %cst_149 = arith.constant dense<0.000000e+00> : vector<128xf32>
    %138 = vector.multi_reduction <add>, %137, %cst_149 [0] : vector<256x128xf32> to vector<128xf32>
    %139 = vector.shape_cast %138 : vector<128xf32> to vector<1x128xf32>
    %140 = tpu.concatenate %136, %139 in 0 : vector<1x128xf32>, vector<1x128xf32> -> vector<2x128xf32>
    %c0_150 = arith.constant 0 : index
    %c0_151 = arith.constant 0 : index
    %c0_152 = arith.constant 0 : index
    %c0_153 = arith.constant 0 : index
    %141 = vector.load %arg8[%c0_150, %c0_151, %c0_152, %c0_153] : memref<1x1x2x128xf32, #tpu.memory_space<vmem>>, vector<1x1x2x128xf32>
    %142 = vector.shape_cast %141 : vector<1x1x2x128xf32> to vector<2x128xf32>
    %143 = vector.shape_cast %140 : vector<2x128xf32> to vector<1x1x2x128xf32>
    tpu.vector_store %arg8[%c0_150, %c0_151, %c0_152, %c0_153], %143 {strides = array<i32>} : memref<1x1x2x128xf32, #tpu.memory_space<vmem>>, vector<1x1x2x128xf32>,
    %144 = vector.shape_cast %134 : vector<256x128xf32> to vector<16x16x128xf32>
    %145 = arith.truncf %144 : vector<16x16x128xf32> to vector<16x16x128xbf16>
    %c0_154 = arith.constant 0 : index
    %c0_155 = arith.constant 0 : index
    %c0_156 = arith.constant 0 : index
    %c0_157 = arith.constant 0 : index
    %146 = vector.load %arg7[%c0_154, %c0_155, %c0_156, %c0_157] : memref<1x16x16x128xbf16, #tpu.memory_space<vmem>>, vector<1x16x16x128xbf16>
    %147 = vector.shape_cast %146 : vector<1x16x16x128xbf16> to vector<16x16x128xbf16>
    %148 = vector.shape_cast %145 : vector<16x16x128xbf16> to vector<1x16x16x128xbf16>
    tpu.vector_store %arg7[%c0_154, %c0_155, %c0_156, %c0_157], %148 {strides = array<i32>} : memref<1x16x16x128xbf16, #tpu.memory_space<vmem>>, vector<1x16x16x128xbf16>,
    return
  }
  func.func @transform_1(%arg0: i32, %arg1: i32) -> (i32, i32, i32) {
    %c0_i32 = arith.constant 0 : i32
    %c0_i32_0 = arith.constant 0 : i32
    %c0_i32_1 = arith.constant 0 : i32
    %c0_i32_2 = arith.constant 0 : i32
    return %c0_i32, %c0_i32_0, %c0_i32_1 : i32, i32, i32
  }
  func.func @transform_2(%arg0: i32, %arg1: i32) -> (i32, i32) {
    %c0_i32 = arith.constant 0 : i32
    %c0_i32_0 = arith.constant 0 : i32
    %c0_i32_1 = arith.constant 0 : i32
    return %c0_i32, %c0_i32_0 : i32, i32
  }
  func.func @transform_3(%arg0: i32, %arg1: i32) -> (i32, i32) {
    %c0_i32 = arith.constant 0 : i32
    %c0_i32_0 = arith.constant 0 : i32
    %c0_i32_1 = arith.constant 0 : i32
    return %c0_i32, %c0_i32_0 : i32, i32
  }
  func.func @transform_4(%arg0: i32, %arg1: i32) -> (i32, i32) {
    %c0_i32 = arith.constant 0 : i32
    %c0_i32_0 = arith.constant 0 : i32
    %c0_i32_1 = arith.constant 0 : i32
    return %c0_i32, %c0_i32_0 : i32, i32
  }
  func.func @transform_5(%arg0: i32, %arg1: i32) -> (i32, i32, i32, i32) {
    %c0_i32 = arith.constant 0 : i32
    %c0_i32_0 = arith.constant 0 : i32
    %c0_i32_1 = arith.constant 0 : i32
    return %arg0, %arg1, %c0_i32, %c0_i32_0 : i32, i32, i32, i32
  }
  func.func @transform_6(%arg0: i32, %arg1: i32) -> (i32, i32, i32, i32) {
    %c0_i32 = arith.constant 0 : i32
    %c0_i32_0 = arith.constant 0 : i32
    %c0_i32_1 = arith.constant 0 : i32
    return %arg0, %arg1, %c0_i32, %c0_i32_0 : i32, i32, i32, i32
  }
}

module attributes {stable_mosaic.version = 11 : i64} {
  func.func @_conv_bn_stats_kernel(%arg0: i32, %arg1: i32, %arg2: memref<2x16x16x128xbf16, #tpu.memory_space<any>>, %arg3: memref<9x128x128xbf16, #tpu.memory_space<vmem>>, %arg4: memref<1x128xf32, #tpu.memory_space<vmem>>, %arg5: memref<1x128xf32, #tpu.memory_space<vmem>>, %arg6: memref<1x128xf32, #tpu.memory_space<vmem>>, %arg7: memref<1x16x16x128xbf16, #tpu.memory_space<vmem>>, %arg8: memref<1x1x2x128xf32, #tpu.memory_space<vmem>>, %arg9: memref<18x16x128xbf16, #tpu.memory_space<vmem>>, %arg10: memref<18x18x128xf32, #tpu.memory_space<vmem>>, %arg11: memref<256x128xf32, #tpu.memory_space<vmem>>, %arg12: memref<3x!tpu.dma_semaphore, #tpu.memory_space<semaphore_mem>>) attributes {dimension_semantics = [#tpu.dimension_semantics<parallel>, #tpu.dimension_semantics<parallel>], iteration_bounds = array<i64: 2, 1>, scalar_prefetch = 0 : i64, scratch_operands = 4 : i64, tpu.core_type = #tpu.core_type<tc>, window_params = [{}, {pipeline_mode = #tpu.pipeline_mode<synchronous>, transform_indices = @transform_1, window_bounds = array<i64: 9, 128, 128>}, {pipeline_mode = #tpu.pipeline_mode<synchronous>, transform_indices = @transform_2, window_bounds = array<i64: 1, 128>}, {pipeline_mode = #tpu.pipeline_mode<synchronous>, transform_indices = @transform_3, window_bounds = array<i64: 1, 128>}, {pipeline_mode = #tpu.pipeline_mode<synchronous>, transform_indices = @transform_4, window_bounds = array<i64: 1, 128>}, {transform_indices = @transform_5, window_bounds = array<i64: 1, 16, 16, 128>}, {transform_indices = @transform_6, window_bounds = array<i64: 1, 1, 2, 128>}]} {
    %c16_i32 = arith.constant 16 : i32
    %0 = arith.muli %arg1, %c16_i32 : i32
    %c1_i32 = arith.constant 1 : i32
    %1 = arith.subi %0, %c1_i32 : i32
    %c0_i32 = arith.constant 0 : i32
    %2 = arith.maxsi %1, %c0_i32 : i32
    %c16_i32_0 = arith.constant 16 : i32
    %3 = arith.addi %0, %c16_i32_0 : i32
    %c15_i32 = arith.constant 15 : i32
    %4 = arith.minsi %3, %c15_i32 : i32
    %c0_i32_1 = arith.constant 0 : i32
    %c0_i32_2 = arith.constant 0 : i32
    %c0_i32_3 = arith.constant 0 : i32
    %5 = tpu.memref_slice %arg2[%arg0, %0, %c0_i32_2, %c0_i32_3] : memref<2x16x16x128xbf16, #tpu.memory_space<any>> -> memref<1x16x16x128xbf16, #tpu.memory_space<any>>
    %6 = tpu.memref_squeeze %5 : memref<1x16x16x128xbf16, #tpu.memory_space<any>> -> memref<16x16x128xbf16, #tpu.memory_space<any>>
    %c1_i32_4 = arith.constant 1 : i32
    %c0_i32_5 = arith.constant 0 : i32
    %c0_i32_6 = arith.constant 0 : i32
    %7 = tpu.memref_slice %arg9[%c1_i32_4, %c0_i32_5, %c0_i32_6] : memref<18x16x128xbf16, #tpu.memory_space<vmem>> -> memref<16x16x128xbf16, #tpu.memory_space<vmem>>
    %8 = tpu.memref_slice %arg12[%c0_i32_1] : memref<3x!tpu.dma_semaphore, #tpu.memory_space<semaphore_mem>> -> memref<1x!tpu.dma_semaphore, #tpu.memory_space<semaphore_mem>>
    %9 = tpu.memref_squeeze %8 : memref<1x!tpu.dma_semaphore, #tpu.memory_space<semaphore_mem>> -> memref<!tpu.dma_semaphore, #tpu.memory_space<semaphore_mem>>
    tpu.enqueue_dma source(%6 : memref<16x16x128xbf16, #tpu.memory_space<any>>) target(%7 : memref<16x16x128xbf16, #tpu.memory_space<vmem>>) target_semaphore(%9 : memref<!tpu.dma_semaphore, #tpu.memory_space<semaphore_mem>>)
    %c1_i32_7 = arith.constant 1 : i32
    %c0_i32_8 = arith.constant 0 : i32
    %c0_i32_9 = arith.constant 0 : i32
    %10 = tpu.memref_slice %arg2[%arg0, %2, %c0_i32_8, %c0_i32_9] : memref<2x16x16x128xbf16, #tpu.memory_space<any>> -> memref<1x1x16x128xbf16, #tpu.memory_space<any>>
    %11 = tpu.memref_squeeze %10 : memref<1x1x16x128xbf16, #tpu.memory_space<any>> -> memref<1x16x128xbf16, #tpu.memory_space<any>>
    %c0_i32_10 = arith.constant 0 : i32
    %c0_i32_11 = arith.constant 0 : i32
    %c0_i32_12 = arith.constant 0 : i32
    %12 = tpu.memref_slice %arg9[%c0_i32_10, %c0_i32_11, %c0_i32_12] : memref<18x16x128xbf16, #tpu.memory_space<vmem>> -> memref<1x16x128xbf16, #tpu.memory_space<vmem>>
    %13 = tpu.memref_slice %arg12[%c1_i32_7] : memref<3x!tpu.dma_semaphore, #tpu.memory_space<semaphore_mem>> -> memref<1x!tpu.dma_semaphore, #tpu.memory_space<semaphore_mem>>
    %14 = tpu.memref_squeeze %13 : memref<1x!tpu.dma_semaphore, #tpu.memory_space<semaphore_mem>> -> memref<!tpu.dma_semaphore, #tpu.memory_space<semaphore_mem>>
    tpu.enqueue_dma source(%11 : memref<1x16x128xbf16, #tpu.memory_space<any>>) target(%12 : memref<1x16x128xbf16, #tpu.memory_space<vmem>>) target_semaphore(%14 : memref<!tpu.dma_semaphore, #tpu.memory_space<semaphore_mem>>)
    %c2_i32 = arith.constant 2 : i32
    %c0_i32_13 = arith.constant 0 : i32
    %c0_i32_14 = arith.constant 0 : i32
    %15 = tpu.memref_slice %arg2[%arg0, %4, %c0_i32_13, %c0_i32_14] : memref<2x16x16x128xbf16, #tpu.memory_space<any>> -> memref<1x1x16x128xbf16, #tpu.memory_space<any>>
    %16 = tpu.memref_squeeze %15 : memref<1x1x16x128xbf16, #tpu.memory_space<any>> -> memref<1x16x128xbf16, #tpu.memory_space<any>>
    %c17_i32 = arith.constant 17 : i32
    %c0_i32_15 = arith.constant 0 : i32
    %c0_i32_16 = arith.constant 0 : i32
    %17 = tpu.memref_slice %arg9[%c17_i32, %c0_i32_15, %c0_i32_16] : memref<18x16x128xbf16, #tpu.memory_space<vmem>> -> memref<1x16x128xbf16, #tpu.memory_space<vmem>>
    %18 = tpu.memref_slice %arg12[%c2_i32] : memref<3x!tpu.dma_semaphore, #tpu.memory_space<semaphore_mem>> -> memref<1x!tpu.dma_semaphore, #tpu.memory_space<semaphore_mem>>
    %19 = tpu.memref_squeeze %18 : memref<1x!tpu.dma_semaphore, #tpu.memory_space<semaphore_mem>> -> memref<!tpu.dma_semaphore, #tpu.memory_space<semaphore_mem>>
    tpu.enqueue_dma source(%16 : memref<1x16x128xbf16, #tpu.memory_space<any>>) target(%17 : memref<1x16x128xbf16, #tpu.memory_space<vmem>>) target_semaphore(%19 : memref<!tpu.dma_semaphore, #tpu.memory_space<semaphore_mem>>)
    %c0_i32_17 = arith.constant 0 : i32
    %c0_i32_18 = arith.constant 0 : i32
    %c0_i32_19 = arith.constant 0 : i32
    %20 = tpu.memref_slice %arg2[%arg0, %0, %c0_i32_18, %c0_i32_19] : memref<2x16x16x128xbf16, #tpu.memory_space<any>> -> memref<1x16x16x128xbf16, #tpu.memory_space<any>>
    %21 = tpu.memref_squeeze %20 : memref<1x16x16x128xbf16, #tpu.memory_space<any>> -> memref<16x16x128xbf16, #tpu.memory_space<any>>
    %c1_i32_20 = arith.constant 1 : i32
    %c0_i32_21 = arith.constant 0 : i32
    %c0_i32_22 = arith.constant 0 : i32
    %22 = tpu.memref_slice %arg9[%c1_i32_20, %c0_i32_21, %c0_i32_22] : memref<18x16x128xbf16, #tpu.memory_space<vmem>> -> memref<16x16x128xbf16, #tpu.memory_space<vmem>>
    %23 = tpu.memref_slice %arg12[%c0_i32_17] : memref<3x!tpu.dma_semaphore, #tpu.memory_space<semaphore_mem>> -> memref<1x!tpu.dma_semaphore, #tpu.memory_space<semaphore_mem>>
    %24 = tpu.memref_squeeze %23 : memref<1x!tpu.dma_semaphore, #tpu.memory_space<semaphore_mem>> -> memref<!tpu.dma_semaphore, #tpu.memory_space<semaphore_mem>>
    tpu.wait_dma2 semaphore(%24 : memref<!tpu.dma_semaphore, #tpu.memory_space<semaphore_mem>>) src(%21 : memref<16x16x128xbf16, #tpu.memory_space<any>>) dst(%22 : memref<16x16x128xbf16, #tpu.memory_space<vmem>>)
    %c1_i32_23 = arith.constant 1 : i32
    %c0_i32_24 = arith.constant 0 : i32
    %c0_i32_25 = arith.constant 0 : i32
    %25 = tpu.memref_slice %arg2[%arg0, %2, %c0_i32_24, %c0_i32_25] : memref<2x16x16x128xbf16, #tpu.memory_space<any>> -> memref<1x1x16x128xbf16, #tpu.memory_space<any>>
    %26 = tpu.memref_squeeze %25 : memref<1x1x16x128xbf16, #tpu.memory_space<any>> -> memref<1x16x128xbf16, #tpu.memory_space<any>>
    %c0_i32_26 = arith.constant 0 : i32
    %c0_i32_27 = arith.constant 0 : i32
    %c0_i32_28 = arith.constant 0 : i32
    %27 = tpu.memref_slice %arg9[%c0_i32_26, %c0_i32_27, %c0_i32_28] : memref<18x16x128xbf16, #tpu.memory_space<vmem>> -> memref<1x16x128xbf16, #tpu.memory_space<vmem>>
    %28 = tpu.memref_slice %arg12[%c1_i32_23] : memref<3x!tpu.dma_semaphore, #tpu.memory_space<semaphore_mem>> -> memref<1x!tpu.dma_semaphore, #tpu.memory_space<semaphore_mem>>
    %29 = tpu.memref_squeeze %28 : memref<1x!tpu.dma_semaphore, #tpu.memory_space<semaphore_mem>> -> memref<!tpu.dma_semaphore, #tpu.memory_space<semaphore_mem>>
    tpu.wait_dma2 semaphore(%29 : memref<!tpu.dma_semaphore, #tpu.memory_space<semaphore_mem>>) src(%26 : memref<1x16x128xbf16, #tpu.memory_space<any>>) dst(%27 : memref<1x16x128xbf16, #tpu.memory_space<vmem>>)
    %c2_i32_29 = arith.constant 2 : i32
    %c0_i32_30 = arith.constant 0 : i32
    %c0_i32_31 = arith.constant 0 : i32
    %30 = tpu.memref_slice %arg2[%arg0, %4, %c0_i32_30, %c0_i32_31] : memref<2x16x16x128xbf16, #tpu.memory_space<any>> -> memref<1x1x16x128xbf16, #tpu.memory_space<any>>
    %31 = tpu.memref_squeeze %30 : memref<1x1x16x128xbf16, #tpu.memory_space<any>> -> memref<1x16x128xbf16, #tpu.memory_space<any>>
    %c17_i32_32 = arith.constant 17 : i32
    %c0_i32_33 = arith.constant 0 : i32
    %c0_i32_34 = arith.constant 0 : i32
    %32 = tpu.memref_slice %arg9[%c17_i32_32, %c0_i32_33, %c0_i32_34] : memref<18x16x128xbf16, #tpu.memory_space<vmem>> -> memref<1x16x128xbf16, #tpu.memory_space<vmem>>
    %33 = tpu.memref_slice %arg12[%c2_i32_29] : memref<3x!tpu.dma_semaphore, #tpu.memory_space<semaphore_mem>> -> memref<1x!tpu.dma_semaphore, #tpu.memory_space<semaphore_mem>>
    %34 = tpu.memref_squeeze %33 : memref<1x!tpu.dma_semaphore, #tpu.memory_space<semaphore_mem>> -> memref<!tpu.dma_semaphore, #tpu.memory_space<semaphore_mem>>
    tpu.wait_dma2 semaphore(%34 : memref<!tpu.dma_semaphore, #tpu.memory_space<semaphore_mem>>) src(%31 : memref<1x16x128xbf16, #tpu.memory_space<any>>) dst(%32 : memref<1x16x128xbf16, #tpu.memory_space<vmem>>)
    %c0 = arith.constant 0 : index
    %c0_35 = arith.constant 0 : index
    %c0_36 = arith.constant 0 : index
    %35 = vector.load %arg9[%c0, %c0_35, %c0_36] : memref<18x16x128xbf16, #tpu.memory_space<vmem>>, vector<18x16x128xbf16>
    %36 = arith.extf %35 : vector<18x16x128xbf16> to vector<18x16x128xf32>
    %c0_37 = arith.constant 0 : index
    %c0_38 = arith.constant 0 : index
    %37 = vector.load %arg5[%c0_37, %c0_38] : memref<1x128xf32, #tpu.memory_space<vmem>>, vector<1x128xf32>
    %38 = vector.shape_cast %37 : vector<1x128xf32> to vector<1x1x128xf32>
    %39 = vector.broadcast %38 : vector<1x1x128xf32> to vector<18x16x128xf32>
    %40 = arith.mulf %36, %39 : vector<18x16x128xf32>
    %c0_39 = arith.constant 0 : index
    %c0_40 = arith.constant 0 : index
    %41 = vector.load %arg6[%c0_39, %c0_40] : memref<1x128xf32, #tpu.memory_space<vmem>>, vector<1x128xf32>
    %42 = vector.shape_cast %41 : vector<1x128xf32> to vector<1x1x128xf32>
    %43 = vector.broadcast %42 : vector<1x1x128xf32> to vector<18x16x128xf32>
    %44 = arith.addf %40, %43 : vector<18x16x128xf32>
    %cst = arith.constant 0.000000e+00 : f32
    %45 = vector.broadcast %cst : f32 to vector<18x16x128xf32>
    %46 = arith.maximumf %44, %45 : vector<18x16x128xf32>
    %c0_41 = arith.constant 0 : index
    %c1 = arith.constant 1 : index
    %c0_42 = arith.constant 0 : index
    %47 = vector.load %arg10[%c0_41, %c1, %c0_42] : memref<18x18x128xf32, #tpu.memory_space<vmem>>, vector<18x16x128xf32>
    tpu.vector_store %arg10[%c0_41, %c1, %c0_42], %46 {strides = array<i32>} : memref<18x18x128xf32, #tpu.memory_space<vmem>>, vector<18x16x128xf32>,
    %cst_43 = arith.constant 0.000000e+00 : f32
    %48 = vector.broadcast %cst_43 : f32 to vector<1x18x128xf32>
    %c0_i32_44 = arith.constant 0 : i32
    %49 = arith.cmpi eq, %arg1, %c0_i32_44 : i32
    %50 = arith.extui %49 : i1 to i32
    %c0_i32_45 = arith.constant 0 : i32
    %51 = arith.cmpi ne, %50, %c0_i32_45 : i32
    scf.if %51 {
      %c0_163 = arith.constant 0 : index
      %c0_164 = arith.constant 0 : index
      %c0_165 = arith.constant 0 : index
      %159 = vector.load %arg10[%c0_163, %c0_164, %c0_165] : memref<18x18x128xf32, #tpu.memory_space<vmem>>, vector<1x18x128xf32>
      tpu.vector_store %arg10[%c0_163, %c0_164, %c0_165], %48 {strides = array<i32>} : memref<18x18x128xf32, #tpu.memory_space<vmem>>, vector<1x18x128xf32>,
    } else {
    }
    %c0_i32_46 = arith.constant 0 : i32
    %52 = arith.cmpi eq, %arg1, %c0_i32_46 : i32
    %53 = arith.extui %52 : i1 to i32
    %c0_i32_47 = arith.constant 0 : i32
    %54 = arith.cmpi ne, %53, %c0_i32_47 : i32
    scf.if %54 {
      %c17_163 = arith.constant 17 : index
      %c0_164 = arith.constant 0 : index
      %c0_165 = arith.constant 0 : index
      %159 = vector.load %arg10[%c17_163, %c0_164, %c0_165] : memref<18x18x128xf32, #tpu.memory_space<vmem>>, vector<1x18x128xf32>
      tpu.vector_store %arg10[%c17_163, %c0_164, %c0_165], %48 {strides = array<i32>} : memref<18x18x128xf32, #tpu.memory_space<vmem>>, vector<1x18x128xf32>,
    } else {
    }
    %cst_48 = arith.constant 0.000000e+00 : f32
    %55 = vector.broadcast %cst_48 : f32 to vector<18x1x128xf32>
    %c0_49 = arith.constant 0 : index
    %c0_50 = arith.constant 0 : index
    %c0_51 = arith.constant 0 : index
    %56 = vector.load %arg10[%c0_49, %c0_50, %c0_51] : memref<18x18x128xf32, #tpu.memory_space<vmem>>, vector<18x1x128xf32>
    tpu.vector_store %arg10[%c0_49, %c0_50, %c0_51], %55 {strides = array<i32>} : memref<18x18x128xf32, #tpu.memory_space<vmem>>, vector<18x1x128xf32>,
    %c0_52 = arith.constant 0 : index
    %c17 = arith.constant 17 : index
    %c0_53 = arith.constant 0 : index
    %57 = vector.load %arg10[%c0_52, %c17, %c0_53] : memref<18x18x128xf32, #tpu.memory_space<vmem>>, vector<18x1x128xf32>
    tpu.vector_store %arg10[%c0_52, %c17, %c0_53], %55 {strides = array<i32>} : memref<18x18x128xf32, #tpu.memory_space<vmem>>, vector<18x1x128xf32>,
    %cst_54 = arith.constant 0.000000e+00 : f32
    %58 = vector.broadcast %cst_54 : f32 to vector<256x128xf32>
    %c0_55 = arith.constant 0 : index
    %c0_56 = arith.constant 0 : index
    %59 = vector.load %arg4[%c0_55, %c0_56] : memref<1x128xf32, #tpu.memory_space<vmem>>, vector<1x128xf32>
    %60 = vector.broadcast %59 : vector<1x128xf32> to vector<256x128xf32>
    %61 = arith.addf %58, %60 : vector<256x128xf32>
    %c0_57 = arith.constant 0 : index
    %c0_58 = arith.constant 0 : index
    %62 = vector.load %arg11[%c0_57, %c0_58] : memref<256x128xf32, #tpu.memory_space<vmem>>, vector<256x128xf32>
    tpu.vector_store %arg11[%c0_57, %c0_58], %61 {strides = array<i32>} : memref<256x128xf32, #tpu.memory_space<vmem>>, vector<256x128xf32>,
    %c0_59 = arith.constant 0 : index
    %c0_60 = arith.constant 0 : index
    %c0_61 = arith.constant 0 : index
    %63 = vector.load %arg10[%c0_59, %c0_60, %c0_61] : memref<18x18x128xf32, #tpu.memory_space<vmem>>, vector<16x16x128xf32>
    %64 = vector.shape_cast %63 : vector<16x16x128xf32> to vector<256x128xf32>
    %65 = arith.truncf %64 : vector<256x128xf32> to vector<256x128xbf16>
    %c0_62 = arith.constant 0 : index
    %c0_63 = arith.constant 0 : index
    %66 = vector.load %arg11[%c0_62, %c0_63] : memref<256x128xf32, #tpu.memory_space<vmem>>, vector<256x128xf32>
    %c0_64 = arith.constant 0 : index
    %c0_65 = arith.constant 0 : index
    %c0_66 = arith.constant 0 : index
    %67 = vector.load %arg3[%c0_64, %c0_65, %c0_66] : memref<9x128x128xbf16, #tpu.memory_space<vmem>>, vector<1x128x128xbf16>
    %68 = vector.shape_cast %67 : vector<1x128x128xbf16> to vector<128x128xbf16>
    %cst_67 = arith.constant dense<0.000000e+00> : vector<256x128xf32>
    %69 = tpu.matmul %65, %68, %cst_67 {dimension_numbers = #tpu.dot_dimension_numbers<[1], [0], [0], [1], [0, 0, 1, 1], [], []>} : vector<256x128xbf16>, vector<128x128xbf16>, vector<256x128xf32> -> vector<256x128xf32>
    %70 = arith.addf %66, %69 : vector<256x128xf32>
    %c0_68 = arith.constant 0 : index
    %c0_69 = arith.constant 0 : index
    %71 = vector.load %arg11[%c0_68, %c0_69] : memref<256x128xf32, #tpu.memory_space<vmem>>, vector<256x128xf32>
    tpu.vector_store %arg11[%c0_68, %c0_69], %70 {strides = array<i32>} : memref<256x128xf32, #tpu.memory_space<vmem>>, vector<256x128xf32>,
    %c0_70 = arith.constant 0 : index
    %c1_71 = arith.constant 1 : index
    %c0_72 = arith.constant 0 : index
    %72 = vector.load %arg10[%c0_70, %c1_71, %c0_72] : memref<18x18x128xf32, #tpu.memory_space<vmem>>, vector<16x16x128xf32>
    %73 = vector.shape_cast %72 : vector<16x16x128xf32> to vector<256x128xf32>
    %74 = arith.truncf %73 : vector<256x128xf32> to vector<256x128xbf16>
    %c0_73 = arith.constant 0 : index
    %c0_74 = arith.constant 0 : index
    %75 = vector.load %arg11[%c0_73, %c0_74] : memref<256x128xf32, #tpu.memory_space<vmem>>, vector<256x128xf32>
    %c1_75 = arith.constant 1 : index
    %c0_76 = arith.constant 0 : index
    %c0_77 = arith.constant 0 : index
    %76 = vector.load %arg3[%c1_75, %c0_76, %c0_77] : memref<9x128x128xbf16, #tpu.memory_space<vmem>>, vector<1x128x128xbf16>
    %77 = vector.shape_cast %76 : vector<1x128x128xbf16> to vector<128x128xbf16>
    %cst_78 = arith.constant dense<0.000000e+00> : vector<256x128xf32>
    %78 = tpu.matmul %74, %77, %cst_78 {dimension_numbers = #tpu.dot_dimension_numbers<[1], [0], [0], [1], [0, 0, 1, 1], [], []>} : vector<256x128xbf16>, vector<128x128xbf16>, vector<256x128xf32> -> vector<256x128xf32>
    %79 = arith.addf %75, %78 : vector<256x128xf32>
    %c0_79 = arith.constant 0 : index
    %c0_80 = arith.constant 0 : index
    %80 = vector.load %arg11[%c0_79, %c0_80] : memref<256x128xf32, #tpu.memory_space<vmem>>, vector<256x128xf32>
    tpu.vector_store %arg11[%c0_79, %c0_80], %79 {strides = array<i32>} : memref<256x128xf32, #tpu.memory_space<vmem>>, vector<256x128xf32>,
    %c0_81 = arith.constant 0 : index
    %c2 = arith.constant 2 : index
    %c0_82 = arith.constant 0 : index
    %81 = vector.load %arg10[%c0_81, %c2, %c0_82] : memref<18x18x128xf32, #tpu.memory_space<vmem>>, vector<16x16x128xf32>
    %82 = vector.shape_cast %81 : vector<16x16x128xf32> to vector<256x128xf32>
    %83 = arith.truncf %82 : vector<256x128xf32> to vector<256x128xbf16>
    %c0_83 = arith.constant 0 : index
    %c0_84 = arith.constant 0 : index
    %84 = vector.load %arg11[%c0_83, %c0_84] : memref<256x128xf32, #tpu.memory_space<vmem>>, vector<256x128xf32>
    %c2_85 = arith.constant 2 : index
    %c0_86 = arith.constant 0 : index
    %c0_87 = arith.constant 0 : index
    %85 = vector.load %arg3[%c2_85, %c0_86, %c0_87] : memref<9x128x128xbf16, #tpu.memory_space<vmem>>, vector<1x128x128xbf16>
    %86 = vector.shape_cast %85 : vector<1x128x128xbf16> to vector<128x128xbf16>
    %cst_88 = arith.constant dense<0.000000e+00> : vector<256x128xf32>
    %87 = tpu.matmul %83, %86, %cst_88 {dimension_numbers = #tpu.dot_dimension_numbers<[1], [0], [0], [1], [0, 0, 1, 1], [], []>} : vector<256x128xbf16>, vector<128x128xbf16>, vector<256x128xf32> -> vector<256x128xf32>
    %88 = arith.addf %84, %87 : vector<256x128xf32>
    %c0_89 = arith.constant 0 : index
    %c0_90 = arith.constant 0 : index
    %89 = vector.load %arg11[%c0_89, %c0_90] : memref<256x128xf32, #tpu.memory_space<vmem>>, vector<256x128xf32>
    tpu.vector_store %arg11[%c0_89, %c0_90], %88 {strides = array<i32>} : memref<256x128xf32, #tpu.memory_space<vmem>>, vector<256x128xf32>,
    %c1_91 = arith.constant 1 : index
    %c0_92 = arith.constant 0 : index
    %c0_93 = arith.constant 0 : index
    %90 = vector.load %arg10[%c1_91, %c0_92, %c0_93] : memref<18x18x128xf32, #tpu.memory_space<vmem>>, vector<16x16x128xf32>
    %91 = vector.shape_cast %90 : vector<16x16x128xf32> to vector<256x128xf32>
    %92 = arith.truncf %91 : vector<256x128xf32> to vector<256x128xbf16>
    %c0_94 = arith.constant 0 : index
    %c0_95 = arith.constant 0 : index
    %93 = vector.load %arg11[%c0_94, %c0_95] : memref<256x128xf32, #tpu.memory_space<vmem>>, vector<256x128xf32>
    %c3 = arith.constant 3 : index
    %c0_96 = arith.constant 0 : index
    %c0_97 = arith.constant 0 : index
    %94 = vector.load %arg3[%c3, %c0_96, %c0_97] : memref<9x128x128xbf16, #tpu.memory_space<vmem>>, vector<1x128x128xbf16>
    %95 = vector.shape_cast %94 : vector<1x128x128xbf16> to vector<128x128xbf16>
    %cst_98 = arith.constant dense<0.000000e+00> : vector<256x128xf32>
    %96 = tpu.matmul %92, %95, %cst_98 {dimension_numbers = #tpu.dot_dimension_numbers<[1], [0], [0], [1], [0, 0, 1, 1], [], []>} : vector<256x128xbf16>, vector<128x128xbf16>, vector<256x128xf32> -> vector<256x128xf32>
    %97 = arith.addf %93, %96 : vector<256x128xf32>
    %c0_99 = arith.constant 0 : index
    %c0_100 = arith.constant 0 : index
    %98 = vector.load %arg11[%c0_99, %c0_100] : memref<256x128xf32, #tpu.memory_space<vmem>>, vector<256x128xf32>
    tpu.vector_store %arg11[%c0_99, %c0_100], %97 {strides = array<i32>} : memref<256x128xf32, #tpu.memory_space<vmem>>, vector<256x128xf32>,
    %c1_101 = arith.constant 1 : index
    %c1_102 = arith.constant 1 : index
    %c0_103 = arith.constant 0 : index
    %99 = vector.load %arg10[%c1_101, %c1_102, %c0_103] : memref<18x18x128xf32, #tpu.memory_space<vmem>>, vector<16x16x128xf32>
    %100 = vector.shape_cast %99 : vector<16x16x128xf32> to vector<256x128xf32>
    %101 = arith.truncf %100 : vector<256x128xf32> to vector<256x128xbf16>
    %c0_104 = arith.constant 0 : index
    %c0_105 = arith.constant 0 : index
    %102 = vector.load %arg11[%c0_104, %c0_105] : memref<256x128xf32, #tpu.memory_space<vmem>>, vector<256x128xf32>
    %c4 = arith.constant 4 : index
    %c0_106 = arith.constant 0 : index
    %c0_107 = arith.constant 0 : index
    %103 = vector.load %arg3[%c4, %c0_106, %c0_107] : memref<9x128x128xbf16, #tpu.memory_space<vmem>>, vector<1x128x128xbf16>
    %104 = vector.shape_cast %103 : vector<1x128x128xbf16> to vector<128x128xbf16>
    %cst_108 = arith.constant dense<0.000000e+00> : vector<256x128xf32>
    %105 = tpu.matmul %101, %104, %cst_108 {dimension_numbers = #tpu.dot_dimension_numbers<[1], [0], [0], [1], [0, 0, 1, 1], [], []>} : vector<256x128xbf16>, vector<128x128xbf16>, vector<256x128xf32> -> vector<256x128xf32>
    %106 = arith.addf %102, %105 : vector<256x128xf32>
    %c0_109 = arith.constant 0 : index
    %c0_110 = arith.constant 0 : index
    %107 = vector.load %arg11[%c0_109, %c0_110] : memref<256x128xf32, #tpu.memory_space<vmem>>, vector<256x128xf32>
    tpu.vector_store %arg11[%c0_109, %c0_110], %106 {strides = array<i32>} : memref<256x128xf32, #tpu.memory_space<vmem>>, vector<256x128xf32>,
    %c1_111 = arith.constant 1 : index
    %c2_112 = arith.constant 2 : index
    %c0_113 = arith.constant 0 : index
    %108 = vector.load %arg10[%c1_111, %c2_112, %c0_113] : memref<18x18x128xf32, #tpu.memory_space<vmem>>, vector<16x16x128xf32>
    %109 = vector.shape_cast %108 : vector<16x16x128xf32> to vector<256x128xf32>
    %110 = arith.truncf %109 : vector<256x128xf32> to vector<256x128xbf16>
    %c0_114 = arith.constant 0 : index
    %c0_115 = arith.constant 0 : index
    %111 = vector.load %arg11[%c0_114, %c0_115] : memref<256x128xf32, #tpu.memory_space<vmem>>, vector<256x128xf32>
    %c5 = arith.constant 5 : index
    %c0_116 = arith.constant 0 : index
    %c0_117 = arith.constant 0 : index
    %112 = vector.load %arg3[%c5, %c0_116, %c0_117] : memref<9x128x128xbf16, #tpu.memory_space<vmem>>, vector<1x128x128xbf16>
    %113 = vector.shape_cast %112 : vector<1x128x128xbf16> to vector<128x128xbf16>
    %cst_118 = arith.constant dense<0.000000e+00> : vector<256x128xf32>
    %114 = tpu.matmul %110, %113, %cst_118 {dimension_numbers = #tpu.dot_dimension_numbers<[1], [0], [0], [1], [0, 0, 1, 1], [], []>} : vector<256x128xbf16>, vector<128x128xbf16>, vector<256x128xf32> -> vector<256x128xf32>
    %115 = arith.addf %111, %114 : vector<256x128xf32>
    %c0_119 = arith.constant 0 : index
    %c0_120 = arith.constant 0 : index
    %116 = vector.load %arg11[%c0_119, %c0_120] : memref<256x128xf32, #tpu.memory_space<vmem>>, vector<256x128xf32>
    tpu.vector_store %arg11[%c0_119, %c0_120], %115 {strides = array<i32>} : memref<256x128xf32, #tpu.memory_space<vmem>>, vector<256x128xf32>,
    %c2_121 = arith.constant 2 : index
    %c0_122 = arith.constant 0 : index
    %c0_123 = arith.constant 0 : index
    %117 = vector.load %arg10[%c2_121, %c0_122, %c0_123] : memref<18x18x128xf32, #tpu.memory_space<vmem>>, vector<16x16x128xf32>
    %118 = vector.shape_cast %117 : vector<16x16x128xf32> to vector<256x128xf32>
    %119 = arith.truncf %118 : vector<256x128xf32> to vector<256x128xbf16>
    %c0_124 = arith.constant 0 : index
    %c0_125 = arith.constant 0 : index
    %120 = vector.load %arg11[%c0_124, %c0_125] : memref<256x128xf32, #tpu.memory_space<vmem>>, vector<256x128xf32>
    %c6 = arith.constant 6 : index
    %c0_126 = arith.constant 0 : index
    %c0_127 = arith.constant 0 : index
    %121 = vector.load %arg3[%c6, %c0_126, %c0_127] : memref<9x128x128xbf16, #tpu.memory_space<vmem>>, vector<1x128x128xbf16>
    %122 = vector.shape_cast %121 : vector<1x128x128xbf16> to vector<128x128xbf16>
    %cst_128 = arith.constant dense<0.000000e+00> : vector<256x128xf32>
    %123 = tpu.matmul %119, %122, %cst_128 {dimension_numbers = #tpu.dot_dimension_numbers<[1], [0], [0], [1], [0, 0, 1, 1], [], []>} : vector<256x128xbf16>, vector<128x128xbf16>, vector<256x128xf32> -> vector<256x128xf32>
    %124 = arith.addf %120, %123 : vector<256x128xf32>
    %c0_129 = arith.constant 0 : index
    %c0_130 = arith.constant 0 : index
    %125 = vector.load %arg11[%c0_129, %c0_130] : memref<256x128xf32, #tpu.memory_space<vmem>>, vector<256x128xf32>
    tpu.vector_store %arg11[%c0_129, %c0_130], %124 {strides = array<i32>} : memref<256x128xf32, #tpu.memory_space<vmem>>, vector<256x128xf32>,
    %c2_131 = arith.constant 2 : index
    %c1_132 = arith.constant 1 : index
    %c0_133 = arith.constant 0 : index
    %126 = vector.load %arg10[%c2_131, %c1_132, %c0_133] : memref<18x18x128xf32, #tpu.memory_space<vmem>>, vector<16x16x128xf32>
    %127 = vector.shape_cast %126 : vector<16x16x128xf32> to vector<256x128xf32>
    %128 = arith.truncf %127 : vector<256x128xf32> to vector<256x128xbf16>
    %c0_134 = arith.constant 0 : index
    %c0_135 = arith.constant 0 : index
    %129 = vector.load %arg11[%c0_134, %c0_135] : memref<256x128xf32, #tpu.memory_space<vmem>>, vector<256x128xf32>
    %c7 = arith.constant 7 : index
    %c0_136 = arith.constant 0 : index
    %c0_137 = arith.constant 0 : index
    %130 = vector.load %arg3[%c7, %c0_136, %c0_137] : memref<9x128x128xbf16, #tpu.memory_space<vmem>>, vector<1x128x128xbf16>
    %131 = vector.shape_cast %130 : vector<1x128x128xbf16> to vector<128x128xbf16>
    %cst_138 = arith.constant dense<0.000000e+00> : vector<256x128xf32>
    %132 = tpu.matmul %128, %131, %cst_138 {dimension_numbers = #tpu.dot_dimension_numbers<[1], [0], [0], [1], [0, 0, 1, 1], [], []>} : vector<256x128xbf16>, vector<128x128xbf16>, vector<256x128xf32> -> vector<256x128xf32>
    %133 = arith.addf %129, %132 : vector<256x128xf32>
    %c0_139 = arith.constant 0 : index
    %c0_140 = arith.constant 0 : index
    %134 = vector.load %arg11[%c0_139, %c0_140] : memref<256x128xf32, #tpu.memory_space<vmem>>, vector<256x128xf32>
    tpu.vector_store %arg11[%c0_139, %c0_140], %133 {strides = array<i32>} : memref<256x128xf32, #tpu.memory_space<vmem>>, vector<256x128xf32>,
    %c2_141 = arith.constant 2 : index
    %c2_142 = arith.constant 2 : index
    %c0_143 = arith.constant 0 : index
    %135 = vector.load %arg10[%c2_141, %c2_142, %c0_143] : memref<18x18x128xf32, #tpu.memory_space<vmem>>, vector<16x16x128xf32>
    %136 = vector.shape_cast %135 : vector<16x16x128xf32> to vector<256x128xf32>
    %137 = arith.truncf %136 : vector<256x128xf32> to vector<256x128xbf16>
    %c0_144 = arith.constant 0 : index
    %c0_145 = arith.constant 0 : index
    %138 = vector.load %arg11[%c0_144, %c0_145] : memref<256x128xf32, #tpu.memory_space<vmem>>, vector<256x128xf32>
    %c8 = arith.constant 8 : index
    %c0_146 = arith.constant 0 : index
    %c0_147 = arith.constant 0 : index
    %139 = vector.load %arg3[%c8, %c0_146, %c0_147] : memref<9x128x128xbf16, #tpu.memory_space<vmem>>, vector<1x128x128xbf16>
    %140 = vector.shape_cast %139 : vector<1x128x128xbf16> to vector<128x128xbf16>
    %cst_148 = arith.constant dense<0.000000e+00> : vector<256x128xf32>
    %141 = tpu.matmul %137, %140, %cst_148 {dimension_numbers = #tpu.dot_dimension_numbers<[1], [0], [0], [1], [0, 0, 1, 1], [], []>} : vector<256x128xbf16>, vector<128x128xbf16>, vector<256x128xf32> -> vector<256x128xf32>
    %142 = arith.addf %138, %141 : vector<256x128xf32>
    %c0_149 = arith.constant 0 : index
    %c0_150 = arith.constant 0 : index
    %143 = vector.load %arg11[%c0_149, %c0_150] : memref<256x128xf32, #tpu.memory_space<vmem>>, vector<256x128xf32>
    tpu.vector_store %arg11[%c0_149, %c0_150], %142 {strides = array<i32>} : memref<256x128xf32, #tpu.memory_space<vmem>>, vector<256x128xf32>,
    %c0_151 = arith.constant 0 : index
    %c0_152 = arith.constant 0 : index
    %144 = vector.load %arg11[%c0_151, %c0_152] : memref<256x128xf32, #tpu.memory_space<vmem>>, vector<256x128xf32>
    %cst_153 = arith.constant dense<0.000000e+00> : vector<128xf32>
    %145 = vector.multi_reduction <add>, %144, %cst_153 [0] : vector<256x128xf32> to vector<128xf32>
    %146 = vector.shape_cast %145 : vector<128xf32> to vector<1x128xf32>
    %147 = arith.mulf %144, %144 : vector<256x128xf32>
    %cst_154 = arith.constant dense<0.000000e+00> : vector<128xf32>
    %148 = vector.multi_reduction <add>, %147, %cst_154 [0] : vector<256x128xf32> to vector<128xf32>
    %149 = vector.shape_cast %148 : vector<128xf32> to vector<1x128xf32>
    %150 = tpu.concatenate %146, %149 in 0 : vector<1x128xf32>, vector<1x128xf32> -> vector<2x128xf32>
    %c0_155 = arith.constant 0 : index
    %c0_156 = arith.constant 0 : index
    %c0_157 = arith.constant 0 : index
    %c0_158 = arith.constant 0 : index
    %151 = vector.load %arg8[%c0_155, %c0_156, %c0_157, %c0_158] : memref<1x1x2x128xf32, #tpu.memory_space<vmem>>, vector<1x1x2x128xf32>
    %152 = vector.shape_cast %151 : vector<1x1x2x128xf32> to vector<2x128xf32>
    %153 = vector.shape_cast %150 : vector<2x128xf32> to vector<1x1x2x128xf32>
    tpu.vector_store %arg8[%c0_155, %c0_156, %c0_157, %c0_158], %153 {strides = array<i32>} : memref<1x1x2x128xf32, #tpu.memory_space<vmem>>, vector<1x1x2x128xf32>,
    %154 = vector.shape_cast %144 : vector<256x128xf32> to vector<16x16x128xf32>
    %155 = arith.truncf %154 : vector<16x16x128xf32> to vector<16x16x128xbf16>
    %c0_159 = arith.constant 0 : index
    %c0_160 = arith.constant 0 : index
    %c0_161 = arith.constant 0 : index
    %c0_162 = arith.constant 0 : index
    %156 = vector.load %arg7[%c0_159, %c0_160, %c0_161, %c0_162] : memref<1x16x16x128xbf16, #tpu.memory_space<vmem>>, vector<1x16x16x128xbf16>
    %157 = vector.shape_cast %156 : vector<1x16x16x128xbf16> to vector<16x16x128xbf16>
    %158 = vector.shape_cast %155 : vector<16x16x128xbf16> to vector<1x16x16x128xbf16>
    tpu.vector_store %arg7[%c0_159, %c0_160, %c0_161, %c0_162], %158 {strides = array<i32>} : memref<1x16x16x128xbf16, #tpu.memory_space<vmem>>, vector<1x16x16x128xbf16>,
    return
  }
  func.func @transform_1(%arg0: i32, %arg1: i32) -> (i32, i32, i32) {
    %c0_i32 = arith.constant 0 : i32
    %c0_i32_0 = arith.constant 0 : i32
    %c0_i32_1 = arith.constant 0 : i32
    %c0_i32_2 = arith.constant 0 : i32
    return %c0_i32, %c0_i32_0, %c0_i32_1 : i32, i32, i32
  }
  func.func @transform_2(%arg0: i32, %arg1: i32) -> (i32, i32) {
    %c0_i32 = arith.constant 0 : i32
    %c0_i32_0 = arith.constant 0 : i32
    %c0_i32_1 = arith.constant 0 : i32
    return %c0_i32, %c0_i32_0 : i32, i32
  }
  func.func @transform_3(%arg0: i32, %arg1: i32) -> (i32, i32) {
    %c0_i32 = arith.constant 0 : i32
    %c0_i32_0 = arith.constant 0 : i32
    %c0_i32_1 = arith.constant 0 : i32
    return %c0_i32, %c0_i32_0 : i32, i32
  }
  func.func @transform_4(%arg0: i32, %arg1: i32) -> (i32, i32) {
    %c0_i32 = arith.constant 0 : i32
    %c0_i32_0 = arith.constant 0 : i32
    %c0_i32_1 = arith.constant 0 : i32
    return %c0_i32, %c0_i32_0 : i32, i32
  }
  func.func @transform_5(%arg0: i32, %arg1: i32) -> (i32, i32, i32, i32) {
    %c0_i32 = arith.constant 0 : i32
    %c0_i32_0 = arith.constant 0 : i32
    %c0_i32_1 = arith.constant 0 : i32
    return %arg0, %arg1, %c0_i32, %c0_i32_0 : i32, i32, i32, i32
  }
  func.func @transform_6(%arg0: i32, %arg1: i32) -> (i32, i32, i32, i32) {
    %c0_i32 = arith.constant 0 : i32
    %c0_i32_0 = arith.constant 0 : i32
    %c0_i32_1 = arith.constant 0 : i32
    return %arg0, %arg1, %c0_i32, %c0_i32_0 : i32, i32, i32, i32
  }
}

module attributes {stable_mosaic.version = 11 : i64} {
  func.func @_bn_relu_kernel(%arg0: i32, %arg1: memref<256x128xbf16, #tpu.memory_space<vmem>>, %arg2: memref<1x128xf32, #tpu.memory_space<vmem>>, %arg3: memref<1x128xf32, #tpu.memory_space<vmem>>, %arg4: memref<256x128xf32, #tpu.memory_space<vmem>>) attributes {dimension_semantics = [#tpu.dimension_semantics<parallel>], iteration_bounds = array<i64: 2>, scalar_prefetch = 0 : i64, scratch_operands = 0 : i64, tpu.core_type = #tpu.core_type<tc>, window_params = [{transform_indices = @transform_0, window_bounds = array<i64: 256, 128>}, {pipeline_mode = #tpu.pipeline_mode<synchronous>, transform_indices = @transform_1, window_bounds = array<i64: 1, 128>}, {pipeline_mode = #tpu.pipeline_mode<synchronous>, transform_indices = @transform_2, window_bounds = array<i64: 1, 128>}, {transform_indices = @transform_3, window_bounds = array<i64: 256, 128>}]} {
    %c0 = arith.constant 0 : index
    %c0_0 = arith.constant 0 : index
    %0 = vector.load %arg1[%c0, %c0_0] : memref<256x128xbf16, #tpu.memory_space<vmem>>, vector<256x128xbf16>
    %1 = arith.extf %0 : vector<256x128xbf16> to vector<256x128xf32>
    %c0_1 = arith.constant 0 : index
    %c0_2 = arith.constant 0 : index
    %2 = vector.load %arg2[%c0_1, %c0_2] : memref<1x128xf32, #tpu.memory_space<vmem>>, vector<1x128xf32>
    %3 = vector.broadcast %2 : vector<1x128xf32> to vector<256x128xf32>
    %4 = arith.mulf %1, %3 : vector<256x128xf32>
    %c0_3 = arith.constant 0 : index
    %c0_4 = arith.constant 0 : index
    %5 = vector.load %arg3[%c0_3, %c0_4] : memref<1x128xf32, #tpu.memory_space<vmem>>, vector<1x128xf32>
    %6 = vector.broadcast %5 : vector<1x128xf32> to vector<256x128xf32>
    %7 = arith.addf %4, %6 : vector<256x128xf32>
    %cst = arith.constant 0.000000e+00 : f32
    %8 = vector.broadcast %cst : f32 to vector<256x128xf32>
    %9 = arith.maximumf %7, %8 : vector<256x128xf32>
    %c0_5 = arith.constant 0 : index
    %c0_6 = arith.constant 0 : index
    %10 = vector.load %arg4[%c0_5, %c0_6] : memref<256x128xf32, #tpu.memory_space<vmem>>, vector<256x128xf32>
    tpu.vector_store %arg4[%c0_5, %c0_6], %9 {strides = array<i32>} : memref<256x128xf32, #tpu.memory_space<vmem>>, vector<256x128xf32>,
    return
  }
  func.func @transform_0(%arg0: i32) -> (i32, i32) {
    %c0_i32 = arith.constant 0 : i32
    %c0_i32_0 = arith.constant 0 : i32
    return %arg0, %c0_i32 : i32, i32
  }
  func.func @transform_1(%arg0: i32) -> (i32, i32) {
    %c0_i32 = arith.constant 0 : i32
    %c0_i32_0 = arith.constant 0 : i32
    %c0_i32_1 = arith.constant 0 : i32
    return %c0_i32, %c0_i32_0 : i32, i32
  }
  func.func @transform_2(%arg0: i32) -> (i32, i32) {
    %c0_i32 = arith.constant 0 : i32
    %c0_i32_0 = arith.constant 0 : i32
    %c0_i32_1 = arith.constant 0 : i32
    return %c0_i32, %c0_i32_0 : i32, i32
  }
  func.func @transform_3(%arg0: i32) -> (i32, i32) {
    %c0_i32 = arith.constant 0 : i32
    %c0_i32_0 = arith.constant 0 : i32
    return %arg0, %c0_i32 : i32, i32
  }
}

</mosaic_0001>

<bundles_post_ra>
// kernel: up_forward.5
= control target key start
LH: loop header
LB: loop body
LE: loop exit
PB: predicated region body
PF: predicated region fallthrough
CT: control target
= control target key end

     0   :  { %s564_s12 = smov 0   ;;  %s711_s0 = inlined_call_operand.vmem [shape: bf16[512,128], index: 0, kind: input, shape index: {}]   ;;  %s712_s1 = inlined_call_operand.vmem [shape: f32[1,128], index: 1, kind: input, shape index: {}]   ;;  %s713_s2 = inlined_call_operand.vmem [shape: f32[1,128], index: 2, kind: input, shape index: {}]   ;;  %s714_s3 = inlined_call_operand.vmem [shape: f32[512,128], index: 3, kind: output, shape index: {}]  }
   0x1 LB: > { %s436_s13 = sadd.s32 4294967295, %s542_s12   ;;  %p440_p0 = scmp.ge.s32.totalorder %s542_s12, 1  ;;  %s542_s12 = sphi %s564_s12, %s13_s12  }
   0x2   : > { %p138_p1 = scmp.lt.s32.totalorder %s542_s12, 3 }
   0x4   : > { %p139_p2 = pnand %p440_p0, %p138_p1 }
   0x5   : > { %s441_s14 = sshll.u32 (!%p139_p2), %s436_s13, 5  ;;  %v583_v0 = vld [vmem:[%s712_s1] ss:$0 sm:$0xff] (!%p139_p2) }
   0x6   : > { %142 = sbr.rel (%p139_p2) target bundleno = 53 (0x35), region = 32  ;;  %p163_p3 = scmp.lt.s32.totalorder (!%p139_p2), %s441_s14, 63  ;;  %v592_v9 = vld [vmem:[%s713_s2] ss:$0 sm:$0xff] (!%p139_p2) }
   0xd   : > { %s716_s14 = smov (!%p163_p3, %s441_s14), 63 }
   0xe   : > { %s442_s15 = sshll.u32 %s716_s14, 2  ;;  %s444_s23 = sshll.u32 %s716_s14, 3 }
   0xf   : > { %s578_s18 = scalar_lea.vmem %s711_s0, %s442_s15  ;;  %s610_s26 = scalar_lea.vmem %s714_s3, %s444_s23 }
  0x10   : > { %v450_v1 = vld [vmem:[%s578_s18] sm:$0xff]   ;;  %v513_v2 = vld [vmem:[%s578_s18 + $0x8] sm:$0xff]   ;;  %v514_v3 = vld [vmem:[%s578_s18 + $0x10] sm:$0xff]  }
  0x11   : > { %v451_v4 = vunpack.c.l.bf16 %v450_v1  ;;  %v452_v5 = vunpack.c.h.bf16 %v450_v1  ;;  %v455_v6 = vunpack.c.l.bf16 %v513_v2  ;;  %v456_v7 = vunpack.c.h.bf16 %v513_v2  ;;  %v515_v8 = vld [vmem:[%s578_s18 + $0x18] sm:$0xff]   ;;  %v516_v30 = vld [vmem:[%s578_s18 + $0x20] sm:$0xff]   ;;  %v517_v31 = vld [vmem:[%s578_s18 + $0x28] sm:$0xff]  }
  0x12   : > { %v459_v10 = vunpack.c.l.bf16 %v514_v3  ;;  %v460_v11 = vunpack.c.h.bf16 %v514_v3  ;;  %v463_v12 = vunpack.c.l.bf16 %v515_v8  ;;  %v464_v13 = vunpack.c.h.bf16 %v515_v8  ;;  %v518_v36 = vld [vmem:[%s578_s18 + $0x30] sm:$0xff]   ;;  %v519_v37 = vld [vmem:[%s578_s18 + $0x38] sm:$0xff]   ;;  %v520_v3 = vld [vmem:[%s578_s18 + $0x40] sm:$0xff]  }
  0x13   : > { %v245_v14 = vmul.f32 %v451_v4, %v583_v0  ;;  %v246_v15 = vmul.f32 %v452_v5, %v583_v0  ;;  %v247_v16 = vmul.f32 %v455_v6, %v583_v0  ;;  %v248_v17 = vmul.f32 %v456_v7, %v583_v0  ;;  %v521_v4 = vld [vmem:[%s578_s18 + $0x48] sm:$0xff]  }
  0x14   : > { %v249_v18 = vmul.f32 %v459_v10, %v583_v0  ;;  %v250_v19 = vmul.f32 %v460_v11, %v583_v0  ;;  %v251_v20 = vmul.f32 %v463_v12, %v583_v0  ;;  %v252_v21 = vmul.f32 %v464_v13, %v583_v0  ;;  %v522_v10 = vld [vmem:[%s578_s18 + $0x50] sm:$0xff]   ;;  %v523_v11 = vld [vmem:[%s578_s18 + $0x58] sm:$0xff]  }
  0x15   : > { %v284_v22 = vadd.f32 %v592_v9, %v245_v14  ;;  %v285_v23 = vadd.f32 %v592_v9, %v246_v15  ;;  %v286_v24 = vadd.f32 %v592_v9, %v247_v16  ;;  %v287_v25 = vadd.f32 %v592_v9, %v248_v17 }
  0x16   : > { %v288_v26 = vadd.f32 %v592_v9, %v249_v18  ;;  %v289_v27 = vadd.f32 %v592_v9, %v250_v19  ;;  %v290_v28 = vadd.f32 %v592_v9, %v251_v20  ;;  %v291_v29 = vadd.f32 %v592_v9, %v252_v21 }
  0x17   : > { %v316_v32 = vmax.f32 %v284_v22, 0.0  ;;  %v317_v33 = vmax.f32 %v285_v23, 0.0  ;;  %v318_v34 = vmax.f32 %v286_v24, 0.0  ;;  %v319_v35 = vmax.f32 %v287_v25, 0.0 }
  0x18   : > { %v320_v38 = vmax.f32 %v288_v26, 0.0  ;;  %v321_v39 = vmax.f32 %v289_v27, 0.0  ;;  %v322_v40 = vmax.f32 %v290_v28, 0.0  ;;  %v323_v41 = vmax.f32 %v291_v29, 0.0 }
  0x19   : > { %348 = vst [vmem:[%s610_s26] sm:$0xff] %v316_v32  ;;  %349 = vst [vmem:[%s610_s26 + $0x8] sm:$0xff] %v317_v33  ;;  %v467_v42 = vunpack.c.l.bf16 %v516_v30  ;;  %v468_v43 = vunpack.c.h.bf16 %v516_v30  ;;  %v471_v44 = vunpack.c.l.bf16 %v517_v31  ;;  %v472_v45 = vunpack.c.h.bf16 %v517_v31 }
  0x1a   : > { %350 = vst [vmem:[%s610_s26 + $0x10] sm:$0xff] %v318_v34  ;;  %351 = vst [vmem:[%s610_s26 + $0x18] sm:$0xff] %v319_v35  ;;  %v475_v46 = vunpack.c.l.bf16 %v518_v36  ;;  %v476_v47 = vunpack.c.h.bf16 %v518_v36  ;;  %v479_v48 = vunpack.c.l.bf16 %v519_v37  ;;  %v480_v49 = vunpack.c.h.bf16 %v519_v37 }
  0x1b   : > { %352 = vst [vmem:[%s610_s26 + $0x20] sm:$0xff] %v320_v38  ;;  %353 = vst [vmem:[%s610_s26 + $0x28] sm:$0xff] %v321_v39  ;;  %v253_v50 = vmul.f32 %v467_v42, %v583_v0  ;;  %v254_v51 = vmul.f32 %v468_v43, %v583_v0  ;;  %v255_v52 = vmul.f32 %v471_v44, %v583_v0  ;;  %v483_v16 = vunpack.c.l.bf16 %v520_v3 }
  0x1c   : > { %354 = vst [vmem:[%s610_s26 + $0x30] sm:$0xff] %v322_v40  ;;  %355 = vst [vmem:[%s610_s26 + $0x38] sm:$0xff] %v323_v41  ;;  %v256_v53 = vmul.f32 %v472_v45, %v583_v0  ;;  %v257_v54 = vmul.f32 %v475_v46, %v583_v0  ;;  %v258_v55 = vmul.f32 %v476_v47, %v583_v0  ;;  %v484_v17 = vunpack.c.h.bf16 %v520_v3  ;;  %v524_v40 = vld [vmem:[%s578_s18 + $0x60] sm:$0xff]   ;;  %v525_v41 = vld [vmem:[%s578_s18 + $0x68] sm:$0xff]  }
  0x1d   : > { %v259_v56 = vmul.f32 %v479_v48, %v583_v0  ;;  %v260_v57 = vmul.f32 %v480_v49, %v583_v0  ;;  %v292_v58 = vadd.f32 %v592_v9, %v253_v50  ;;  %v293_v59 = vadd.f32 %v592_v9, %v254_v51  ;;  %v526_v46 = vld [vmem:[%s578_s18 + $0x70] sm:$0xff]   ;;  %v527_v47 = vld [vmem:[%s578_s18 + $0x78] sm:$0xff]  }
  0x1e   : > { %v294_v60 = vadd.f32 %v592_v9, %v255_v52  ;;  %v295_v61 = vadd.f32 %v592_v9, %v256_v53  ;;  %v296_v62 = vadd.f32 %v592_v9, %v257_v54  ;;  %v297_v63 = vadd.f32 %v592_v9, %v258_v55 }
  0x1f   : > { %v298_v1 = vadd.f32 %v592_v9, %v259_v56  ;;  %v299_v2 = vadd.f32 %v592_v9, %v260_v57  ;;  %v324_v5 = vmax.f32 %v292_v58, 0.0  ;;  %v325_v6 = vmax.f32 %v293_v59, 0.0 }
  0x20   : > { %v326_v7 = vmax.f32 %v294_v60, 0.0  ;;  %v327_v8 = vmax.f32 %v295_v61, 0.0  ;;  %v328_v12 = vmax.f32 %v296_v62, 0.0  ;;  %v329_v13 = vmax.f32 %v297_v63, 0.0 }
  0x21   : > { %v330_v14 = vmax.f32 %v298_v1, 0.0  ;;  %v331_v15 = vmax.f32 %v299_v2, 0.0  ;;  %356 = vst [vmem:[%s610_s26 + $0x40] sm:$0xff] %v324_v5  ;;  %357 = vst [vmem:[%s610_s26 + $0x48] sm:$0xff] %v325_v6  ;;  %v487_v18 = vunpack.c.l.bf16 %v521_v4  ;;  %v488_v19 = vunpack.c.h.bf16 %v521_v4 }
  0x22   : > { %358 = vst [vmem:[%s610_s26 + $0x50] sm:$0xff] %v326_v7  ;;  %359 = vst [vmem:[%s610_s26 + $0x58] sm:$0xff] %v327_v8  ;;  %v491_v20 = vunpack.c.l.bf16 %v522_v10  ;;  %v492_v21 = vunpack.c.h.bf16 %v522_v10  ;;  %v495_v22 = vunpack.c.l.bf16 %v523_v11  ;;  %v496_v23 = vunpack.c.h.bf16 %v523_v11 }
  0x23   : > { %360 = vst [vmem:[%s610_s26 + $0x60] sm:$0xff] %v328_v12  ;;  %361 = vst [vmem:[%s610_s26 + $0x68] sm:$0xff] %v329_v13  ;;  %v261_v24 = vmul.f32 %v483_v16, %v583_v0  ;;  %v262_v25 = vmul.f32 %v484_v17, %v583_v0  ;;  %v263_v26 = vmul.f32 %v487_v18, %v583_v0  ;;  %v499_v52 = vunpack.c.l.bf16 %v524_v40 }
  0x24   : > { %362 = vst [vmem:[%s610_s26 + $0x70] sm:$0xff] %v330_v14  ;;  %363 = vst [vmem:[%s610_s26 + $0x78] sm:$0xff] %v331_v15  ;;  %v264_v27 = vmul.f32 %v488_v19, %v583_v0  ;;  %v265_v28 = vmul.f32 %v491_v20, %v583_v0  ;;  %v266_v29 = vmul.f32 %v492_v21, %v583_v0  ;;  %v500_v53 = vunpack.c.h.bf16 %v524_v40 }
  0x25   : > { %v267_v30 = vmul.f32 %v495_v22, %v583_v0  ;;  %v268_v31 = vmul.f32 %v496_v23, %v583_v0  ;;  %v300_v32 = vadd.f32 %v592_v9, %v261_v24  ;;  %v301_v33 = vadd.f32 %v592_v9, %v262_v25 }
  0x26   : > { %v302_v34 = vadd.f32 %v592_v9, %v263_v26  ;;  %v303_v35 = vadd.f32 %v592_v9, %v264_v27  ;;  %v304_v36 = vadd.f32 %v592_v9, %v265_v28  ;;  %v305_v37 = vadd.f32 %v592_v9, %v266_v29 }
  0x27   : > { %v306_v38 = vadd.f32 %v592_v9, %v267_v30  ;;  %v307_v39 = vadd.f32 %v592_v9, %v268_v31  ;;  %v332_v42 = vmax.f32 %v300_v32, 0.0  ;;  %v333_v43 = vmax.f32 %v301_v33, 0.0 }
  0x28   : > { %v334_v44 = vmax.f32 %v302_v34, 0.0  ;;  %v335_v45 = vmax.f32 %v303_v35, 0.0  ;;  %v336_v48 = vmax.f32 %v304_v36, 0.0  ;;  %v337_v49 = vmax.f32 %v305_v37, 0.0 }
  0x29   : > { %v338_v50 = vmax.f32 %v306_v38, 0.0  ;;  %v339_v51 = vmax.f32 %v307_v39, 0.0  ;;  %364 = vst [vmem:[%s610_s26 + $0x80] sm:$0xff] %v332_v42  ;;  %365 = vst [vmem:[%s610_s26 + $0x88] sm:$0xff] %v333_v43  ;;  %v503_v54 = vunpack.c.l.bf16 %v525_v41  ;;  %v504_v55 = vunpack.c.h.bf16 %v525_v41 }
  0x2a   : > { %366 = vst [vmem:[%s610_s26 + $0x90] sm:$0xff] %v334_v44  ;;  %367 = vst [vmem:[%s610_s26 + $0x98] sm:$0xff] %v335_v45  ;;  %v507_v56 = vunpack.c.l.bf16 %v526_v46  ;;  %v508_v57 = vunpack.c.h.bf16 %v526_v46  ;;  %v511_v58 = vunpack.c.l.bf16 %v527_v47  ;;  %v512_v59 = vunpack.c.h.bf16 %v527_v47 }
  0x2b   : > { %368 = vst [vmem:[%s610_s26 + $0xa0] sm:$0xff] %v336_v48  ;;  %369 = vst [vmem:[%s610_s26 + $0xa8] sm:$0xff] %v337_v49  ;;  %v269_v60 = vmul.f32 %v499_v52, %v583_v0  ;;  %v270_v61 = vmul.f32 %v500_v53, %v583_v0  ;;  %v271_v62 = vmul.f32 %v503_v54, %v583_v0 }
  0x2c   : > { %370 = vst [vmem:[%s610_s26 + $0xb0] sm:$0xff] %v338_v50  ;;  %371 = vst [vmem:[%s610_s26 + $0xb8] sm:$0xff] %v339_v51  ;;  %v272_v63 = vmul.f32 %v504_v55, %v583_v0  ;;  %v273_v1 = vmul.f32 %v507_v56, %v583_v0  ;;  %v274_v2 = vmul.f32 %v508_v57, %v583_v0 }
  0x2d   : > { %v275_v3 = vmul.f32 %v511_v58, %v583_v0  ;;  %v276_v4 = vmul.f32 %v512_v59, %v583_v0  ;;  %v308_v5 = vadd.f32 %v592_v9, %v269_v60  ;;  %v309_v6 = vadd.f32 %v592_v9, %v270_v61 }
  0x2e   : > { %v310_v7 = vadd.f32 %v592_v9, %v271_v62  ;;  %v311_v8 = vadd.f32 %v592_v9, %v272_v63  ;;  %v312_v10 = vadd.f32 %v592_v9, %v273_v1  ;;  %v313_v11 = vadd.f32 %v592_v9, %v274_v2 }
  0x2f   : > { %v314_v0 = vadd.f32 %v592_v9, %v275_v3  ;;  %v315_v12 = vadd.f32 %v592_v9, %v276_v4  ;;  %v340_v13 = vmax.f32 %v308_v5, 0.0  ;;  %v341_v14 = vmax.f32 %v309_v6, 0.0 }
  0x30   : > { %v342_v15 = vmax.f32 %v310_v7, 0.0  ;;  %v343_v16 = vmax.f32 %v311_v8, 0.0  ;;  %v344_v17 = vmax.f32 %v312_v10, 0.0  ;;  %v345_v18 = vmax.f32 %v313_v11, 0.0 }
  0x31   : > { %v346_v19 = vmax.f32 %v314_v0, 0.0  ;;  %v347_v20 = vmax.f32 %v315_v12, 0.0  ;;  %372 = vst [vmem:[%s610_s26 + $0xc0] sm:$0xff] %v340_v13  ;;  %373 = vst [vmem:[%s610_s26 + $0xc8] sm:$0xff] %v341_v14 }
  0x32   : > { %374 = vst [vmem:[%s610_s26 + $0xd0] sm:$0xff] %v342_v15  ;;  %375 = vst [vmem:[%s610_s26 + $0xd8] sm:$0xff] %v343_v16 }
  0x33   : > { %376 = vst [vmem:[%s610_s26 + $0xe0] sm:$0xff] %v344_v17  ;;  %377 = vst [vmem:[%s610_s26 + $0xe8] sm:$0xff] %v345_v18 }
  0x34   : > { %378 = vst [vmem:[%s610_s26 + $0xf0] sm:$0xff] %v346_v19  ;;  %379 = vst [vmem:[%s610_s26 + $0xf8] sm:$0xff] %v347_v20 }
  0x35 PF: > { %s13_s12 = sadd.s32 1, %s542_s12  }
  0x36   : > { %p10_p4 = scmp.ge.s32.totalorder %s13_s12, 4  }
  0x38   :  { %12 = sbr.rel (!%p10_p4) target bundleno = 1 (0x1), region = 62 }

// kernel: up_forward.4
= control target key start
LH: loop header
LB: loop body
LE: loop exit
PB: predicated region body
PF: predicated region fallthrough
CT: control target
= control target key end

     0   :  { %s6057_s21 = smov 0   ;;  %s6059_s22 = smov 0   ;;  %s6997_s0 = inlined_call_operand.vmem [shape: bf16[2,16,16,128], index: 0, kind: input, shape index: {}]   ;;  %s6998_s1 = inlined_call_operand.vmem [shape: bf16[9,128,128], index: 1, kind: input, shape index: {}]   ;;  %s6999_s2 = inlined_call_operand.vmem [shape: f32[1,128], index: 2, kind: input, shape index: {}]   ;;  %s7000_s3 = inlined_call_operand.vmem [shape: f32[1,128], index: 3, kind: input, shape index: {}]   ;;  %s7001_s4 = inlined_call_operand.vmem [shape: f32[1,128], index: 4, kind: input, shape index: {}]   ;;  %s7002_s5 = inlined_call_operand.vmem [shape: bf16[2,16,16,128], index: 5, kind: output, shape index: {0}]   ;;  %s7003_s6 = inlined_call_operand.vmem [shape: f32[2,1,2,128], index: 6, kind: output, shape index: {1}]  }
   0x1   :  { %s6061_s23 = smov 0  }
   0x2 LB: > { %s29_s24 = sadd.s32 1, %s6015_s22  ;;  %p4552_p0 = scmp.ge.s32.totalorder %s6019_s23, 1  ;;  %s6019_s23 = sphi %s6061_s23, %s17_s23   ;;  %s6015_s22 = sphi %s6059_s22, %s7005_s22   ;;  %s6011_s21 = sphi %s6057_s21, %s7004_s21  }
   0x3   : > { %p31_p1 = scmp.ge.s32.totalorder %s29_s24, 2  ;;  %p197_p2 = scmp.lt.s32.totalorder %s6019_s23, 3 }
   0x5   : > { %s7007_s24 = smov (%p31_p1, %s29_s24), 0  ;;  %p198_p3 = pnand %p4552_p0, %p197_p2 }
   0x6   : > { %p233_p4 = scmp.lt.s32.totalorder (!%p198_p3), %s6011_s21, 1  ;;  %s4801_s25 = sshll.u32 (!%p198_p3), %s6011_s21, 7 }
   0x7   : > { %201 = sbr.rel (%p198_p3) target bundleno = 581 (0x245), region = 36  ;;  %s262_s28 = scalar_lea.vmem (!%p198_p3), %s6997_s0, %s4801_s25 }
   0x8   : > { %v6083_v0 = vld [vmem:[%s262_s28] sm:$0xff] (!%p198_p3)  ;;  %v6085_v1 = vld [vmem:[%s262_s28 + $0x8] sm:$0xff] (!%p198_p3)  ;;  %v6087_v2 = vld [vmem:[%s262_s28 + $0x10] sm:$0xff] (!%p198_p3) }
   0x9   : > { %v6089_v3 = vld [vmem:[%s262_s28 + $0x18] sm:$0xff] (!%p198_p3)  ;;  %v6091_v4 = vld [vmem:[%s262_s28 + $0x20] sm:$0xff] (!%p198_p3)  ;;  %v6093_v5 = vld [vmem:[%s262_s28 + $0x28] sm:$0xff] (!%p198_p3) }
   0xa   : > { %v6095_v6 = vld [vmem:[%s262_s28 + $0x30] sm:$0xff] (!%p198_p3)  ;;  %v6097_v7 = vld [vmem:[%s262_s28 + $0x38] sm:$0xff] (!%p198_p3)  ;;  %v6099_v8 = vld [vmem:[%s262_s28 + $0x40] sm:$0xff] (!%p198_p3) }
   0xb   : > { %v6111_v9 = vld [vmem:[%s262_s28 + $0x48] sm:$0xff] (!%p198_p3)  ;;  %v6113_v10 = vld [vmem:[%s262_s28 + $0x50] sm:$0xff] (!%p198_p3)  ;;  %v6115_v11 = vld [vmem:[%s262_s28 + $0x58] sm:$0xff] (!%p198_p3) }
   0xc   : > { %v6117_v12 = vld [vmem:[%s262_s28 + $0x60] sm:$0xff] (!%p198_p3)  ;;  %v6119_v13 = vld [vmem:[%s262_s28 + $0x68] sm:$0xff] (!%p198_p3)  ;;  %v6121_v14 = vld [vmem:[%s262_s28 + $0x70] sm:$0xff] (!%p198_p3) }
   0xd   : > { %v6123_v15 = vld [vmem:[%s262_s28 + $0x78] sm:$0xff] (!%p198_p3) }
   0xe   : > { %s7009_s21 = smov (!%p233_p4, %s6011_s21), 1 }
   0xf   : > { %s4800_s29 = sshll.u32 %s7009_s21, 7  ;;  %s4555_s30 = sshll.u32 %s7009_s21, 1 }
  0x10   : > { %s6104_s9 = scalar_lea.vmem %s7002_s5, %s4800_s29  ;;  %s6109_s12 = scalar_lea.vmem %s7003_s6, %s4555_s30 }
  0x11   : > { %335 = vsyncadd [#allocation5], 2048  ;;  %v6125_v16 = vld [vmem:[%s262_s28] sm:$0xff] }
  0x12   : > { %382 = vsyncadd [#allocation5 + $0x1], 128  ;;  %s4804_s13 = sadd.s32 120, %s4801_s25 }
  0x13   : > { %s386_s16 = scalar_lea.vmem %s6997_s0, %s4804_s13 }
  0x14   : > { %v6130_v17 = vld [vmem:[%s386_s16] sm:$0xff] }
  0x15   : > { %430 = vsyncadd [#allocation5 + $0x2], 128 }
  0x16   : > { %6003 = dma.done.wait [#allocation5], 2048 }
  0x17   : > { %6004 = vsyncadd [#allocation5], 4294965248 }
  0x18   : > { %6005 = dma.done.wait [#allocation5 + $0x1], 128 }
  0x19   : > { %6006 = vsyncadd [#allocation5 + $0x1], 4294967168 }
  0x1a   : > { %6007 = dma.done.wait [#allocation5 + $0x2], 128 }
  0x1b   : > { %6008 = vsyncadd [#allocation5 + $0x2], 4294967168  ;;  %v6021_v18 = vmov 0.0   ;;  %v5910_v19 = vld [vmem:[%s6998_s1] sm:$0xff]   ;;  %v5912_v21 = vld [vmem:[%s6998_s1 + $0x8] sm:$0xff]   ;;  %v461_v28 = vunpack.c.l.bf16 %v6125_v16  ;;  %v462_v29 = vunpack.c.h.bf16 %v6125_v16  ;;  %v463_v31 = vunpack.c.l.bf16 %v6083_v0 }
  0x1c   : > { %667 = vst [vmem:[#allocation3 + $0x18] sm:$0x1] %v6021_v18  ;;  %668 = vst [vmem:[#allocation3 + $0x30] sm:$0x1] %v6021_v18  ;;  %v5911_v20 = vld [vmem:[%s6998_s1 + $0x100] sm:$0xff]   ;;  %5149 = vmatprep.subr.bf16.mxu1 %v5910_v19  ;;  %v5913_v22 = vld [vmem:[%s6998_s1 + $0x108] sm:$0xff]   ;;  %v464_v32 = vunpack.c.h.bf16 %v6083_v0  ;;  %v465_v33 = vunpack.c.l.bf16 %v6085_v1  ;;  %v466_v34 = vunpack.c.h.bf16 %v6085_v1  ;;  %v467_v35 = vunpack.c.l.bf16 %v6087_v2 }
  0x1d   : > { %669 = vst [vmem:[#allocation3 + $0x48] sm:$0x1] %v6021_v18  ;;  %670 = vst [vmem:[#allocation3 + $0x60] sm:$0x1] %v6021_v18  ;;  %5341 = vmatprep.subr.bf16.mxu0 %v5911_v20  ;;  %5150 = vmatpush3.bf16.msra.mxu1 %v5910_v19  ;;  %v5914_v23 = vld [vmem:[%s6998_s1 + $0x10] sm:$0xff]   ;;  %v5916_v25 = vld [vmem:[%s6998_s1 + $0x18] sm:$0xff]   ;;  %v468_v36 = vunpack.c.h.bf16 %v6087_v2  ;;  %v469_v37 = vunpack.c.l.bf16 %v6089_v3  ;;  %v470_v38 = vunpack.c.h.bf16 %v6089_v3  ;;  %v471_v40 = vunpack.c.l.bf16 %v6091_v4 }
  0x1e   : > { %671 = vst [vmem:[#allocation3 + $0x78] sm:$0x1] %v6021_v18  ;;  %672 = vst [vmem:[#allocation3 + $0x90] sm:$0x1] %v6021_v18  ;;  %5342 = vmatpush3.bf16.msra.mxu0 %v5911_v20  ;;  %5151 = vmatprep.subr.bf16.mxu1 %v5912_v21  ;;  %v5915_v24 = vld [vmem:[%s6998_s1 + $0x110] sm:$0xff]   ;;  %v5917_v26 = vld [vmem:[%s6998_s1 + $0x118] sm:$0xff]   ;;  %v472_v41 = vunpack.c.h.bf16 %v6091_v4  ;;  %v473_v42 = vunpack.c.l.bf16 %v6093_v5  ;;  %v474_v43 = vunpack.c.h.bf16 %v6093_v5  ;;  %v475_v46 = vunpack.c.l.bf16 %v6095_v6 }
  0x1f   : > { %673 = vst [vmem:[#allocation3 + $0xa8] sm:$0x1] %v6021_v18  ;;  %674 = vst [vmem:[#allocation3 + $0xc0] sm:$0x1] %v6021_v18  ;;  %5343 = vmatprep.subr.bf16.mxu0 %v5913_v22  ;;  %v5918_v27 = vld [vmem:[%s6998_s1 + $0x20] sm:$0xff]   ;;  %v5920_v39 = vld [vmem:[%s6998_s1 + $0x28] sm:$0xff]   ;;  %v476_v47 = vunpack.c.h.bf16 %v6095_v6  ;;  %v477_v48 = vunpack.c.l.bf16 %v6097_v7  ;;  %v478_v49 = vunpack.c.h.bf16 %v6097_v7  ;;  %v479_v4 = vunpack.c.l.bf16 %v6099_v8 }
  0x20   : > { %675 = vst [vmem:[#allocation3 + $0xd8] sm:$0x1] %v6021_v18  ;;  %676 = vst [vmem:[#allocation3 + $0xf0] sm:$0x1] %v6021_v18  ;;  %v5919_v30 = vld [vmem:[%s6998_s1 + $0x120] sm:$0xff]   ;;  %v5921_v50 = vld [vmem:[%s6998_s1 + $0x128] sm:$0xff]  }
  0x21   : > { %677 = vst [vmem:[#allocation3 + $0x108] sm:$0x1] %v6021_v18  ;;  %678 = vst [vmem:[#allocation3 + $0x120] sm:$0x1] %v6021_v18  ;;  %5152 = vmatpush3.bf16.msra.mxu1 %v5912_v21  ;;  %v6214_v44 = vld [vmem:[%s7000_s3] ss:$0 sm:$0xff] }
  0x22   : > { %679 = vst [vmem:[#allocation3 + $0x138] sm:$0x1] %v6021_v18  ;;  %680 = vst [vmem:[#allocation3 + $0x150] sm:$0x1] %v6021_v18  ;;  %5344 = vmatpush3.bf16.msra.mxu0 %v5913_v22  ;;  %5153 = vmatprep.subr.bf16.mxu1 %v5914_v23  ;;  %v6219_v45 = vld [vmem:[%s7001_s4] ss:$0 sm:$0xff]  ;;  %v504_v51 = vmul.f32 %v6214_v44, %v461_v28  ;;  %v505_v52 = vmul.f32 %v6214_v44, %v462_v29 }
  0x23   : > { %681 = vst [vmem:[#allocation3 + $0x168] sm:$0x1] %v6021_v18  ;;  %682 = vst [vmem:[#allocation3 + $0x180] sm:$0x1] %v6021_v18  ;;  %5345 = vmatprep.subr.bf16.mxu0 %v5915_v24  ;;  %v506_v53 = vmul.f32 %v6214_v44, %v463_v31  ;;  %v507_v54 = vmul.f32 %v6214_v44, %v464_v32  ;;  %v508_v55 = vmul.f32 %v6214_v44, %v465_v33  ;;  %v5922_v59 = vld [vmem:[%s6998_s1 + $0x30] sm:$0xff]   ;;  %vm4211_vm0 = vcmask 1040384  }
  0x24   : > { %685 = vst [vmem:[#allocation3 + $0x29] sm:$0x1] %v6021_v18  ;;  %686 = vst [vmem:[#allocation3 + $0x41] sm:$0x1] %v6021_v18  ;;  %v509_v56 = vmul.f32 %v6214_v44, %v466_v34  ;;  %v510_v57 = vmul.f32 %v6214_v44, %v467_v35  ;;  %v511_v58 = vmul.f32 %v6214_v44, %v468_v36  ;;  %v5923_v0 = vld [vmem:[%s6998_s1 + $0x130] sm:$0xff]   ;;  %v480_v34 = vunpack.c.h.bf16 %v6099_v8  ;;  %v5925_v35 = vld [vmem:[%s6998_s1 + $0x138] sm:$0xff]  }
  0x25   : > { %687 = vst [vmem:[#allocation3 + $0x59] sm:$0x1] %v6021_v18  ;;  %688 = vst [vmem:[#allocation3 + $0x71] sm:$0x1] %v6021_v18  ;;  %5154 = vmatpush3.bf16.msra.mxu1 %v5914_v23  ;;  %v547_v60 = vadd.f32 %v6219_v45, %v504_v51  ;;  %v548_v61 = vadd.f32 %v6219_v45, %v505_v52  ;;  %v549_v62 = vadd.f32 %v6219_v45, %v506_v53  ;;  %v6314_v51 = vld [vmem:[%s6998_s1 + $0x40] sm:$0xff]  }
  0x26   : > { %689 = vst [vmem:[#allocation3 + $0x89] sm:$0x1] %v6021_v18  ;;  %690 = vst [vmem:[#allocation3 + $0xa1] sm:$0x1] %v6021_v18  ;;  %5346 = vmatpush3.bf16.msra.mxu0 %v5915_v24  ;;  %5155 = vmatprep.subr.bf16.mxu1 %v5916_v25  ;;  %v550_v63 = vadd.f32 %v6219_v45, %v507_v54  ;;  %v6247_v1 = vadd.f32 %v6219_v45, %v508_v55 }
  0x27   : > { %691 = vst [vmem:[#allocation3 + $0xb9] sm:$0x1] %v6021_v18  ;;  %692 = vst [vmem:[#allocation3 + $0xd1] sm:$0x1] %v6021_v18  ;;  %5347 = vmatprep.subr.bf16.mxu0 %v5917_v26  ;;  %v6250_v2 = vadd.f32 %v6219_v45, %v509_v56  ;;  %v6253_v3 = vadd.f32 %v6219_v45, %v510_v57  ;;  %v583_v16 = vmax.f32 %v547_v60, 0.0  ;;  %v584_v19 = vmax.f32 %v548_v61, 0.0 }
  0x28   : > { %693 = vst [vmem:[#allocation3 + $0xe9] sm:$0x1] %v6021_v18  ;;  %694 = vst [vmem:[#allocation3 + $0x101] sm:$0x1] %v6021_v18  ;;  %v585_v20 = vmax.f32 %v549_v62, 0.0  ;;  %v586_v21 = vmax.f32 %v550_v63, 0.0  ;;  %v6259_v24 = vadd.f32 %v6219_v45, %v511_v58  ;;  %v513_v28 = vmul.f32 %v6214_v44, %v470_v38 }
  0x29   : > { %695 = vst [vmem:[#allocation3 + $0x119] sm:$0x1] %v6021_v18  ;;  %696 = vst [vmem:[#allocation3 + $0x131] sm:$0x1] %v6021_v18  ;;  %5156 = vmatpush3.bf16.msra.mxu1 %v5916_v25  ;;  %v587_v22 = vmax.f32 %v6247_v1, 0.0  ;;  %v588_v23 = vmax.f32 %v6250_v2, 0.0  ;;  %v514_v29 = vmul.f32 %v6214_v44, %v471_v40  ;;  %v515_v32 = vmul.f32 %v6214_v44, %v472_v41 }
  0x2a   : > { %697 = vst [vmem:[#allocation3 + $0x149] sm:$0x1] %v6021_v18  ;;  %698 = vst [vmem:[#allocation3 + $0x161] sm:$0x1] %v6021_v18  ;;  %5348 = vmatpush3.bf16.msra.mxu0 %v5917_v26  ;;  %5157 = vmatprep.subr.bf16.mxu1 %v5918_v27  ;;  %v589_v25 = vmax.f32 %v6253_v3, 0.0  ;;  %v6262_v26 = vpack.c.bf16 %v586_v21, %v585_v20  ;;  %v590_v31 = vmax.f32 %v6259_v24, 0.0  ;;  %v487_v24 = vunpack.c.l.bf16 %v6117_v12 }
  0x2b   : > { %699 = vst [vmem:[#allocation3 + $0x179] sm:$0x1] %v6021_v18  ;;  %700 = vst [vmem:[#allocation3 + $0x191] sm:$0x1] %v6021_v18  ;;  %5349 = vmatprep.subr.bf16.mxu0 %v5919_v30  ;;  %v516_v33 = vmul.f32 %v6214_v44, %v473_v42  ;;  %v6296_v38 = vadd.f32 %v6219_v45, %v514_v29  ;;  %v6302_v40 = vadd.f32 %v6219_v45, %v515_v32  ;;  %v5927_v58 = vld [vmem:[%s6998_s1 + $0x140] sm:$0xff]  }
  0x2c   : > { %619 = vst [vmem:[#allocation3 + $0x1] sm:$0xff] %v583_v16  ;;  %620 = vst [vmem:[#allocation3 + $0x9] sm:$0xff] %v584_v19  ;;  %5357 = vmatprep.mubr.bf16.mxu0 %v6262_v26  ;;  %v517_v41 = vmul.f32 %v6214_v44, %v474_v43  ;;  %v518_v5 = vmul.f32 %v6214_v44, %v475_v46  ;;  %v519_v57 = vmul.f32 %v6214_v44, %v476_v47 }
  0x2d   : > { %5158 = vmatpush3.bf16.msra.mxu1 %v5918_v27  ;;  %621 = vst [vmem:[#allocation3 + $0x19] sm:$0xff] %v585_v20  ;;  %622 = vst [vmem:[#allocation3 + $0x21] sm:$0xff] %v586_v21  ;;  %v512_v27 = vmul.f32 %v6214_v44, %v469_v37  ;;  %v6293_v37 = vadd.f32 %v6219_v45, %v513_v28  ;;  %v6308_v42 = vadd.f32 %v6219_v45, %v516_v33 }
  0x2e   : > { %5350 = vmatpush3.bf16.msra.mxu0 %v5919_v30  ;;  %5159 = vmatprep.subr.bf16.mxu1 %v5920_v39  ;;  %v5924_v30 = vld [vmem:[%s6998_s1 + $0x38] sm:$0xff]   ;;  %659 = vst [vmem:[#allocation3] sm:$0xff] %v6021_v18  ;;  %660 = vst [vmem:[#allocation3 + $0x8] sm:$0xff] %v6021_v18  ;;  %v593_v54 = vmax.f32 %v6296_v38, 0.0  ;;  %v594_v43 = vmax.f32 %v6302_v40, 0.0  ;;  %v6324_v55 = vadd.f32 %v6219_v45, %v517_v41  ;;  %v485_v21 = vunpack.c.l.bf16 %v6115_v11  ;;  %v6425_v41 = vld [vmem:[%s6998_s1 + $0x50] sm:$0xff]  }
  0x2f   : > { %5351 = vmatprep.subr.bf16.mxu0 %v5921_v50  ;;  %661 = vst [vmem:[#allocation3 + $0x10] sm:$0x3] %v6021_v18  ;;  %623 = vst [vmem:[#allocation3 + $0x31] sm:$0xff] %v587_v22  ;;  %v6290_v36 = vadd.f32 %v6219_v45, %v512_v27  ;;  %v592_v53 = vmax.f32 %v6293_v37, 0.0  ;;  %v595_v56 = vmax.f32 %v6308_v42, 0.0  ;;  %v6340_v46 = vadd.f32 %v6219_v45, %v518_v5  ;;  %v5931_v37 = vld [vmem:[%s6998_s1 + $0x158] sm:$0xff]  }
  0x30   : > { %624 = vst [vmem:[#allocation3 + $0x39] sm:$0xff] %v588_v23  ;;  %625 = vst [vmem:[#allocation3 + $0x49] sm:$0xff] %v589_v25  ;;  %v520_v6 = vmul.f32 %v6214_v44, %v477_v48  ;;  %v521_v47 = vmul.f32 %v6214_v44, %v478_v49  ;;  %v596_v62 = vmax.f32 %v6324_v55, 0.0  ;;  %v6355_v63 = vadd.f32 %v6219_v45, %v519_v57 }
  0x31   : > { %5160 = vmatpush3.bf16.msra.mxu1 %v5920_v39  ;;  %666 = vst [vmem:[#allocation3] sm:$0x1] %v6021_v18  ;;  %684 = vst [vmem:[#allocation3 + $0x11] sm:$0x1] %v6021_v18  ;;  %v481_v39 = vunpack.c.l.bf16 %v6111_v9  ;;  %v591_v52 = vmax.f32 %v6290_v36, 0.0  ;;  %v522_v7 = vmul.f32 %v6214_v44, %v479_v4  ;;  %v484_v48 = vunpack.c.h.bf16 %v6113_v10 }
  0x32   : > { %5352 = vmatpush3.bf16.msra.mxu0 %v5921_v50  ;;  %5161 = vmatprep.subr.bf16.mxu1 %v5922_v59  ;;  %626 = vst [vmem:[#allocation3 + $0x51] sm:$0xff] %v590_v31  ;;  %v482_v50 = vunpack.c.h.bf16 %v6111_v9  ;;  %628 = vst [vmem:[#allocation3 + $0x69] sm:$0xff] %v592_v53  ;;  %v6365_v49 = vpack.c.bf16 %v588_v23, %v587_v22  ;;  %v597_v19 = vmax.f32 %v6340_v46, 0.0  ;;  %v598_v1 = vmax.f32 %v6355_v63, 0.0  ;;  %v5928_v23 = vld [vmem:[%s6998_s1 + $0x148] sm:$0xff]  }
  0x33   : > { %5353 = vmatprep.subr.bf16.mxu0 %v5923_v0  ;;  %627 = vst [vmem:[#allocation3 + $0x61] sm:$0xff] %v591_v52  ;;  %629 = vst [vmem:[#allocation3 + $0x79] sm:$0xff] %v593_v54  ;;  %v6369_v20 = vadd.f32 %v6219_v45, %v520_v6  ;;  %v6372_v8 = vadd.f32 %v6219_v45, %v521_v47  ;;  %v523_v2 = vmul.f32 %v6214_v44, %v480_v34 }
  0x34   : > { %v744_v60 = vld [vmem:[#allocation3 + $0x18] sm:$0xff]  ;;  %v745_v61 = vld [vmem:[#allocation3 + $0x20] sm:$0xff]  ;;  %630 = vst [vmem:[#allocation3 + $0x81] sm:$0xff] %v594_v43  ;;  %631 = vst [vmem:[#allocation3 + $0x91] sm:$0xff] %v595_v56  ;;  %v486_v29 = vunpack.c.h.bf16 %v6115_v11  ;;  %v6395_v32 = vpack.c.bf16 %v590_v31, %v589_v25  ;;  %v6400_v33 = vadd.f32 %v6219_v45, %v522_v7  ;;  %v524_v3 = vmul.f32 %v6214_v44, %v481_v39 }
  0x35   : > { %5162 = vmatpush3.bf16.msra.mxu1 %v5922_v59  ;;  %v483_v59 = vunpack.c.l.bf16 %v6113_v10  ;;  %v775_v10 = vpack.c.bf16 %v745_v61, %v744_v60  ;;  %632 = vst [vmem:[#allocation3 + $0x99] sm:$0xff] %v596_v62  ;;  %633 = vst [vmem:[#allocation3 + $0xa9] sm:$0xff] %v597_v19  ;;  %v599_v27 = vmax.f32 %v6369_v20, 0.0  ;;  %v600_v28 = vmax.f32 %v6372_v8, 0.0  ;;  %v5929_v11 = vld [vmem:[%s6998_s1 + $0x48] sm:$0xff]   ;;  %v5937_v20 = vld [vmem:[%s6998_s1 + $0x178] sm:$0xff]  }
  0x36   : > { %5354 = vmatpush3.bf16.msra.mxu0 %v5923_v0  ;;  %5163 = vmatprep.subr.bf16.mxu1 %v5924_v30  ;;  %v746_v0 = vld [vmem:[#allocation3 + $0x30] sm:$0xff]  ;;  %634 = vst [vmem:[#allocation3 + $0xb1] sm:$0xff] %v598_v1  ;;  %v6403_v34 = vadd.f32 %v6219_v45, %v523_v2  ;;  %v488_v25 = vunpack.c.h.bf16 %v6117_v12  ;;  %v489_v31 = vunpack.c.l.bf16 %v6119_v13  ;;  %v601_v5 = vmax.f32 %v6400_v33, 0.0 }
  0x37   : > { %5355 = vmatprep.subr.bf16.mxu0 %v5925_v35  ;;  %v747_v16 = vld [vmem:[#allocation3 + $0x38] sm:$0xff]  ;;  %635 = vst [vmem:[#allocation3 + $0xc1] sm:$0xff] %v599_v27  ;;  %636 = vst [vmem:[#allocation3 + $0xc9] sm:$0xff] %v600_v28  ;;  %v525_v12 = vmul.f32 %v6214_v44, %v482_v50  ;;  %v526_v57 = vmul.f32 %v6214_v44, %v483_v59  ;;  %v6435_v60 = vadd.f32 %v6219_v45, %v524_v3 }
  0x38   : > { %v742_v4 = vld [vmem:[#allocation3] sm:$0xff]  ;;  %v602_v39 = vmax.f32 %v6403_v34, 0.0  ;;  %v527_v61 = vmul.f32 %v6214_v44, %v484_v48  ;;  %v490_v7 = vunpack.c.h.bf16 %v6119_v13  ;;  %637 = vst [vmem:[#allocation3 + $0xd9] sm:$0xff] %v601_v5  ;;  %v492_v13 = vunpack.c.h.bf16 %v6121_v14  ;;  %v5935_v3 = vld [vmem:[%s6998_s1 + $0x58] sm:$0xff]  }
  0x39   : > { %5164 = vmatpush3.bf16.msra.mxu1 %v5924_v30  ;;  %v774_v22 = vpack.c.bf16 %v6021_v18, %v742_v4  ;;  %v6389_v30 = vpack.c.bf16 %v747_v16, %v746_v0  ;;  %v749_v6 = vld [vmem:[#allocation3 + $0x50] sm:$0xff]  ;;  %v491_v0 = vunpack.c.l.bf16 %v6121_v14  ;;  %v6447_v50 = vadd.f32 %v6219_v45, %v525_v12 }
  0x3a   : > { %5356 = vmatpush3.bf16.msra.mxu0 %v5925_v35  ;;  %5197 = vmatprep.subr.bf16.mxu1 %v6314_v51  ;;  %v5930_v35 = vld [vmem:[%s6998_s1 + $0x150] sm:$0xff]   ;;  %v750_v47 = vld [vmem:[#allocation3 + $0x60] sm:$0xff]  ;;  %v751_v9 = vld [vmem:[#allocation3 + $0x68] sm:$0xff]  ;;  %638 = vst [vmem:[#allocation3 + $0xe1] sm:$0xff] %v602_v39  ;;  %v493_v59 = vunpack.c.l.bf16 %v6123_v15  ;;  %v6458_v48 = vpack.c.bf16 %v592_v53, %v591_v52  ;;  %v603_v16 = vmax.f32 %v6435_v60, 0.0  ;;  %v6462_v4 = vadd.f32 %v6219_v45, %v527_v61 }
  0x3b   : > { %5389 = vmatprep.subr.bf16.mxu0 %v5927_v58  ;;  %5165 = vmatprep.mubr.bf16.mxu1 %v774_v22  ;;  %v604_v14 = vmax.f32 %v6447_v50, 0.0  ;;  %v529_v36 = vmul.f32 %v6214_v44, %v486_v29  ;;  %v6473_v52 = vpack.c.bf16 %v751_v9, %v750_v47  ;;  %v6486_v29 = vpack.c.bf16 %v594_v43, %v593_v54  ;;  %v753_v40 = vld [vmem:[#allocation3 + $0x80] sm:$0xff]  ;;  %v754_v61 = vld [vmem:[#allocation3 + $0x90] sm:$0xff] }
  0x3c   : > { %5166 = vmatmul.mubr.bf16.vlgmr.msra.gmra.mrb[0].mxu1 %v775_v10  ;;  %v528_v10 = vmul.f32 %v6214_v44, %v485_v21  ;;  %639 = vst [vmem:[#allocation3 + $0xf1] sm:$0xff] %v603_v16  ;;  %v606_v53 = vmax.f32 %v6462_v4, 0.0  ;;  %v532_v38 = vmul.f32 %v6214_v44, %v489_v31  ;;  %v534_v50 = vmul.f32 %v6214_v44, %v491_v0  ;;  %v756_v63 = vld [vmem:[#allocation3 + $0xa8] sm:$0xff] }
  0x3d   : > { %5358 = vmatmul.mubr.bf16.vlgmr.msra.gmra.mrb[0].mxu0 %v6365_v49  ;;  %5198 = vmatpush3.bf16.msra.mxu1 %v6314_v51  ;;  %v6450_v51 = vadd.f32 %v6219_v45, %v526_v57  ;;  %640 = vst [vmem:[#allocation3 + $0xf9] sm:$0xff] %v604_v14  ;;  %v572_v12 = vadd.f32 %v6219_v45, %v529_v36 }
  0x3e   : > { %5390 = vmatpush3.bf16.msra.mxu0 %v5927_v58  ;;  %v748_v58 = vld [vmem:[#allocation3 + $0x48] sm:$0xff]  ;;  %5169 = vmatprep.mubr.bf16.mxu1 %v6389_v30  ;;  %v6479_v21 = vadd.f32 %v6219_v45, %v528_v10  ;;  %642 = vst [vmem:[#allocation3 + $0x111] sm:$0xff] %v606_v53  ;;  %v533_v57 = vmul.f32 %v6214_v44, %v490_v7 }
  0x3f   : > { %5391 = vmatprep.subr.bf16.mxu0 %v5928_v23  ;;  %5361 = vmatprep.mubr.bf16.mxu0 %v6395_v32  ;;  %v6465_v2 = vpack.c.bf16 %v749_v6, %v748_v58  ;;  %v605_v22 = vmax.f32 %v6450_v51, 0.0  ;;  %v494_v58 = vunpack.c.h.bf16 %v6123_v15  ;;  %v608_v31 = vmax.f32 %v572_v12, 0.0 }
  0x40   : > { %5199 = vmatprep.subr.bf16.mxu1 %v5929_v11  ;;  %v607_v54 = vmax.f32 %v6479_v21, 0.0  ;;  %v575_v47 = vadd.f32 %v6219_v45, %v532_v38  ;;  %v6513_v15 = vpack.c.bf16 %v596_v62, %v595_v56  ;;  %v576_v9 = vadd.f32 %v6219_v45, %v533_v57  ;;  %v5938_v56 = vld [vmem:[%s6998_s1 + $0x60] sm:$0xff]   ;;  %v759_v38 = vld [vmem:[#allocation3 + $0xc8] sm:$0xff] }
  0x41   : > { %5200 = vmatpush3.bf16.msra.mxu1 %v5929_v11  ;;  %v752_v11 = vld [vmem:[#allocation3 + $0x78] sm:$0xff]  ;;  %641 = vst [vmem:[#allocation3 + $0x109] sm:$0xff] %v605_v22  ;;  %644 = vst [vmem:[#allocation3 + $0x129] sm:$0xff] %v608_v31  ;;  %v535_v55 = vmul.f32 %v6214_v44, %v492_v13  ;;  %v577_v0 = vadd.f32 %v6219_v45, %v534_v50  ;;  %v536_v36 = vmul.f32 %v6214_v44, %v493_v59  ;;  %v5934_v59 = vld [vmem:[%s6998_s1 + $0x168] sm:$0xff]  }
  0x42   : > { %5392 = vmatpush3.bf16.msra.mxu0 %v5928_v23  ;;  %v530_v23 = vmul.f32 %v6214_v44, %v487_v24  ;;  %5201 = vmatprep.subr.bf16.mxu1 %v6425_v41  ;;  %v531_v24 = vmul.f32 %v6214_v44, %v488_v25  ;;  %v5933_v25 = vld [vmem:[%s6998_s1 + $0x160] sm:$0xff]   ;;  %643 = vst [vmem:[#allocation3 + $0x121] sm:$0xff] %v607_v54  ;;  %v611_v10 = vmax.f32 %v575_v47, 0.0  ;;  %v612_v62 = vmax.f32 %v576_v9, 0.0  ;;  %v2597_v9 = vld [vmem:[#allocation3 + $0x52] sm:$0xff] }
  0x43   : > { %5393 = vmatprep.subr.bf16.mxu0 %v5930_v35  ;;  %v6518_v4 = vpack.c.bf16 %v753_v40, %v752_v11  ;;  %v537_v21 = vmul.f32 %v6214_v44, %v494_v58  ;;  %v578_v13 = vadd.f32 %v6219_v45, %v535_v55  ;;  %v6539_v11 = vpack.c.bf16 %v604_v14, %v603_v16  ;;  %v5940_v16 = vld [vmem:[%s6998_s1 + $0x68] sm:$0xff]   ;;  %v5942_v58 = vld [vmem:[%s6998_s1 + $0x70] sm:$0xff]   ;;  %v2595_v47 = vld [vmem:[#allocation3 + $0x3a] sm:$0xff] }
  0x44   : > { %v573_v43 = vadd.f32 %v6219_v45, %v530_v23  ;;  %5170 = vmatmul.mubr.bf16.gmra.mrb[4].mxu1 %v6465_v2  ;;  %v574_v6 = vadd.f32 %v6219_v45, %v531_v24  ;;  %647 = vst [vmem:[#allocation3 + $0x151] sm:$0xff] %v611_v10  ;;  %v6535_v23 = vpack.c.bf16 %v602_v39, %v601_v5  ;;  %648 = vst [vmem:[#allocation3 + $0x159] sm:$0xff] %v612_v62  ;;  %v758_v24 = vld [vmem:[#allocation3 + $0xc0] sm:$0xff]  ;;  %v762_v55 = vld [vmem:[#allocation3 + $0xf0] sm:$0xff] }
  0x45   : > { %5362 = vmatmul.mubr.bf16.gmra.mrb[4].mxu0 %v6458_v48  ;;  %5173 = vmatprep.mubr.bf16.mxu1 %v6473_v52  ;;  %v6545_v12 = vadd.f32 %v6219_v45, %v536_v36  ;;  %v6548_v33 = vadd.f32 %v6219_v45, %v537_v21  ;;  %v6552_v34 = vpack.c.bf16 %v606_v53, %v605_v22  ;;  %v614_v39 = vmax.f32 %v578_v13, 0.0  ;;  %v2593_v57 = vld [vmem:[#allocation3 + $0x22] sm:$0xff] }
  0x46   : > { %5394 = vmatpush3.bf16.msra.mxu0 %v5930_v35  ;;  %v755_v35 = vld [vmem:[#allocation3 + $0x98] sm:$0xff]  ;;  %v609_v7 = vmax.f32 %v573_v43, 0.0  ;;  %5365 = vmatprep.mubr.bf16.mxu0 %v6486_v29  ;;  %v610_v42 = vmax.f32 %v574_v6, 0.0  ;;  %v6558_v5 = vpack.c.bf16 %v598_v1, %v597_v19  ;;  %v6560_v60 = vpack.c.bf16 %v608_v31, %v607_v54  ;;  %v5936_v19 = vld [vmem:[%s6998_s1 + $0x170] sm:$0xff]  }
  0x47   : > { %5395 = vmatprep.subr.bf16.mxu0 %v5931_v37  ;;  %5202 = vmatpush3.bf16.msra.mxu1 %v6425_v41  ;;  %v6528_v41 = vpack.c.bf16 %v755_v35, %v754_v61  ;;  %v615_v51 = vmax.f32 %v6545_v12, 0.0  ;;  %v616_v46 = vmax.f32 %v6548_v33, 0.0  ;;  %650 = vst [vmem:[#allocation3 + $0x171] sm:$0xff] %v614_v39  ;;  %v6574_v1 = vpack.c.bf16 %v612_v62, %v611_v10  ;;  %v2592_v43 = vld [vmem:[#allocation3 + $0x1a] sm:$0xff]  ;;  %v5957_v12 = vld [vmem:[%s6998_s1 + $0x1c8] sm:$0xff]  }
  0x48   : > { %5203 = vmatprep.subr.bf16.mxu1 %v5935_v3  ;;  %645 = vst [vmem:[#allocation3 + $0x139] sm:$0xff] %v609_v7  ;;  %646 = vst [vmem:[#allocation3 + $0x141] sm:$0xff] %v610_v42  ;;  %v6568_v14 = vpack.c.bf16 %v610_v42, %v609_v7  ;;  %v495_v53 = vunpack.c.l.bf16 %v6130_v17  ;;  %v6590_v54 = vpack.c.bf16 %v600_v28, %v599_v27  ;;  %v2594_v28 = vld [vmem:[#allocation3 + $0x32] sm:$0xff]  ;;  %v5939_v61 = vld [vmem:[%s6998_s1 + $0x180] sm:$0xff]   ;;  %v496_v50 = vunpack.c.h.bf16 %v6130_v17 }
  0x49   : > { %651 = vst [vmem:[#allocation3 + $0x181] sm:$0xff] %v615_v51  ;;  %652 = vst [vmem:[#allocation3 + $0x189] sm:$0xff] %v616_v46  ;;  %v6601_v8 = vpack.c.bf16 %v759_v38, %v758_v24  ;;  %v6603_v27 = vpack.c.bf16 %v2593_v57, %v2592_v43  ;;  %v5944_v35 = vld [vmem:[%s6998_s1 + $0x78] sm:$0xff]   ;;  %v2596_v7 = vld [vmem:[#allocation3 + $0x4a] sm:$0xff] }
  0x4a   : > { %5396 = vmatpush3.bf16.msra.mxu0 %v5931_v37  ;;  %v613_v37 = vmax.f32 %v577_v0, 0.0  ;;  %v538_v40 = vmul.f32 %v6214_v44, %v495_v53  ;;  %v760_v42 = vld [vmem:[#allocation3 + $0xd8] sm:$0xff]  ;;  %v761_v10 = vld [vmem:[#allocation3 + $0xe0] sm:$0xff]  ;;  %v539_v62 = vmul.f32 %v6214_v44, %v496_v50  ;;  %v6619_v0 = vpack.c.bf16 %v2595_v47, %v2594_v28  ;;  %v767_v38 = vld [vmem:[#allocation3 + $0x128] sm:$0xff] }
  0x4b   : > { %5397 = vmatprep.subr.bf16.mxu0 %v5933_v25  ;;  %5204 = vmatpush3.bf16.msra.mxu1 %v5935_v3  ;;  %v757_v3 = vld [vmem:[#allocation3 + $0xb0] sm:$0xff]  ;;  %v6624_v17 = vld [vmem:[%s6998_s1 + $0x80] sm:$0xff]   ;;  %v6626_v36 = vpack.c.bf16 %v761_v10, %v760_v42  ;;  %v5945_v28 = vld [vmem:[%s6998_s1 + $0x198] sm:$0xff]  }
  0x4c   : > { %5205 = vmatprep.subr.bf16.mxu1 %v5938_v56  ;;  %649 = vst [vmem:[#allocation3 + $0x169] sm:$0xff] %v613_v37  ;;  %5174 = vmatmul.mubr.bf16.gmra.mrb[8].mxu1 %v6518_v4  ;;  %v6576_v22 = vpack.c.bf16 %v614_v39, %v613_v37  ;;  %v581_v31 = vadd.f32 %v6219_v45, %v538_v40  ;;  %v2598_v44 = vld [vmem:[#allocation3 + $0x62] sm:$0xff]  ;;  %v2599_v37 = vld [vmem:[#allocation3 + $0x6a] sm:$0xff]  ;;  %v2605_v47 = vld [vmem:[#allocation3 + $0xb2] sm:$0xff] }
  0x4d   : > { %5366 = vmatmul.mubr.bf16.gmra.mrb[8].mxu0 %v6513_v15  ;;  %5177 = vmatprep.mubr.bf16.mxu1 %v6528_v41  ;;  %v582_v21 = vadd.f32 %v6219_v45, %v539_v62  ;;  %v5941_v39 = vld [vmem:[%s6998_s1 + $0x188] sm:$0xff]   ;;  %v5943_v45 = vld [vmem:[%s6998_s1 + $0x190] sm:$0xff]   ;;  %v766_v24 = vld [vmem:[#allocation3 + $0x120] sm:$0xff]  ;;  %v6647_v40 = vpack.c.bf16 %v2599_v37, %v2598_v44 }
  0x4e   : > { %5398 = vmatpush3.bf16.msra.mxu0 %v5933_v25  ;;  %5369 = vmatprep.mubr.bf16.mxu0 %v6558_v5  ;;  %v6595_v25 = vpack.c.bf16 %v757_v3, %v756_v63  ;;  %v617_v6 = vmax.f32 %v581_v31, 0.0  ;;  %v764_v63 = vld [vmem:[#allocation3 + $0x108] sm:$0xff]  ;;  %v765_v3 = vld [vmem:[#allocation3 + $0x110] sm:$0xff]  ;;  %v5961_v33 = vld [vmem:[%s6998_s1 + $0x1d8] sm:$0xff]  }
  0x4f   : > { %5399 = vmatprep.subr.bf16.mxu0 %v5934_v59  ;;  %5206 = vmatpush3.bf16.msra.mxu1 %v5938_v56  ;;  %v763_v56 = vld [vmem:[#allocation3 + $0xf8] sm:$0xff]  ;;  %v2601_v53 = vld [vmem:[#allocation3 + $0x82] sm:$0xff]  ;;  %v6649_v43 = vpack.c.bf16 %v765_v3, %v764_v63 }
  0x50   : > { %5207 = vmatprep.subr.bf16.mxu1 %v5940_v16  ;;  %653 = vst [vmem:[#allocation3 + $0x199] sm:$0xff] %v617_v6  ;;  %v6629_v13 = vpack.c.bf16 %v763_v56, %v762_v55  ;;  %v2602_v31 = vld [vmem:[#allocation3 + $0x92] sm:$0xff]  ;;  %v2606_v56 = vld [vmem:[#allocation3 + $0xc2] sm:$0xff] }
  0x51   : > { %663 = vst [vmem:[#allocation3 + $0x198] sm:$0xff] %v6021_v18  ;;  %v768_v6 = vld [vmem:[#allocation3 + $0x138] sm:$0xff]  ;;  %v5949_v62 = vld [vmem:[%s6998_s1 + $0x1a8] sm:$0xff]  }
  0x52   : > { %5400 = vmatpush3.bf16.msra.mxu0 %v5934_v59  ;;  %683 = vst [vmem:[#allocation3 + $0x198] sm:$0x1] %v6021_v18  ;;  %v6631_v59 = vpack.c.bf16 %v2597_v9, %v2596_v7  ;;  %v771_v7 = vld [vmem:[#allocation3 + $0x158] sm:$0xff]  ;;  %v5947_v9 = vld [vmem:[%s6998_s1 + $0x1a0] sm:$0xff]   ;;  %v1112_v37 = vld [vmem:[#allocation3 + $0x9] sm:$0xff] }
  0x53   : > { %5401 = vmatprep.subr.bf16.mxu0 %v5936_v19  ;;  %5208 = vmatpush3.bf16.msra.mxu1 %v5940_v16  ;;  %v618_v16 = vmax.f32 %v582_v21, 0.0  ;;  %v2607_v21 = vld [vmem:[#allocation3 + $0xca] sm:$0xff]  ;;  %v1111_v44 = vld [vmem:[#allocation3 + $0x1] sm:$0xff] }
  0x54   : > { %5209 = vmatprep.subr.bf16.mxu1 %v5942_v58  ;;  %5178 = vmatmul.mubr.bf16.gmra.mrb[12].mxu1 %v6595_v25  ;;  %v772_v63 = vld [vmem:[#allocation3 + $0x168] sm:$0xff] }
  0x55   : > { %5370 = vmatmul.mubr.bf16.gmra.mrb[12].mxu0 %v6590_v54  ;;  %5181 = vmatprep.mubr.bf16.mxu1 %v6601_v8  ;;  %654 = vst [vmem:[#allocation3 + $0x1a1] sm:$0xff] %v618_v16  ;;  %v2609_v16 = vld [vmem:[#allocation3 + $0xe2] sm:$0xff] }
  0x56   : > { %5402 = vmatpush3.bf16.msra.mxu0 %v5936_v19  ;;  %5405 = vmatprep.mubr.bf16.mxu0 %v6603_v27  ;;  %v2600_v19 = vld [vmem:[#allocation3 + $0x7a] sm:$0xff]  ;;  %664 = vst [vmem:[#allocation3 + $0x1a0] sm:$0xff] %v6021_v18  ;;  %665 = vst [vmem:[#allocation3 + $0x1a8] sm:$0x3] %v6021_v18 }
  0x57   : > { %5403 = vmatprep.subr.bf16.mxu0 %v5937_v20  ;;  %5210 = vmatpush3.bf16.msra.mxu1 %v5942_v58  ;;  %701 = vst [vmem:[#allocation3 + $0x1a9] sm:$0x1] %v6021_v18  ;;  %v6651_v57 = vpack.c.bf16 %v2601_v53, %v2600_v19  ;;  %v6653_v58 = vpack.c.bf16 %v767_v38, %v766_v24  ;;  %v2604_v18 = vld [vmem:[#allocation3 + $0xaa] sm:$0xff] }
  0x58   : > { %5211 = vmatprep.subr.bf16.mxu1 %v5944_v35  ;;  %v6669_v10 = vpack.c.bf16 %v2605_v47, %v2604_v18  ;;  %v773_v19 = vld [vmem:[#allocation3 + $0x170] sm:$0xff]  ;;  %v1143_v38 = vpack.c.bf16 %v1112_v37, %v1111_v44  ;;  %v6698_v47 = vld [vmem:[%s6998_s1 + $0x1c0] sm:$0xff]  }
  0x59   : > { %v5951_v53 = vld [vmem:[%s6998_s1 + $0x1b0] sm:$0xff]   ;;  %v6685_v3 = vpack.c.bf16 %v773_v19, %v772_v63  ;;  %v5954_v19 = vld [vmem:[%s6998_s1 + $0xa0] sm:$0xff]  }
  0x5a   : > { %5404 = vmatpush3.bf16.msra.mxu0 %v5937_v20  ;;  %v2603_v20 = vld [vmem:[#allocation3 + $0x9a] sm:$0xff]  ;;  %v2613_v18 = vld [vmem:[#allocation3 + $0x112] sm:$0xff] }
  0x5b   : > { %5437 = vmatprep.subr.bf16.mxu0 %v5939_v61  ;;  %5212 = vmatpush3.bf16.msra.mxu1 %v5944_v35  ;;  %v770_v35 = vld [vmem:[#allocation3 + $0x150] sm:$0xff]  ;;  %v6665_v50 = vpack.c.bf16 %v2603_v20, %v2602_v31  ;;  %v5953_v31 = vld [vmem:[%s6998_s1 + $0x1b8] sm:$0xff]  }
  0x5c   : > { %5245 = vmatprep.subr.bf16.mxu1 %v6624_v17  ;;  %5182 = vmatmul.mubr.bf16.gmra.mrb[16].mxu1 %v6626_v36  ;;  %v6671_v55 = vpack.c.bf16 %v771_v7, %v770_v35  ;;  %v2610_v20 = vld [vmem:[#allocation3 + $0xf2] sm:$0xff]  ;;  %v5948_v7 = vld [vmem:[%s6998_s1 + $0x88] sm:$0xff]  }
  0x5d   : > { %5406 = vmatmul.mubr.bf16.vlgmr.msra.gmra.mrb[0].mxu0 %v6619_v0  ;;  %5185 = vmatprep.mubr.bf16.mxu1 %v6629_v13  ;;  %v5950_v44 = vld [vmem:[%s6998_s1 + $0x90] sm:$0xff]  }
  0x5e   : > { %5438 = vmatpush3.bf16.msra.mxu0 %v5939_v61  ;;  %5409 = vmatprep.mubr.bf16.mxu0 %v6631_v59  ;;  %v769_v61 = vld [vmem:[#allocation3 + $0x140] sm:$0xff]  ;;  %v2621_v63 = vld [vmem:[#allocation3 + $0x172] sm:$0xff] }
  0x5f   : > { %5439 = vmatprep.subr.bf16.mxu0 %v5941_v39  ;;  %v6667_v42 = vpack.c.bf16 %v769_v61, %v768_v6  ;;  %v2612_v6 = vld [vmem:[#allocation3 + $0x10a] sm:$0xff] }
  0x60   : > { %v6702_v35 = vpack.c.bf16 %v2613_v18, %v2612_v6  ;;  %v5973_v18 = vld [vmem:[%s6998_s1 + $0x208] sm:$0xff]  }
  0x62   : > { %5440 = vmatpush3.bf16.msra.mxu0 %v5941_v39  ;;  %v2608_v39 = vld [vmem:[#allocation3 + $0xda] sm:$0xff] }
  0x63   : > { %5441 = vmatprep.subr.bf16.mxu0 %v5943_v45  ;;  %v6687_v24 = vpack.c.bf16 %v2609_v16, %v2608_v39  ;;  %v2620_v16 = vld [vmem:[#allocation3 + $0x16a] sm:$0xff] }
  0x64   : > { %5186 = vmatmul.mubr.bf16.gmra.mrb[20].mxu1 %v6649_v43 }
  0x65   : > { %5410 = vmatmul.mubr.bf16.gmra.mrb[4].mxu0 %v6647_v40  ;;  %5189 = vmatprep.mubr.bf16.mxu1 %v6653_v58 }
  0x66   : > { %5413 = vmatprep.mubr.bf16.mxu0 %v6651_v57  ;;  %5442 = vmatpush3.bf16.msra.mxu0 %v5943_v45  ;;  %v6683_v45 = vpack.c.bf16 %v2607_v21, %v2606_v56  ;;  %v2615_v56 = vld [vmem:[#allocation3 + $0x12a] sm:$0xff]  ;;  %v2617_v21 = vld [vmem:[#allocation3 + $0x142] sm:$0xff] }
  0x67   : > { %5443 = vmatprep.subr.bf16.mxu0 %v5945_v28 }
  0x6a   : > { %5444 = vmatpush3.bf16.msra.mxu0 %v5945_v28  ;;  %v2611_v28 = vld [vmem:[#allocation3 + $0xfa] sm:$0xff] }
  0x6b   : > { %5445 = vmatprep.subr.bf16.mxu0 %v5947_v9  ;;  %v6700_v61 = vpack.c.bf16 %v2611_v28, %v2610_v20  ;;  %v6745_v20 = vpack.c.bf16 %v616_v46, %v615_v51  ;;  %v5958_v28 = vld [vmem:[%s6998_s1 + $0xb0] sm:$0xff]   ;;  %v5968_v46 = vld [vmem:[%s6998_s1 + $0xd8] sm:$0xff]  }
  0x6c   : > { %5190 = vmatmul.mubr.bf16.gmra.mrb[24].mxu1 %v6667_v42  ;;  %v5966_v51 = vld [vmem:[%s6998_s1 + $0xd0] sm:$0xff]  }
  0x6d   : > { %5414 = vmatmul.mubr.bf16.gmra.mrb[8].mxu0 %v6665_v50  ;;  %5193 = vmatprep.mubr.bf16.mxu1 %v6671_v55 }
  0x6e   : > { %5417 = vmatprep.mubr.bf16.mxu0 %v6669_v10  ;;  %5446 = vmatpush3.bf16.msra.mxu0 %v5947_v9  ;;  %v2614_v9 = vld [vmem:[#allocation3 + $0x122] sm:$0xff] }
  0x6f   : > { %5447 = vmatprep.subr.bf16.mxu0 %v5949_v62  ;;  %v6716_v37 = vpack.c.bf16 %v2615_v56, %v2614_v9  ;;  %v3342_v9 = vld [vmem:[#allocation3 + $0x99] sm:$0xff]  ;;  %v5975_v56 = vld [vmem:[%s6998_s1 + $0x210] sm:$0xff]  }
  0x72   : > { %5448 = vmatpush3.bf16.msra.mxu0 %v5949_v62  ;;  %v2616_v62 = vld [vmem:[#allocation3 + $0x13a] sm:$0xff] }
  0x73   : > { %5449 = vmatprep.subr.bf16.mxu0 %v5951_v53  ;;  %v6718_v39 = vpack.c.bf16 %v2617_v21, %v2616_v62 }
  0x74   : > { %5194 = vmatmul.mubr.bf16.gmra.mrb[28].mxu1 %v6685_v3 }
  0x75   : > { %5418 = vmatmul.mubr.bf16.gmra.mrb[12].mxu0 %v6683_v45  ;;  %5213 = vmatprep.mubr.bf16.mxu1 %v1143_v38  ;;  %v6732_v38 = vpack.c.bf16 %v2621_v63, %v2620_v16 }
  0x76   : > { %5421 = vmatprep.mubr.bf16.mxu0 %v6687_v24  ;;  %5450 = vmatpush3.bf16.msra.mxu0 %v5951_v53 }
  0x77   : > { %5451 = vmatprep.subr.bf16.mxu0 %v5953_v31 }
  0x7a   : > { %5452 = vmatpush3.bf16.msra.mxu0 %v5953_v31  ;;  %v2623_v31 = vld [vmem:[#allocation3 + $0x18a] sm:$0xff] }
  0x7b   : > { %5485 = vmatprep.subr.bf16.mxu0 %v6698_v47 }
  0x7c   : > { %5214 = vmatmul.mubr.bf16.vlgmr.msra.gmra.mrb[0].mxu1 %v6262_v26  ;;  %v5952_v26 = vld [vmem:[%s6998_s1 + $0x98] sm:$0xff]  }
  0x7d   : > { %5422 = vmatmul.mubr.bf16.gmra.mrb[16].mxu0 %v6700_v61  ;;  %5246 = vmatpush3.bf16.msra.mxu1 %v6624_v17  ;;  %v2619_v17 = vld [vmem:[#allocation3 + $0x15a] sm:$0xff] }
  0x7e   : > { %5425 = vmatprep.mubr.bf16.mxu0 %v6702_v35  ;;  %5217 = vmatprep.mubr.bf16.mxu1 %v6365_v49  ;;  %v2618_v49 = vld [vmem:[#allocation3 + $0x152] sm:$0xff] }
  0x7f   : > { %5247 = vmatprep.subr.bf16.mxu1 %v5948_v7  ;;  %v6730_v53 = vpack.c.bf16 %v2619_v17, %v2618_v49  ;;  %v3346_v49 = vld [vmem:[#allocation3 + $0xc9] sm:$0xff]  ;;  %v5978_v17 = vld [vmem:[%s6998_s1 + $0x220] sm:$0xff]  }
  0x81   : > { %5248 = vmatpush3.bf16.msra.mxu1 %v5948_v7  ;;  %v3341_v7 = vld [vmem:[#allocation3 + $0x91] sm:$0xff] }
  0x82   : > { %5249 = vmatprep.subr.bf16.mxu1 %v5950_v44  ;;  %v3369_v21 = vpack.c.bf16 %v3342_v9, %v3341_v7  ;;  %v1866_v7 = vld [vmem:[#allocation3 + $0xc0] sm:$0xff] }
  0x83   : > { %v3363_v9 = vld [vmem:[#allocation3 + $0x199] sm:$0xff] }
  0x84   : > { %5218 = vmatmul.mubr.bf16.gmra.mrb[4].mxu1 %v6395_v32  ;;  %v5956_v32 = vld [vmem:[%s6998_s1 + $0xa8] sm:$0xff]  }
  0x85   : > { %5426 = vmatmul.mubr.bf16.gmra.mrb[20].mxu0 %v6716_v37  ;;  %5221 = vmatprep.mubr.bf16.mxu1 %v6458_v48  ;;  %v2622_v48 = vld [vmem:[#allocation3 + $0x182] sm:$0xff] }
  0x86   : > { %5429 = vmatprep.mubr.bf16.mxu0 %v6718_v39  ;;  %5250 = vmatpush3.bf16.msra.mxu1 %v5950_v44  ;;  %v2639_v6 = vpack.c.bf16 %v2623_v31, %v2622_v48  ;;  %v3344_v44 = vld [vmem:[#allocation3 + $0xb1] sm:$0xff]  ;;  %v3350_v48 = vld [vmem:[#allocation3 + $0xf9] sm:$0xff] }
  0x87   : > { %5251 = vmatprep.subr.bf16.mxu1 %v5952_v26  ;;  %v1852_v31 = vld [vmem:[#allocation3 + $0x18] sm:$0xff] }
  0x8a   : > { %5252 = vmatpush3.bf16.msra.mxu1 %v5952_v26  ;;  %v3345_v26 = vld [vmem:[#allocation3 + $0xc1] sm:$0xff] }
  0x8b   : > { %5253 = vmatprep.subr.bf16.mxu1 %v5954_v19  ;;  %v3371_v63 = vpack.c.bf16 %v3346_v49, %v3345_v26  ;;  %v5988_v26 = vld [vmem:[%s6998_s1 + $0x128] sm:$0xff]  }
  0x8c   : > { %5222 = vmatmul.mubr.bf16.gmra.mrb[8].mxu1 %v6486_v29  ;;  %v5960_v29 = vld [vmem:[%s6998_s1 + $0xb8] sm:$0xff]  }
  0x8d   : > { %5430 = vmatmul.mubr.bf16.gmra.mrb[24].mxu0 %v6730_v53  ;;  %5225 = vmatprep.mubr.bf16.mxu1 %v6513_v15  ;;  %v5962_v15 = vld [vmem:[%s6998_s1 + $0xc0] sm:$0xff]  }
  0x8e   : > { %5433 = vmatprep.mubr.bf16.mxu0 %v6732_v38  ;;  %5254 = vmatpush3.bf16.msra.mxu1 %v5954_v19  ;;  %v3348_v19 = vld [vmem:[#allocation3 + $0xe1] sm:$0xff] }
  0x8f   : > { %5255 = vmatprep.subr.bf16.mxu1 %v5956_v32 }
  0x92   : > { %5256 = vmatpush3.bf16.msra.mxu1 %v5956_v32  ;;  %v3349_v32 = vld [vmem:[#allocation3 + $0xf1] sm:$0xff] }
  0x93   : > { %5257 = vmatprep.subr.bf16.mxu1 %v5958_v28 }
  0x94   : > { %5226 = vmatmul.mubr.bf16.gmra.mrb[12].mxu1 %v6558_v5  ;;  %v5971_v5 = vld [vmem:[%s6998_s1 + $0x200] sm:$0xff]  }
  0x95   : > { %5434 = vmatmul.mubr.bf16.gmra.mrb[28].mxu0 %v2639_v6  ;;  %5229 = vmatprep.mubr.bf16.mxu1 %v6590_v54  ;;  %v5980_v6 = vld [vmem:[%s6998_s1 + $0x230] sm:$0xff]  }
  0x96   : > { %5453 = vmatprep.mubr.bf16.mxu0 %v6389_v30  ;;  %5258 = vmatpush3.bf16.msra.mxu1 %v5958_v28  ;;  %v5959_v30 = vld [vmem:[%s6998_s1 + $0x1d0] sm:$0xff]   ;;  %v1853_v28 = vld [vmem:[#allocation3 + $0x20] sm:$0xff] }
  0x97   : > { %5259 = vmatprep.subr.bf16.mxu1 %v5960_v29 }
  0x9a   : > { %5260 = vmatpush3.bf16.msra.mxu1 %v5960_v29 }
  0x9b   : > { %5293 = vmatprep.subr.bf16.mxu1 %v5962_v15 }
  0x9c   : > { %5230 = vmatmul.mubr.bf16.gmra.mrb[16].mxu1 %v6535_v23  ;;  %v5967_v23 = vld [vmem:[%s6998_s1 + $0x1f0] sm:$0xff]  }
  0x9d   : > { %5454 = vmatmul.mubr.bf16.vlgmr.msra.gmra.mrb[0].mxu0 %v6465_v2  ;;  %5233 = vmatprep.mubr.bf16.mxu1 %v6539_v11  ;;  %v5963_v2 = vld [vmem:[%s6998_s1 + $0x1e0] sm:$0xff]  }
  0x9e   : > { %5486 = vmatpush3.bf16.msra.mxu0 %v6698_v47  ;;  %5457 = vmatprep.mubr.bf16.mxu0 %v6473_v52  ;;  %v5965_v52 = vld [vmem:[%s6998_s1 + $0x1e8] sm:$0xff]  }
  0x9f   : > { %5487 = vmatprep.subr.bf16.mxu0 %v5957_v12  ;;  %v3340_v47 = vld [vmem:[#allocation3 + $0x81] sm:$0xff] }
  0xa2   : > { %5488 = vmatpush3.bf16.msra.mxu0 %v5957_v12  ;;  %v1854_v12 = vld [vmem:[#allocation3 + $0x30] sm:$0xff] }
  0xa3   : > { %5489 = vmatprep.subr.bf16.mxu0 %v5959_v30 }
  0xa4   : > { %5234 = vmatmul.mubr.bf16.gmra.mrb[20].mxu1 %v6552_v34  ;;  %v5969_v34 = vld [vmem:[%s6998_s1 + $0x1f8] sm:$0xff]  }
  0xa5   : > { %5458 = vmatmul.mubr.bf16.gmra.mrb[4].mxu0 %v6518_v4  ;;  %5237 = vmatprep.mubr.bf16.mxu1 %v6560_v60  ;;  %v1481_v4 = vld [vmem:[#allocation3 + $0x2] sm:$0xff] }
  0xa6   : > { %5461 = vmatprep.mubr.bf16.mxu0 %v6528_v41  ;;  %5490 = vmatpush3.bf16.msra.mxu0 %v5959_v30  ;;  %v1482_v41 = vld [vmem:[#allocation3 + $0xa] sm:$0xff] }
  0xa7   : > { %5491 = vmatprep.subr.bf16.mxu0 %v5961_v33  ;;  %v1513_v11 = vpack.c.bf16 %v1482_v41, %v1481_v4  ;;  %v5964_v60 = vld [vmem:[%s6998_s1 + $0xc8] sm:$0xff]  }
  0xa8   : > { %v3351_v30 = vld [vmem:[#allocation3 + $0x109] sm:$0xff] }
  0xa9   : > { %v3354_v4 = vld [vmem:[#allocation3 + $0x129] sm:$0xff] }
  0xaa   : > { %5492 = vmatpush3.bf16.msra.mxu0 %v5961_v33  ;;  %v3352_v33 = vld [vmem:[#allocation3 + $0x111] sm:$0xff]  ;;  %v1856_v41 = vld [vmem:[#allocation3 + $0x48] sm:$0xff] }
  0xab   : > { %5493 = vmatprep.subr.bf16.mxu0 %v5963_v2 }
  0xac   : > { %5238 = vmatmul.mubr.bf16.gmra.mrb[24].mxu1 %v6568_v14  ;;  %v2991_v14 = vld [vmem:[#allocation3 + $0x180] sm:$0xff] }
  0xad   : > { %5462 = vmatmul.mubr.bf16.gmra.mrb[8].mxu0 %v6595_v25  ;;  %5241 = vmatprep.mubr.bf16.mxu1 %v6574_v1  ;;  %v2992_v1 = vld [vmem:[#allocation3 + $0x188] sm:$0xff] }
  0xae   : > { %5465 = vmatprep.mubr.bf16.mxu0 %v6601_v8  ;;  %5494 = vmatpush3.bf16.msra.mxu0 %v5963_v2  ;;  %v6819_v54 = vpack.c.bf16 %v2992_v1, %v2991_v14  ;;  %v5972_v25 = vld [vmem:[%s6998_s1 + $0xe8] sm:$0xff]   ;;  %v2993_v8 = vld [vmem:[#allocation3 + $0x198] sm:$0xff] }
  0xaf   : > { %5495 = vmatprep.subr.bf16.mxu0 %v5965_v52  ;;  %v1855_v2 = vld [vmem:[#allocation3 + $0x38] sm:$0xff]  ;;  %v1859_v14 = vld [vmem:[#allocation3 + $0x68] sm:$0xff] }
  0xb0   : > { %v3357_v1 = vld [vmem:[#allocation3 + $0x151] sm:$0xff] }
  0xb2   : > { %5496 = vmatpush3.bf16.msra.mxu0 %v5965_v52  ;;  %v3353_v52 = vld [vmem:[#allocation3 + $0x121] sm:$0xff] }
  0xb3   : > { %5497 = vmatprep.subr.bf16.mxu0 %v5967_v23 }
  0xb4   : > { %5242 = vmatmul.mubr.bf16.gmra.mrb[28].mxu1 %v6576_v22  ;;  %v5970_v22 = vld [vmem:[%s6998_s1 + $0xe0] sm:$0xff]  }
  0xb5   : > { %5466 = vmatmul.mubr.bf16.gmra.mrb[12].mxu0 %v6626_v36  ;;  %5261 = vmatprep.mubr.bf16.mxu1 %v1513_v11  ;;  %v5974_v36 = vld [vmem:[%s6998_s1 + $0xf0] sm:$0xff]   ;;  %v6876_v11 = vpack.c.bf16 %v3352_v33, %v3351_v30 }
  0xb6   : > { %5469 = vmatprep.mubr.bf16.mxu0 %v6629_v13  ;;  %5498 = vmatpush3.bf16.msra.mxu0 %v5967_v23  ;;  %v5982_v13 = vld [vmem:[#allocation3 + $0x8] sm:$0xff]  ;;  %v1857_v23 = vld [vmem:[#allocation3 + $0x50] sm:$0xff] }
  0xb7   : > { %5499 = vmatprep.subr.bf16.mxu0 %v5969_v34 }
  0xba   : > { %5500 = vmatpush3.bf16.msra.mxu0 %v5969_v34  ;;  %v1885_v34 = vpack.c.bf16 %v1855_v2, %v1854_v12  ;;  %v1874_v2 = vld [vmem:[#allocation3 + $0x120] sm:$0xff] }
  0xbb   : > { %5533 = vmatprep.subr.bf16.mxu0 %v5971_v5 }
  0xbc   : > { %5262 = vmatmul.mubr.bf16.vlgmr.msra.gmra.mrb[0].mxu1 %v6603_v27  ;;  %v3333_v27 = vld [vmem:[#allocation3 + $0x31] sm:$0xff] }
  0xbd   : > { %5470 = vmatmul.mubr.bf16.gmra.mrb[16].mxu0 %v6649_v43  ;;  %5294 = vmatpush3.bf16.msra.mxu1 %v5962_v15  ;;  %v5976_v43 = vld [vmem:[%s6998_s1 + $0xf8] sm:$0xff]   ;;  %v6868_v15 = vpack.c.bf16 %v3350_v48, %v3349_v32  ;;  %v3707_v48 = vld [vmem:[#allocation3 + $0x62] sm:$0xff] }
  0xbe   : > { %5473 = vmatprep.mubr.bf16.mxu0 %v6653_v58  ;;  %5265 = vmatprep.mubr.bf16.mxu1 %v6619_v0  ;;  %v3334_v0 = vld [vmem:[#allocation3 + $0x39] sm:$0xff]  ;;  %v3336_v58 = vld [vmem:[#allocation3 + $0x51] sm:$0xff] }
  0xbf   : > { %5295 = vmatprep.subr.bf16.mxu1 %v5964_v60  ;;  %v1871_v32 = vld [vmem:[#allocation3 + $0xf8] sm:$0xff] }
  0xc1   : > { %5296 = vmatpush3.bf16.msra.mxu1 %v5964_v60  ;;  %v1886_v60 = vpack.c.bf16 %v1857_v23, %v1856_v41  ;;  %v1875_v41 = vld [vmem:[#allocation3 + $0x128] sm:$0xff]  ;;  %v3711_v23 = vld [vmem:[#allocation3 + $0x92] sm:$0xff] }
  0xc2   : > { %5297 = vmatprep.subr.bf16.mxu1 %v5966_v51 }
  0xc4   : > { %5266 = vmatmul.mubr.bf16.gmra.mrb[4].mxu1 %v6631_v59  ;;  %v3010_v59 = vpack.c.bf16 %v5982_v13, %v2993_v8  ;;  %v1860_v8 = vld [vmem:[#allocation3 + $0x78] sm:$0xff] }
  0xc5   : > { %5474 = vmatmul.mubr.bf16.gmra.mrb[20].mxu0 %v6667_v42  ;;  %5269 = vmatprep.mubr.bf16.mxu1 %v6647_v40  ;;  %v3365_v40 = vpack.c.bf16 %v3334_v0, %v3333_v27  ;;  %v3338_v42 = vld [vmem:[#allocation3 + $0x69] sm:$0xff]  ;;  %v1861_v27 = vld [vmem:[#allocation3 + $0x80] sm:$0xff] }
  0xc6   : > { %5477 = vmatprep.mubr.bf16.mxu0 %v6671_v55  ;;  %5298 = vmatpush3.bf16.msra.mxu1 %v5966_v51  ;;  %v3355_v51 = vld [vmem:[#allocation3 + $0x139] sm:$0xff] }
  0xc7   : > { %5299 = vmatprep.subr.bf16.mxu1 %v5968_v46 }
  0xca   : > { %5300 = vmatpush3.bf16.msra.mxu1 %v5968_v46  ;;  %v3356_v46 = vld [vmem:[#allocation3 + $0x141] sm:$0xff] }
  0xcb   : > { %5301 = vmatprep.subr.bf16.mxu1 %v5970_v22  ;;  %v6886_v0 = vpack.c.bf16 %v3356_v46, %v3355_v51  ;;  %v1895_v46 = vpack.c.bf16 %v1875_v41, %v1874_v2 }
  0xcc   : > { %5270 = vmatmul.mubr.bf16.gmra.mrb[8].mxu1 %v6651_v57  ;;  %v3335_v57 = vld [vmem:[#allocation3 + $0x49] sm:$0xff] }
  0xcd   : > { %5478 = vmatmul.mubr.bf16.gmra.mrb[24].mxu0 %v6685_v3  ;;  %5273 = vmatprep.mubr.bf16.mxu1 %v6665_v50  ;;  %v3337_v50 = vld [vmem:[#allocation3 + $0x61] sm:$0xff]  ;;  %v3366_v55 = vpack.c.bf16 %v3336_v58, %v3335_v57  ;;  %v3360_v57 = vld [vmem:[#allocation3 + $0x171] sm:$0xff] }
  0xce   : > { %5481 = vmatprep.mubr.bf16.mxu0 %v6819_v54  ;;  %5302 = vmatpush3.bf16.msra.mxu1 %v5970_v22  ;;  %v3367_v3 = vpack.c.bf16 %v3338_v42, %v3337_v50  ;;  %v3358_v22 = vld [vmem:[#allocation3 + $0x159] sm:$0xff]  ;;  %v1862_v58 = vld [vmem:[#allocation3 + $0x90] sm:$0xff]  ;;  %v1864_v42 = vld [vmem:[#allocation3 + $0xa8] sm:$0xff] }
  0xcf   : > { %5303 = vmatprep.subr.bf16.mxu1 %v5972_v25  ;;  %v6888_v13 = vpack.c.bf16 %v3358_v22, %v3357_v1  ;;  %v1863_v50 = vld [vmem:[#allocation3 + $0x98] sm:$0xff]  ;;  %v1878_v22 = vld [vmem:[#allocation3 + $0x150] sm:$0xff] }
  0xd2   : > { %5304 = vmatpush3.bf16.msra.mxu1 %v5972_v25  ;;  %v5984_v25 = vld [vmem:[%s6998_s1 + $0x108] sm:$0xff]  }
  0xd3   : > { %5305 = vmatprep.subr.bf16.mxu1 %v5974_v36 }
  0xd4   : > { %5274 = vmatmul.mubr.bf16.gmra.mrb[12].mxu1 %v6669_v10  ;;  %v6842_v10 = vld [vmem:[%s6998_s1 + $0x100] sm:$0xff]  }
  0xd5   : > { %5482 = vmatmul.mubr.bf16.gmra.mrb[28].mxu0 %v3010_v59  ;;  %5277 = vmatprep.mubr.bf16.mxu1 %v6683_v45  ;;  %v3339_v45 = vld [vmem:[#allocation3 + $0x79] sm:$0xff]  ;;  %v1888_v59 = vpack.c.bf16 %v1861_v27, %v1860_v8 }
  0xd6   : > { %5501 = vmatprep.mubr.bf16.mxu0 %v3365_v40  ;;  %5306 = vmatpush3.bf16.msra.mxu1 %v5974_v36  ;;  %v3368_v62 = vpack.c.bf16 %v3340_v47, %v3339_v45  ;;  %v5985_v40 = vld [vmem:[%s6998_s1 + $0x110] sm:$0xff]   ;;  %v5987_v47 = vld [vmem:[%s6998_s1 + $0x120] sm:$0xff]   ;;  %v1879_v27 = vld [vmem:[#allocation3 + $0x158] sm:$0xff] }
  0xd7   : > { %5307 = vmatprep.subr.bf16.mxu1 %v5976_v43  ;;  %v3714_v8 = vld [vmem:[#allocation3 + $0xb2] sm:$0xff] }
  0xda   : > { %5308 = vmatpush3.bf16.msra.mxu1 %v5976_v43  ;;  %v3359_v43 = vld [vmem:[#allocation3 + $0x169] sm:$0xff] }
  0xdb   : > { %5581 = vmatprep.subr.bf16.mxu1 %v6842_v10 }
  0xdc   : > { %5278 = vmatmul.mubr.bf16.gmra.mrb[16].mxu1 %v6687_v24  ;;  %v5977_v24 = vld [vmem:[%s6998_s1 + $0x218] sm:$0xff]  }
  0xdd   : > { %5502 = vmatmul.mubr.bf16.vlgmr.msra.gmra.mrb[0].mxu0 %v3366_v55  ;;  %5281 = vmatprep.mubr.bf16.mxu1 %v6700_v61  ;;  %v3343_v61 = vld [vmem:[#allocation3 + $0xa9] sm:$0xff] }
  0xde   : > { %5534 = vmatpush3.bf16.msra.mxu0 %v5971_v5  ;;  %5505 = vmatprep.mubr.bf16.mxu0 %v3367_v3  ;;  %v3370_v16 = vpack.c.bf16 %v3344_v44, %v3343_v61  ;;  %v6878_v5 = vpack.c.bf16 %v3354_v4, %v3353_v52  ;;  %v1865_v55 = vld [vmem:[#allocation3 + $0xb0] sm:$0xff]  ;;  %v5986_v3 = vld [vmem:[%s6998_s1 + $0x118] sm:$0xff]   ;;  %v1869_v44 = vld [vmem:[#allocation3 + $0xe0] sm:$0xff] }
  0xdf   : > { %5535 = vmatprep.subr.bf16.mxu0 %v5973_v18  ;;  %v1890_v45 = vpack.c.bf16 %v1865_v55, %v1864_v42  ;;  %v1868_v61 = vld [vmem:[#allocation3 + $0xd8] sm:$0xff]  ;;  %v3710_v4 = vld [vmem:[#allocation3 + $0x82] sm:$0xff] }
  0xe0   : > { %v3709_v52 = vld [vmem:[#allocation3 + $0x7a] sm:$0xff] }
  0xe1   : > { %v3738_v51 = vpack.c.bf16 %v3710_v4, %v3709_v52  ;;  %v3717_v55 = vld [vmem:[#allocation3 + $0xda] sm:$0xff] }
  0xe2   : > { %5536 = vmatpush3.bf16.msra.mxu0 %v5973_v18  ;;  %v6898_v18 = vpack.c.bf16 %v3360_v57, %v3359_v43  ;;  %v1881_v43 = vld [vmem:[#allocation3 + $0x170] sm:$0xff] }
  0xe3   : > { %5537 = vmatprep.subr.bf16.mxu0 %v5975_v56 }
  0xe4   : > { %5282 = vmatmul.mubr.bf16.gmra.mrb[20].mxu1 %v6702_v35  ;;  %v5979_v35 = vld [vmem:[%s6998_s1 + $0x228] sm:$0xff]  }
  0xe5   : > { %5506 = vmatmul.mubr.bf16.gmra.mrb[4].mxu0 %v3368_v62  ;;  %5285 = vmatprep.mubr.bf16.mxu1 %v6716_v37  ;;  %v3347_v37 = vld [vmem:[#allocation3 + $0xd9] sm:$0xff]  ;;  %v1867_v62 = vld [vmem:[#allocation3 + $0xc8] sm:$0xff] }
  0xe6   : > { %5509 = vmatprep.mubr.bf16.mxu0 %v3369_v21  ;;  %5538 = vmatpush3.bf16.msra.mxu0 %v5975_v56  ;;  %v6866_v29 = vpack.c.bf16 %v3348_v19, %v3347_v37  ;;  %v3364_v56 = vld [vmem:[#allocation3 + $0x1a1] sm:$0xff]  ;;  %v3703_v21 = vld [vmem:[#allocation3 + $0x32] sm:$0xff]  ;;  %v3705_v37 = vld [vmem:[#allocation3 + $0x4a] sm:$0xff] }
  0xe7   : > { %5539 = vmatprep.subr.bf16.mxu0 %v5977_v24  ;;  %v3380_v49 = vpack.c.bf16 %v3364_v56, %v3363_v9  ;;  %v3706_v19 = vld [vmem:[#allocation3 + $0x52] sm:$0xff]  ;;  %v3721_v9 = vld [vmem:[#allocation3 + $0x10a] sm:$0xff] }
  0xe8   : > { %v3722_v56 = vld [vmem:[#allocation3 + $0x112] sm:$0xff] }
  0xea   : > { %5540 = vmatpush3.bf16.msra.mxu0 %v5977_v24  ;;  %v3704_v24 = vld [vmem:[#allocation3 + $0x3a] sm:$0xff] }
  0xeb   : > { %5541 = vmatprep.subr.bf16.mxu0 %v5978_v17 }
  0xec   : > { %5286 = vmatmul.mubr.bf16.gmra.mrb[24].mxu1 %v6718_v39  ;;  %v1884_v39 = vpack.c.bf16 %v1853_v28, %v1852_v31  ;;  %v3708_v31 = vld [vmem:[#allocation3 + $0x6a] sm:$0xff] }
  0xed   : > { %5510 = vmatmul.mubr.bf16.gmra.mrb[8].mxu0 %v3370_v16  ;;  %5289 = vmatprep.mubr.bf16.mxu1 %v6730_v53  ;;  %v5981_v53 = vld [vmem:[%s6998_s1 + $0x238] sm:$0xff]   ;;  %v3735_v16 = vpack.c.bf16 %v3704_v24, %v3703_v21  ;;  %v1872_v28 = vld [vmem:[#allocation3 + $0x108] sm:$0xff]  ;;  %v3737_v30 = vpack.c.bf16 %v3708_v31, %v3707_v48  ;;  %v3744_v24 = vpack.c.bf16 %v3722_v56, %v3721_v9 }
  0xee   : > { %5513 = vmatprep.mubr.bf16.mxu0 %v3371_v63  ;;  %5542 = vmatpush3.bf16.msra.mxu0 %v5978_v17  ;;  %v1891_v17 = vpack.c.bf16 %v1867_v62, %v1866_v7  ;;  %v1892_v63 = vpack.c.bf16 %v1869_v44, %v1868_v61  ;;  %v3723_v62 = vld [vmem:[#allocation3 + $0x122] sm:$0xff]  ;;  %v3724_v21 = vld [vmem:[#allocation3 + $0x12a] sm:$0xff]  ;;  %v3725_v44 = vld [vmem:[#allocation3 + $0x13a] sm:$0xff] }
  0xef   : > { %5543 = vmatprep.subr.bf16.mxu0 %v5979_v35  ;;  %v3745_v61 = vpack.c.bf16 %v3724_v21, %v3723_v62  ;;  %v2253_v48 = vld [vmem:[#allocation3 + $0x189] sm:$0xff] }
  0xf2   : > { %5544 = vmatpush3.bf16.msra.mxu0 %v5979_v35  ;;  %v1870_v35 = vld [vmem:[#allocation3 + $0xf0] sm:$0xff] }
  0xf3   : > { %5545 = vmatprep.subr.bf16.mxu0 %v5980_v6  ;;  %v1893_v12 = vpack.c.bf16 %v1871_v32, %v1870_v35  ;;  %v3732_v35 = vld [vmem:[#allocation3 + $0x18a] sm:$0xff]  ;;  %v2252_v32 = vld [vmem:[#allocation3 + $0x181] sm:$0xff] }
  0xf4   : > { %5290 = vmatmul.mubr.bf16.gmra.mrb[28].mxu1 %v6732_v38  ;;  %v1858_v38 = vld [vmem:[#allocation3 + $0x60] sm:$0xff]  ;;  %v2269_v31 = vpack.c.bf16 %v2253_v48, %v2252_v32 }
  0xf5   : > { %5514 = vmatmul.mubr.bf16.gmra.mrb[12].mxu0 %v6866_v29  ;;  %5309 = vmatprep.mubr.bf16.mxu1 %v1884_v39  ;;  %v1887_v36 = vpack.c.bf16 %v1859_v14, %v1858_v38  ;;  %v5990_v39 = vld [vmem:[%s6998_s1 + $0x138] sm:$0xff]   ;;  %v1877_v38 = vld [vmem:[#allocation3 + $0x140] sm:$0xff] }
  0xf6   : > { %5517 = vmatprep.mubr.bf16.mxu0 %v6868_v15  ;;  %5546 = vmatpush3.bf16.msra.mxu0 %v5980_v6  ;;  %v1873_v6 = vld [vmem:[#allocation3 + $0x110] sm:$0xff] }
  0xf7   : > { %5547 = vmatprep.subr.bf16.mxu0 %v5981_v53  ;;  %v1894_v33 = vpack.c.bf16 %v1873_v6, %v1872_v28 }
  0xfa   : > { %5548 = vmatpush3.bf16.msra.mxu0 %v5981_v53  ;;  %v3736_v53 = vpack.c.bf16 %v3706_v19, %v3705_v37  ;;  %v3734_v19 = vld [vmem:[#allocation3 + $0x1a2] sm:$0xff] }
  0xfc   : > { %5310 = vmatmul.mubr.bf16.vlgmr.msra.gmra.mrb[0].mxu1 %v1885_v34  ;;  %v3712_v34 = vld [vmem:[#allocation3 + $0x9a] sm:$0xff] }
  0xfd   : > { %5518 = vmatmul.mubr.bf16.gmra.mrb[16].mxu0 %v6876_v11  ;;  %5589 = vmatpush3.bf16.msra.mxu1 %v6842_v10  ;;  %v1889_v10 = vpack.c.bf16 %v1863_v50, %v1862_v58  ;;  %v3739_v14 = vpack.c.bf16 %v3712_v34, %v3711_v23  ;;  %v1897_v58 = vpack.c.bf16 %v1879_v27, %v1878_v22  ;;  %v6931_v34 = vld [vmem:[%s6999_s2] ss:$0 sm:$0xff] }
  0xfe   : > { %5521 = vmatprep.mubr.bf16.mxu0 %v6878_v5  ;;  %5313 = vmatprep.mubr.bf16.mxu1 %v1886_v60  ;;  %v1876_v60 = vld [vmem:[#allocation3 + $0x138] sm:$0xff] }
  0xff   : > { %5582 = vmatprep.subr.bf16.mxu1 %v5984_v25  ;;  %v1896_v1 = vpack.c.bf16 %v1877_v38, %v1876_v60 }
 0x101   : > { %5590 = vmatpush3.bf16.msra.mxu1 %v5984_v25  ;;  %v3713_v25 = vld [vmem:[#allocation3 + $0xaa] sm:$0xff] }
 0x102   : > { %5583 = vmatprep.subr.bf16.mxu1 %v5985_v40  ;;  %v3740_v57 = vpack.c.bf16 %v3714_v8, %v3713_v25 }
 0x104   : > { %5314 = vmatmul.mubr.bf16.gmra.mrb[4].mxu1 %v1887_v36  ;;  %v3715_v36 = vld [vmem:[#allocation3 + $0xc2] sm:$0xff] }
 0x105   : > { %5522 = vmatmul.mubr.bf16.gmra.mrb[20].mxu0 %v6886_v0  ;;  %5317 = vmatprep.mubr.bf16.mxu1 %v1888_v59  ;;  %v3716_v59 = vld [vmem:[#allocation3 + $0xca] sm:$0xff] }
 0x106   : > { %5525 = vmatprep.mubr.bf16.mxu0 %v6888_v13  ;;  %5591 = vmatpush3.bf16.msra.mxu1 %v5985_v40  ;;  %v1880_v40 = vld [vmem:[#allocation3 + $0x168] sm:$0xff]  ;;  %v3741_v50 = vpack.c.bf16 %v3716_v59, %v3715_v36 }
 0x107   : > { %5584 = vmatprep.subr.bf16.mxu1 %v5986_v3  ;;  %v1898_v42 = vpack.c.bf16 %v1881_v43, %v1880_v40 }
 0x10a   : > { %5592 = vmatpush3.bf16.msra.mxu1 %v5986_v3  ;;  %v3718_v3 = vld [vmem:[#allocation3 + $0xe2] sm:$0xff] }
 0x10b   : > { %5585 = vmatprep.subr.bf16.mxu1 %v5987_v47 }
 0x10c   : > { %5318 = vmatmul.mubr.bf16.gmra.mrb[8].mxu1 %v1889_v10  ;;  %v3719_v10 = vld [vmem:[#allocation3 + $0xf2] sm:$0xff] }
 0x10d   : > { %5526 = vmatmul.mubr.bf16.gmra.mrb[24].mxu0 %v6898_v18  ;;  %5321 = vmatprep.mubr.bf16.mxu1 %v1890_v45  ;;  %v3720_v45 = vld [vmem:[#allocation3 + $0xfa] sm:$0xff] }
 0x10e   : > { %5529 = vmatprep.mubr.bf16.mxu0 %v6745_v20  ;;  %5593 = vmatpush3.bf16.msra.mxu1 %v5987_v47  ;;  %v5989_v20 = vld [vmem:[%s6998_s1 + $0x130] sm:$0xff]   ;;  %v3742_v47 = vpack.c.bf16 %v3718_v3, %v3717_v55  ;;  %v3743_v7 = vpack.c.bf16 %v3720_v45, %v3719_v10 }
 0x10f   : > { %5586 = vmatprep.subr.bf16.mxu1 %v5988_v26 }
 0x112   : > { %5594 = vmatpush3.bf16.msra.mxu1 %v5988_v26  ;;  %v3726_v26 = vld [vmem:[#allocation3 + $0x142] sm:$0xff] }
 0x113   : > { %5587 = vmatprep.subr.bf16.mxu1 %v5989_v20 }
 0x114   : > { %5322 = vmatmul.mubr.bf16.gmra.mrb[12].mxu1 %v1891_v17  ;;  %v3728_v17 = vld [vmem:[#allocation3 + $0x15a] sm:$0xff] }
 0x115   : > { %5530 = vmatmul.mubr.bf16.gmra.mrb[28].mxu0 %v3380_v49  ;;  %5325 = vmatprep.mubr.bf16.mxu1 %v1892_v63  ;;  %v3727_v49 = vld [vmem:[#allocation3 + $0x152] sm:$0xff] }
 0x116   : > { %5549 = vmatprep.mubr.bf16.mxu0 %v3735_v16  ;;  %5595 = vmatpush3.bf16.msra.mxu1 %v5989_v20  ;;  %v3747_v16 = vpack.c.bf16 %v3728_v17, %v3727_v49  ;;  %v3730_v63 = vld [vmem:[#allocation3 + $0x172] sm:$0xff]  ;;  %v3731_v20 = vld [vmem:[#allocation3 + $0x182] sm:$0xff] }
 0x117   : > { %5588 = vmatprep.subr.bf16.mxu1 %v5990_v39  ;;  %v3749_v37 = vpack.c.bf16 %v3732_v35, %v3731_v20 }
 0x11a   : > { %5596 = vmatpush3.bf16.msra.mxu1 %v5990_v39 }
 0x11c   : > { %5326 = vmatmul.mubr.bf16.gmra.mrb[16].mxu1 %v1893_v12 }
 0x11d   : > { %5550 = vmatmul.mubr.bf16.vlgmr.msra.gmra.mrb[0].mxu0 %v3736_v53  ;;  %5329 = vmatprep.mubr.bf16.mxu1 %v1894_v33 }
 0x11e   : > { %5553 = vmatprep.mubr.bf16.mxu0 %v3737_v30 }
 0x124   : > { %5330 = vmatmul.mubr.bf16.gmra.mrb[20].mxu1 %v1895_v46 }
 0x125   : > { %5554 = vmatmul.mubr.bf16.gmra.mrb[4].mxu0 %v3738_v51  ;;  %5333 = vmatprep.mubr.bf16.mxu1 %v1896_v1 }
 0x126   : > { %5557 = vmatprep.mubr.bf16.mxu0 %v3739_v14 }
 0x12c   : > { %5334 = vmatmul.mubr.bf16.gmra.mrb[24].mxu1 %v1897_v58 }
 0x12d   : > { %5558 = vmatmul.mubr.bf16.gmra.mrb[8].mxu0 %v3740_v57  ;;  %5337 = vmatprep.mubr.bf16.mxu1 %v1898_v42 }
 0x12e   : > { %5561 = vmatprep.mubr.bf16.mxu0 %v3741_v50 }
 0x134   : > { %5338 = vmatmul.mubr.bf16.gmra.mrb[28].mxu1 %v6819_v54  ;;  %v3746_v54 = vpack.c.bf16 %v3726_v26, %v3725_v44 }
 0x135   : > { %5562 = vmatmul.mubr.bf16.gmra.mrb[12].mxu0 %v3742_v47  ;;  %5373 = vmatprep.mubr.bf16.mxu1 %v6866_v29  ;;  %v3729_v29 = vld [vmem:[#allocation3 + $0x16a] sm:$0xff] }
 0x136   : > { %5565 = vmatprep.mubr.bf16.mxu0 %v3743_v7 }
 0x13c   : > { %5374 = vmatmul.mubr.bf16.vlgmr.msra.gmra.mrb[16].mxu1 %v6868_v15  ;;  %v3748_v15 = vpack.c.bf16 %v3730_v63, %v3729_v29 }
 0x13d   : > { %5566 = vmatmul.mubr.bf16.gmra.mrb[16].mxu0 %v3744_v24  ;;  %5377 = vmatprep.mubr.bf16.mxu1 %v6876_v11  ;;  %v3733_v11 = vld [vmem:[#allocation3 + $0x19a] sm:$0xff] }
 0x13e   : > { %5569 = vmatprep.mubr.bf16.mxu0 %v3745_v61 }
 0x144   : > { %5378 = vmatmul.mubr.bf16.gmra.mrb[20].mxu1 %v6878_v5  ;;  %v3750_v5 = vpack.c.bf16 %v3734_v19, %v3733_v11 }
 0x145   : > { %5570 = vmatmul.mubr.bf16.gmra.mrb[20].mxu0 %v3746_v54  ;;  %5381 = vmatprep.mubr.bf16.mxu1 %v6886_v0 }
 0x146   : > { %5573 = vmatprep.mubr.bf16.mxu0 %v3747_v16 }
 0x14c   : > { %5382 = vmatmul.mubr.bf16.gmra.mrb[24].mxu1 %v6888_v13 }
 0x14d   : > { %5574 = vmatmul.mubr.bf16.gmra.mrb[24].mxu0 %v3748_v15  ;;  %5385 = vmatprep.mubr.bf16.mxu1 %v6898_v18 }
 0x14e   : > { %5577 = vmatprep.mubr.bf16.mxu0 %v3749_v37 }
 0x154   : > { %5386 = vmatmul.mubr.bf16.gmra.mrb[28].mxu1 %v2269_v31 }
 0x155   : > { %5578 = vmatmul.mubr.bf16.gmra.mrb[28].mxu0 %v3750_v5 }
 0x1cf   : > { %v5311_v28 = vpop.f32.mrb[0].mxu1 }
 0x1d0   : > { %v2031_v0 = vpop.f32.mrb[1].mxu1  ;;  %v5597_v38 = vadd.f32 %v5311_v28, %v6931_v34 }
 0x1d1   : > { %v5312_v6 = vpop.f32.mrb[2].mxu1  ;;  %v5599_v51 = vadd.f32 %v6931_v34, %v2031_v0 }
 0x1d2   : > { %v2034_v39 = vpop.f32.mrb[3].mxu1  ;;  %v5601_v14 = vadd.f32 %v5312_v6, %v6931_v34 }
 0x1d3   : > { %v5603_v25 = vadd.f32 %v6931_v34, %v2034_v39 }
 0x1d7   : > { %v5315_v53 = vpop.f32.mrb[4].mxu1 }
 0x1d8   : > { %v2047_v12 = vpop.f32.mrb[5].mxu1  ;;  %v5605_v55 = vadd.f32 %v5315_v53, %v6931_v34 }
 0x1d9   : > { %v5316_v30 = vpop.f32.mrb[6].mxu1  ;;  %v5607_v3 = vadd.f32 %v6931_v34, %v2047_v12 }
 0x1da   : > { %v2050_v33 = vpop.f32.mrb[7].mxu1  ;;  %v5609_v9 = vadd.f32 %v5316_v30, %v6931_v34 }
 0x1db   : > { %v5611_v56 = vadd.f32 %v6931_v34, %v2050_v33 }
 0x1df   : > { %v5319_v13 = vpop.f32.mrb[8].mxu1 }
 0x1e0   : > { %v2063_v2 = vpop.f32.mrb[9].mxu1  ;;  %v5613_v32 = vadd.f32 %v5319_v13, %v6931_v34 }
 0x1e1   : > { %v5320_v52 = vpop.f32.mrb[10].mxu1  ;;  %v5615_v48 = vadd.f32 %v6931_v34, %v2063_v2 }
 0x1e2   : > { %v2066_v4 = vpop.f32.mrb[11].mxu1  ;;  %v5617_v6 = vadd.f32 %v5320_v52, %v6931_v34 }
 0x1e3   : > { %v5619_v39 = vadd.f32 %v6931_v34, %v2066_v4 }
 0x1e7   : > { %v6922_v41 = vpop.f32.mrb[12].mxu1 }
 0x1e8   : > { %v6924_v18 = vpop.f32.mrb[13].mxu1 }
 0x1e9   : > { %v6926_v23 = vpop.f32.mrb[14].mxu1 }
 0x1ea   : > { %v6933_v60 = vpop.f32.mrb[15].mxu1 }
 0x1f0   : > { %v5551_v46 = vpop.f32.mrb[0].mxu0 }
 0x1f1   : > { %v5598_v1 = vadd.f32 %v5597_v38, %v5551_v46  ;;  %v3882_v22 = vpop.f32.mrb[1].mxu0 }
 0x1f2   : > { %v5600_v8 = vadd.f32 %v5599_v51, %v3882_v22  ;;  %v5552_v27 = vpop.f32.mrb[2].mxu0 }
 0x1f3   : > { %v5602_v36 = vadd.f32 %v5601_v14, %v5552_v27  ;;  %v3885_v59 = vpop.f32.mrb[3].mxu0  ;;  %v4144_v10 = vmul.f32 %v5598_v1, %v5598_v1 }
 0x1f4   : > { %v5604_v40 = vadd.f32 %v5603_v25, %v3885_v59  ;;  %v4142_v57 = vmul.f32 %v5600_v8, %v5600_v8  ;;  %v5621_v59 = vadd.f32 %v6922_v41, %v6931_v34 }
 0x1f5   : > { %v4845_v43 = vpack.c.bf16 %v5602_v36, %v5598_v1  ;;  %v4145_v24 = vmul.f32 %v5602_v36, %v5602_v36 }
 0x1f6   : > { %v4105_v58 = vadd.f32 %v5604_v40, %v5600_v8  ;;  %v4143_v50 = vmul.f32 %v5604_v40, %v5604_v40  ;;  %v4840_v42 = vpack.c.bf16 %v5604_v40, %v5600_v8  ;;  %v5623_v40 = vadd.f32 %v6931_v34, %v6924_v18 }
 0x1f7   : > { %4918 = vst [vmem:[%s6104_s9 + $0x8] sm:$0xff] %v4845_v43  }
 0x1f8   : > { %v4106_v45 = vadd.f32 %v5598_v1, %v4105_v58  ;;  %v4174_v47 = vadd.f32 %v4143_v50, %v4142_v57  ;;  %4841 = vst [vmem:[%s6104_s9] sm:$0xff] %v4840_v42   ;;  %v5555_v7 = vpop.f32.mrb[4].mxu0  ;;  %v5625_v42 = vadd.f32 %v6926_v23, %v6931_v34 }
 0x1f9   : > { %v5606_v62 = vadd.f32 %v5605_v55, %v5555_v7  ;;  %v3898_v21 = vpop.f32.mrb[5].mxu0  ;;  %v5627_v55 = vadd.f32 %v6931_v34, %v6933_v60 }
 0x1fa   : > { %v4175_v61 = vadd.f32 %v4174_v47, %v4144_v10  ;;  %v5608_v44 = vadd.f32 %v5607_v3, %v3898_v21  ;;  %v4107_v26 = vadd.f32 %v5602_v36, %v4106_v45  ;;  %v5556_v49 = vpop.f32.mrb[6].mxu0 }
 0x1fb   : > { %v5610_v17 = vadd.f32 %v5609_v9, %v5556_v49  ;;  %v3901_v54 = vpop.f32.mrb[7].mxu0  ;;  %v4148_v5 = vmul.f32 %v5606_v62, %v5606_v62 }
 0x1fc   : > { %v4108_v16 = vadd.f32 %v5608_v44, %v4107_v26  ;;  %v4146_v29 = vmul.f32 %v5608_v44, %v5608_v44  ;;  %v4176_v63 = vadd.f32 %v4175_v61, %v4145_v24  ;;  %v5612_v20 = vadd.f32 %v5611_v56, %v3901_v54 }
 0x1fd   : > { %v4855_v35 = vpack.c.bf16 %v5610_v17, %v5606_v62  ;;  %v4149_v30 = vmul.f32 %v5610_v17, %v5610_v17 }
 0x1fe   : > { %v4177_v15 = vadd.f32 %v4176_v63, %v4146_v29  ;;  %v4109_v37 = vadd.f32 %v5612_v20, %v4108_v16  ;;  %v4147_v11 = vmul.f32 %v5612_v20, %v5612_v20  ;;  %v4850_v19 = vpack.c.bf16 %v5612_v20, %v5608_v44 }
 0x1ff   : > { %4920 = vst [vmem:[%s6104_s9 + $0x18] sm:$0xff] %v4855_v35  }
 0x200   : > { %v4110_v31 = vadd.f32 %v5606_v62, %v4109_v37  ;;  %v4178_v28 = vadd.f32 %v4177_v15, %v4147_v11  ;;  %4919 = vst [vmem:[%s6104_s9 + $0x10] sm:$0xff] %v4850_v19   ;;  %v5559_v0 = vpop.f32.mrb[8].mxu0 }
 0x201   : > { %v5614_v53 = vadd.f32 %v5613_v32, %v5559_v0  ;;  %v3914_v12 = vpop.f32.mrb[9].mxu0 }
 0x202   : > { %v4179_v33 = vadd.f32 %v4178_v28, %v4148_v5  ;;  %v5616_v38 = vadd.f32 %v5615_v48, %v3914_v12  ;;  %v4111_v51 = vadd.f32 %v5610_v17, %v4110_v31  ;;  %v5560_v13 = vpop.f32.mrb[10].mxu0 }
 0x203   : > { %v5618_v46 = vadd.f32 %v5617_v6, %v5560_v13  ;;  %v3917_v14 = vpop.f32.mrb[11].mxu0  ;;  %v4152_v43 = vmul.f32 %v5614_v53, %v5614_v53 }
 0x204   : > { %v4112_v2 = vadd.f32 %v5616_v38, %v4111_v51  ;;  %v4150_v1 = vmul.f32 %v5616_v38, %v5616_v38  ;;  %v4180_v22 = vadd.f32 %v4179_v33, %v4149_v30  ;;  %v5620_v25 = vadd.f32 %v5619_v39, %v3917_v14 }
 0x205   : > { %v4865_v8 = vpack.c.bf16 %v5618_v46, %v5614_v53  ;;  %v4153_v45 = vmul.f32 %v5618_v46, %v5618_v46 }
 0x206   : > { %v4181_v27 = vadd.f32 %v4180_v22, %v4150_v1  ;;  %v4113_v52 = vadd.f32 %v5620_v25, %v4112_v2  ;;  %v4151_v36 = vmul.f32 %v5620_v25, %v5620_v25  ;;  %v4860_v4 = vpack.c.bf16 %v5620_v25, %v5616_v38 }
 0x207   : > { %4922 = vst [vmem:[%s6104_s9 + $0x28] sm:$0xff] %v4865_v8  }
 0x208   : > { %v4114_v57 = vadd.f32 %v5614_v53, %v4113_v52  ;;  %v4182_v58 = vadd.f32 %v4181_v27, %v4151_v36  ;;  %4921 = vst [vmem:[%s6104_s9 + $0x20] sm:$0xff] %v4860_v4   ;;  %v5563_v50 = vpop.f32.mrb[12].mxu0 }
 0x209   : > { %v5622_v3 = vadd.f32 %v5621_v59, %v5563_v50  ;;  %v3930_v10 = vpop.f32.mrb[13].mxu0 }
 0x20a   : > { %v4183_v41 = vadd.f32 %v4182_v58, %v4152_v43  ;;  %v5624_v47 = vadd.f32 %v5623_v40, %v3930_v10  ;;  %v4115_v7 = vadd.f32 %v5618_v46, %v4114_v57  ;;  %v5564_v9 = vpop.f32.mrb[14].mxu0 }
 0x20b   : > { %v5626_v18 = vadd.f32 %v5625_v42, %v5564_v9  ;;  %v3933_v56 = vpop.f32.mrb[15].mxu0  ;;  %v4156_v17 = vmul.f32 %v5622_v3, %v5622_v3 }
 0x20c   : > { %v4116_v62 = vadd.f32 %v5624_v47, %v4115_v7  ;;  %v4154_v21 = vmul.f32 %v5624_v47, %v5624_v47  ;;  %v4184_v24 = vadd.f32 %v4183_v41, %v4153_v45  ;;  %v5628_v61 = vadd.f32 %v5627_v55, %v3933_v56 }
 0x20d   : > { %v4875_v44 = vpack.c.bf16 %v5626_v18, %v5622_v3  ;;  %v4157_v35 = vmul.f32 %v5626_v18, %v5626_v18 }
 0x20e   : > { %v4185_v23 = vadd.f32 %v4184_v24, %v4154_v21  ;;  %v4117_v26 = vadd.f32 %v5628_v61, %v4116_v62  ;;  %v4155_v49 = vmul.f32 %v5628_v61, %v5628_v61  ;;  %v4870_v60 = vpack.c.bf16 %v5628_v61, %v5624_v47 }
 0x20f   : > { %4924 = vst [vmem:[%s6104_s9 + $0x38] sm:$0xff] %v4875_v44   ;;  %v5375_v63 = vpop.f32.mrb[16].mxu1 }
 0x210   : > { %v4118_v54 = vadd.f32 %v5622_v3, %v4117_v26  ;;  %v4186_v16 = vadd.f32 %v4185_v23, %v4155_v49  ;;  %4923 = vst [vmem:[%s6104_s9 + $0x30] sm:$0xff] %v4870_v60   ;;  %v5567_v29 = vpop.f32.mrb[16].mxu0  ;;  %v5629_v37 = vadd.f32 %v5375_v63, %v6931_v34  ;;  %v2465_v11 = vpop.f32.mrb[17].mxu1 }
 0x211   : > { %v3946_v20 = vpop.f32.mrb[17].mxu0  ;;  %v5631_v48 = vadd.f32 %v6931_v34, %v2465_v11  ;;  %v5376_v5 = vpop.f32.mrb[18].mxu1 }
 0x212   : > { %v4187_v15 = vadd.f32 %v4186_v16, %v4156_v17  ;;  %v4119_v19 = vadd.f32 %v5626_v18, %v4118_v54  ;;  %v5568_v32 = vpop.f32.mrb[18].mxu0  ;;  %v5630_v28 = vadd.f32 %v5629_v37, %v5567_v29  ;;  %v5633_v6 = vadd.f32 %v5376_v5, %v6931_v34  ;;  %v2468_v39 = vpop.f32.mrb[19].mxu1 }
 0x213   : > { %v3949_v31 = vpop.f32.mrb[19].mxu0  ;;  %v5632_v53 = vadd.f32 %v5631_v48, %v3946_v20  ;;  %v5635_v12 = vadd.f32 %v6931_v34, %v2468_v39 }
 0x214   : > { %v4188_v0 = vadd.f32 %v4187_v15, %v4157_v35  ;;  %v5634_v30 = vadd.f32 %v5633_v6, %v5568_v32  ;;  %v4160_v4 = vmul.f32 %v5630_v28, %v5630_v28 }
 0x215   : > { %v4120_v33 = vadd.f32 %v5632_v53, %v4119_v19  ;;  %v4158_v38 = vmul.f32 %v5632_v53, %v5632_v53  ;;  %v5636_v51 = vadd.f32 %v5635_v12, %v3949_v31 }
 0x216   : > { %v4885_v13 = vpack.c.bf16 %v5634_v30, %v5630_v28  ;;  %v4161_v50 = vmul.f32 %v5634_v30, %v5634_v30 }
 0x217   : > { %v4189_v14 = vadd.f32 %v4188_v0, %v4158_v38  ;;  %v4121_v2 = vadd.f32 %v5636_v51, %v4120_v33  ;;  %v4159_v1 = vmul.f32 %v5636_v51, %v5636_v51  ;;  %v4880_v22 = vpack.c.bf16 %v5636_v51, %v5632_v53  ;;  %v5379_v25 = vpop.f32.mrb[20].mxu1 }
 0x218   : > { %v5571_v46 = vpop.f32.mrb[20].mxu0  ;;  %4926 = vst [vmem:[%s6104_s9 + $0x48] sm:$0xff] %v4885_v13   ;;  %v5637_v27 = vadd.f32 %v5379_v25, %v6931_v34  ;;  %v2481_v52 = vpop.f32.mrb[21].mxu1 }
 0x219   : > { %v3962_v8 = vpop.f32.mrb[21].mxu0  ;;  %v4122_v59 = vadd.f32 %v5630_v28, %v4121_v2  ;;  %v4190_v40 = vadd.f32 %v4189_v14, %v4159_v1  ;;  %4925 = vst [vmem:[%s6104_s9 + $0x40] sm:$0xff] %v4880_v22   ;;  %v5639_v43 = vadd.f32 %v6931_v34, %v2481_v52  ;;  %v5380_v57 = vpop.f32.mrb[22].mxu1 }
 0x21a   : > { %v5572_v36 = vpop.f32.mrb[22].mxu0  ;;  %v5638_v42 = vadd.f32 %v5637_v27, %v5571_v46  ;;  %v5641_v55 = vadd.f32 %v5380_v57, %v6931_v34  ;;  %v2484_v3 = vpop.f32.mrb[23].mxu1 }
 0x21b   : > { %v3965_v58 = vpop.f32.mrb[23].mxu0  ;;  %v4191_v10 = vadd.f32 %v4190_v40, %v4160_v4  ;;  %v5640_v45 = vadd.f32 %v5639_v43, %v3962_v8  ;;  %v4123_v41 = vadd.f32 %v5634_v30, %v4122_v59  ;;  %v5643_v47 = vadd.f32 %v6931_v34, %v2484_v3 }
 0x21c   : > { %v5642_v7 = vadd.f32 %v5641_v55, %v5572_v36  ;;  %v4164_v29 = vmul.f32 %v5638_v42, %v5638_v42 }
 0x21d   : > { %v4124_v9 = vadd.f32 %v5640_v45, %v4123_v41  ;;  %v4162_v18 = vmul.f32 %v5640_v45, %v5640_v45  ;;  %v4192_v56 = vadd.f32 %v4191_v10, %v4161_v50  ;;  %v5644_v62 = vadd.f32 %v5643_v47, %v3965_v58 }
 0x21e   : > { %v4895_v21 = vpack.c.bf16 %v5642_v7, %v5638_v42  ;;  %v4165_v11 = vmul.f32 %v5642_v7, %v5642_v7 }
 0x21f   : > { %v4193_v61 = vadd.f32 %v4192_v56, %v4162_v18  ;;  %v4125_v44 = vadd.f32 %v5644_v62, %v4124_v9  ;;  %v4163_v23 = vmul.f32 %v5644_v62, %v5644_v62  ;;  %v4890_v26 = vpack.c.bf16 %v5644_v62, %v5640_v45  ;;  %v5383_v49 = vpop.f32.mrb[24].mxu1 }
 0x220   : > { %v5575_v24 = vpop.f32.mrb[24].mxu0  ;;  %4928 = vst [vmem:[%s6104_s9 + $0x58] sm:$0xff] %v4895_v21   ;;  %v5645_v17 = vadd.f32 %v5383_v49, %v6931_v34  ;;  %v2497_v54 = vpop.f32.mrb[25].mxu1 }
 0x221   : > { %v3978_v60 = vpop.f32.mrb[25].mxu0  ;;  %v4126_v63 = vadd.f32 %v5638_v42, %v4125_v44  ;;  %v4194_v20 = vadd.f32 %v4193_v61, %v4163_v23  ;;  %4927 = vst [vmem:[%s6104_s9 + $0x50] sm:$0xff] %v4890_v26   ;;  %v5647_v35 = vadd.f32 %v6931_v34, %v2497_v54  ;;  %v5384_v15 = vpop.f32.mrb[26].mxu1 }
 0x222   : > { %v5576_v16 = vpop.f32.mrb[26].mxu0  ;;  %v5646_v19 = vadd.f32 %v5645_v17, %v5575_v24  ;;  %v5649_v32 = vadd.f32 %v5384_v15, %v6931_v34  ;;  %v2500_v48 = vpop.f32.mrb[27].mxu1 }
 0x223   : > { %v3981_v37 = vpop.f32.mrb[27].mxu0  ;;  %v4195_v5 = vadd.f32 %v4194_v20, %v4164_v29  ;;  %v5648_v31 = vadd.f32 %v5647_v35, %v3978_v60  ;;  %v4127_v28 = vadd.f32 %v5642_v7, %v4126_v63  ;;  %v5651_v0 = vadd.f32 %v6931_v34, %v2500_v48 }
 0x224   : > { %v5650_v6 = vadd.f32 %v5649_v32, %v5576_v16  ;;  %v4168_v27 = vmul.f32 %v5646_v19, %v5646_v19 }
 0x225   : > { %v4128_v39 = vadd.f32 %v5648_v31, %v4127_v28  ;;  %v4166_v53 = vmul.f32 %v5648_v31, %v5648_v31  ;;  %v4196_v12 = vadd.f32 %v4195_v5, %v4165_v11  ;;  %v5652_v30 = vadd.f32 %v5651_v0, %v3981_v37 }
 0x226   : > { %v4905_v33 = vpack.c.bf16 %v5650_v6, %v5646_v19  ;;  %v4169_v43 = vmul.f32 %v5650_v6, %v5650_v6 }
 0x227   : > { %v4197_v51 = vadd.f32 %v4196_v12, %v4166_v53  ;;  %v4129_v13 = vadd.f32 %v5652_v30, %v4128_v39  ;;  %v4167_v46 = vmul.f32 %v5652_v30, %v5652_v30  ;;  %v4900_v14 = vpack.c.bf16 %v5652_v30, %v5648_v31  ;;  %v5387_v2 = vpop.f32.mrb[28].mxu1 }
 0x228   : > { %v5579_v38 = vpop.f32.mrb[28].mxu0  ;;  %4930 = vst [vmem:[%s6104_s9 + $0x68] sm:$0xff] %v4905_v33   ;;  %v5653_v22 = vadd.f32 %v5387_v2, %v6931_v34  ;;  %v2513_v25 = vpop.f32.mrb[29].mxu1 }
 0x229   : > { %v3994_v1 = vpop.f32.mrb[29].mxu0  ;;  %v4130_v52 = vadd.f32 %v5646_v19, %v4129_v13  ;;  %v4198_v36 = vadd.f32 %v4197_v51, %v4167_v46  ;;  %4929 = vst [vmem:[%s6104_s9 + $0x60] sm:$0xff] %v4900_v14   ;;  %v5655_v4 = vadd.f32 %v6931_v34, %v2513_v25  ;;  %v5388_v59 = vpop.f32.mrb[30].mxu1 }
 0x22a   : > { %v5580_v8 = vpop.f32.mrb[30].mxu0  ;;  %v5654_v57 = vadd.f32 %v5653_v22, %v5579_v38  ;;  %v5657_v58 = vadd.f32 %v5388_v59, %v6931_v34  ;;  %v2516_v50 = vpop.f32.mrb[31].mxu1 }
 0x22b   : > { %v3997_v40 = vpop.f32.mrb[31].mxu0  ;;  %v4199_v42 = vadd.f32 %v4198_v36, %v4168_v27  ;;  %v5656_v55 = vadd.f32 %v5655_v4, %v3994_v1  ;;  %v4131_v3 = vadd.f32 %v5650_v6, %v4130_v52  ;;  %v5659_v10 = vadd.f32 %v6931_v34, %v2516_v50 }
 0x22c   : > { %v5658_v45 = vadd.f32 %v5657_v58, %v5580_v8  ;;  %v4172_v61 = vmul.f32 %v5654_v57, %v5654_v57 }
 0x22d   : > { %v4132_v41 = vadd.f32 %v5656_v55, %v4131_v3  ;;  %v4170_v47 = vmul.f32 %v5656_v55, %v5656_v55  ;;  %v4200_v7 = vadd.f32 %v4199_v42, %v4169_v43  ;;  %v5660_v9 = vadd.f32 %v5659_v10, %v3997_v40 }
 0x22e   : > { %v4915_v18 = vpack.c.bf16 %v5658_v45, %v5654_v57  ;;  %v4173_v26 = vmul.f32 %v5658_v45, %v5658_v45 }
 0x22f   : > { %v4201_v56 = vadd.f32 %v4200_v7, %v4170_v47  ;;  %v4133_v62 = vadd.f32 %v5660_v9, %v4132_v41  ;;  %v4171_v21 = vmul.f32 %v5660_v9, %v5660_v9  ;;  %v4910_v24 = vpack.c.bf16 %v5660_v9, %v5656_v55 }
 0x230   : > { %4932 = vst [vmem:[%s6104_s9 + $0x78] sm:$0xff] %v4915_v18  }
 0x231   : > { %v4134_v44 = vadd.f32 %v5654_v57, %v4133_v62  ;;  %v4202_v23 = vadd.f32 %v4201_v56, %v4171_v21  ;;  %4931 = vst [vmem:[%s6104_s9 + $0x70] sm:$0xff] %v4910_v24  }
 0x233   : > { %v4135_v49 = vadd.f32 %v5658_v45, %v4134_v44  ;;  %v4203_v60 = vadd.f32 %v4202_v23, %v4172_v61 }
 0x235   : > { %v4136_v34 = vrot.slane %v4135_v49, 4  ;;  %v4204_v17 = vadd.f32 %v4203_v60, %v4173_v26 }
 0x237   : > { %v4137_v54 = vadd.f32 %v4136_v34, %v4135_v49  ;;  %v4205_v16 = vrot.slane %v4204_v17, 4 }
 0x239   : > { %v4138_v29 = vrot.slane %v4137_v54, 2  ;;  %v4206_v63 = vadd.f32 %v4205_v16, %v4204_v17 }
 0x23b   : > { %v4139_v20 = vadd.f32 %v4138_v29, %v4137_v54  ;;  %v4207_v35 = vrot.slane %v4206_v63, 2 }
 0x23d   : > { %v4140_v15 = vrot.slane %v4139_v20, 1  ;;  %v4208_v37 = vadd.f32 %v4207_v35, %v4206_v63 }
 0x23f   : > { %v4209_v11 = vrot.slane %v4208_v37, 1  ;;  %v4141_v19 = vadd.f32 %v4140_v15, %v4139_v20 }
 0x241   : > { %v4210_v32 = vadd.f32 %v4209_v11, %v4208_v37 }
 0x243   : > { %v4212_v48 = vsel %vm4211_vm0, %v4141_v19, %v4210_v32 }
 0x244   : > { %4213 = vst [vmem:[%s6109_s12] sm:$0x3] %v4212_v48 }
 0x245 PF: > { %s17_s23 = sadd.s32 1, %s6019_s23   ;;  %s7004_s21 = smov %s6015_s22 }
 0x246   : > { %p14_p5 = scmp.ge.s32.totalorder %s17_s23, 4   ;;  %s7005_s22 = smov %s7007_s24 }
 0x248   :  { %16 = sbr.rel (!%p14_p5) target bundleno = 2 (0x2), region = 225 }
 0x24f   :  { %4426 = vsyncmov [#allocation5] }
 0x252   :  { %s4427_s9 = vpop.sfrf %4426 }
 0x253   :  { %p4797_p6 = scmp.ne.s32.totalorder %s4427_s9, 0 }
 0x255   :  { %4431 = shalt.err (%p4797_p6)  }
 0x256   :  { %4433 = vsyncmov [#allocation5 + $0x1] }
 0x259   :  { %s4434_s11 = vpop.sfrf %4433 }
 0x25a   :  { %p4798_p7 = scmp.ne.s32.totalorder %s4434_s11, 0 }
 0x25c   :  { %4438 = shalt.err (%p4798_p7)  }
 0x25d   :  { %4440 = vsyncmov [#allocation5 + $0x2] }
 0x260   :  { %s4441_s12 = vpop.sfrf %4440 }
 0x261   :  { %p4799_p8 = scmp.ne.s32.totalorder %s4441_s12, 0 }
 0x263   :  { %4445 = shalt.err (%p4799_p8)  }

// kernel: up_forward.3
= control target key start
LH: loop header
LB: loop body
LE: loop exit
PB: predicated region body
PF: predicated region fallthrough
CT: control target
= control target key end

     0   :  { %s5935_s21 = smov 0   ;;  %s5937_s22 = smov 0   ;;  %s6577_s0 = inlined_call_operand.vmem [shape: bf16[2,16,16,128], index: 0, kind: input, shape index: {}]   ;;  %s6578_s1 = inlined_call_operand.vmem [shape: bf16[9,128,128], index: 1, kind: input, shape index: {}]   ;;  %s6579_s2 = inlined_call_operand.vmem [shape: f32[1,128], index: 2, kind: input, shape index: {}]   ;;  %s6580_s3 = inlined_call_operand.vmem [shape: f32[1,128], index: 3, kind: input, shape index: {}]   ;;  %s6581_s4 = inlined_call_operand.vmem [shape: f32[1,128], index: 4, kind: input, shape index: {}]   ;;  %s6582_s5 = inlined_call_operand.vmem [shape: bf16[2,16,16,128], index: 5, kind: output, shape index: {0}]   ;;  %s6583_s6 = inlined_call_operand.vmem [shape: f32[2,1,2,128], index: 6, kind: output, shape index: {1}]  }
   0x1   :  { %s5939_s23 = smov 0  }
   0x2 LB: > { %s29_s3 = sadd.s32 1, %s5893_s22  ;;  %p4430_p0 = scmp.ge.s32.totalorder %s5897_s23, 1  ;;  %s5897_s23 = sphi %s5939_s23, %s17_s23   ;;  %s5893_s22 = sphi %s5937_s22, %s6585_s22   ;;  %s5889_s21 = sphi %s5935_s21, %s6584_s21  }
   0x3   : > { %p31_p1 = scmp.ge.s32.totalorder %s29_s3, 2  ;;  %p197_p2 = scmp.lt.s32.totalorder %s5897_s23, 3 }
   0x5   : > { %s6587_s3 = smov (%p31_p1, %s29_s3), 0  ;;  %p198_p3 = pnand %p4430_p0, %p197_p2 }
   0x6   : > { %p233_p4 = scmp.lt.s32.totalorder (!%p198_p3), %s5889_s21, 1  ;;  %s4677_s4 = sshll.u32 (!%p198_p3), %s5889_s21, 7 }
   0x7   : > { %201 = sbr.rel (%p198_p3) target bundleno = 581 (0x245), region = 36  ;;  %s262_s26 = scalar_lea.vmem (!%p198_p3), %s6577_s0, %s4677_s4 }
   0x8   : > { %v5961_v0 = vld [vmem:[%s262_s26] sm:$0xff] (!%p198_p3)  ;;  %v5963_v1 = vld [vmem:[%s262_s26 + $0x8] sm:$0xff] (!%p198_p3)  ;;  %v5965_v2 = vld [vmem:[%s262_s26 + $0x10] sm:$0xff] (!%p198_p3) }
   0x9   : > { %v5967_v3 = vld [vmem:[%s262_s26 + $0x18] sm:$0xff] (!%p198_p3)  ;;  %v5969_v4 = vld [vmem:[%s262_s26 + $0x20] sm:$0xff] (!%p198_p3)  ;;  %v5971_v5 = vld [vmem:[%s262_s26 + $0x28] sm:$0xff] (!%p198_p3) }
   0xa   : > { %v5973_v6 = vld [vmem:[%s262_s26 + $0x30] sm:$0xff] (!%p198_p3)  ;;  %v5975_v7 = vld [vmem:[%s262_s26 + $0x38] sm:$0xff] (!%p198_p3)  ;;  %v5977_v8 = vld [vmem:[%s262_s26 + $0x40] sm:$0xff] (!%p198_p3) }
   0xb   : > { %v5989_v9 = vld [vmem:[%s262_s26 + $0x48] sm:$0xff] (!%p198_p3)  ;;  %v5991_v10 = vld [vmem:[%s262_s26 + $0x50] sm:$0xff] (!%p198_p3)  ;;  %v5993_v11 = vld [vmem:[%s262_s26 + $0x58] sm:$0xff] (!%p198_p3) }
   0xc   : > { %v5995_v12 = vld [vmem:[%s262_s26 + $0x60] sm:$0xff] (!%p198_p3)  ;;  %v5997_v13 = vld [vmem:[%s262_s26 + $0x68] sm:$0xff] (!%p198_p3)  ;;  %v5999_v14 = vld [vmem:[%s262_s26 + $0x70] sm:$0xff] (!%p198_p3) }
   0xd   : > { %v6001_v15 = vld [vmem:[%s262_s26 + $0x78] sm:$0xff] (!%p198_p3) }
   0xe   : > { %s6589_s21 = smov (!%p233_p4, %s5889_s21), 1 }
   0xf   : > { %s4676_s27 = sshll.u32 %s6589_s21, 7  ;;  %s4433_s28 = sshll.u32 %s6589_s21, 1 }
  0x10   : > { %s5982_s7 = scalar_lea.vmem %s6582_s5, %s4676_s27  ;;  %s5987_s10 = scalar_lea.vmem %s6583_s6, %s4433_s28 }
  0x11   : > { %335 = vsyncadd [#allocation5], 2048  ;;  %v373_v16 = vld [vmem:[%s262_s26] sm:$0xff] }
  0x12   : > { %382 = vsyncadd [#allocation5 + $0x1], 128  ;;  %s4680_s11 = sadd.s32 120, %s4677_s4 }
  0x13   : > { %s386_s14 = scalar_lea.vmem %s6577_s0, %s4680_s11 }
  0x14   : > { %v6006_v17 = vld [vmem:[%s386_s14] sm:$0xff] }
  0x15   : > { %430 = vsyncadd [#allocation5 + $0x2], 128 }
  0x16   : > { %5881 = dma.done.wait [#allocation5], 2048 }
  0x17   : > { %5882 = vsyncadd [#allocation5], 4294965248 }
  0x18   : > { %5883 = dma.done.wait [#allocation5 + $0x1], 128 }
  0x19   : > { %5884 = vsyncadd [#allocation5 + $0x1], 4294967168 }
  0x1a   : > { %5885 = dma.done.wait [#allocation5 + $0x2], 128 }
  0x1b   : > { %5886 = vsyncadd [#allocation5 + $0x2], 4294967168  ;;  %v461_v18 = vunpack.c.l.bf16 %v373_v16  ;;  %v462_v19 = vunpack.c.h.bf16 %v373_v16  ;;  %v463_v20 = vunpack.c.l.bf16 %v5961_v0  ;;  %v5899_v21 = vmov 0.0   ;;  %5233 = vmatprep.mubr.bf16.mxu0 %v5961_v0  ;;  %v5786_v40 = vld [vmem:[%s6578_s1] sm:$0xff]   ;;  %v5788_v48 = vld [vmem:[%s6578_s1 + $0x8] sm:$0xff]  }
  0x1c   : > { %545 = vst [vmem:[#allocation3 + $0x18] sm:$0x1] %v5899_v21  ;;  %546 = vst [vmem:[#allocation3 + $0x30] sm:$0x1] %v5899_v21  ;;  %v464_v22 = vunpack.c.h.bf16 %v5961_v0  ;;  %v465_v23 = vunpack.c.l.bf16 %v5963_v1  ;;  %v466_v24 = vunpack.c.h.bf16 %v5963_v1  ;;  %v467_v25 = vunpack.c.l.bf16 %v5965_v2  ;;  %v5787_v43 = vld [vmem:[%s6578_s1 + $0x100] sm:$0xff]   ;;  %5025 = vmatprep.subr.bf16.mxu1 %v5786_v40  ;;  %v5789_v53 = vld [vmem:[%s6578_s1 + $0x108] sm:$0xff]  }
  0x1d   : > { %547 = vst [vmem:[#allocation3 + $0x48] sm:$0x1] %v5899_v21  ;;  %548 = vst [vmem:[#allocation3 + $0x60] sm:$0x1] %v5899_v21  ;;  %v468_v26 = vunpack.c.h.bf16 %v5965_v2  ;;  %v469_v27 = vunpack.c.l.bf16 %v5967_v3  ;;  %v470_v28 = vunpack.c.h.bf16 %v5967_v3  ;;  %v471_v29 = vunpack.c.l.bf16 %v5969_v4  ;;  %5217 = vmatprep.subr.bf16.mxu0 %v5787_v43  ;;  %5026 = vmatpush3.bf16.msra.mxu1 %v5786_v40  ;;  %v5790_v57 = vld [vmem:[%s6578_s1 + $0x10] sm:$0xff]   ;;  %v5792_v59 = vld [vmem:[%s6578_s1 + $0x18] sm:$0xff]  }
  0x1e   : > { %549 = vst [vmem:[#allocation3 + $0x78] sm:$0x1] %v5899_v21  ;;  %550 = vst [vmem:[#allocation3 + $0x90] sm:$0x1] %v5899_v21  ;;  %v472_v30 = vunpack.c.h.bf16 %v5969_v4  ;;  %v473_v31 = vunpack.c.l.bf16 %v5971_v5  ;;  %v474_v32 = vunpack.c.h.bf16 %v5971_v5  ;;  %v475_v33 = vunpack.c.l.bf16 %v5973_v6  ;;  %5218 = vmatpush3.bf16.msra.mxu0 %v5787_v43  ;;  %5027 = vmatprep.subr.bf16.mxu1 %v5788_v48  ;;  %v5791_v58 = vld [vmem:[%s6578_s1 + $0x110] sm:$0xff]   ;;  %v5793_v60 = vld [vmem:[%s6578_s1 + $0x118] sm:$0xff]  }
  0x1f   : > { %551 = vst [vmem:[#allocation3 + $0xa8] sm:$0x1] %v5899_v21  ;;  %552 = vst [vmem:[#allocation3 + $0xc0] sm:$0x1] %v5899_v21  ;;  %v476_v34 = vunpack.c.h.bf16 %v5973_v6  ;;  %v477_v35 = vunpack.c.l.bf16 %v5975_v7  ;;  %v478_v36 = vunpack.c.h.bf16 %v5975_v7  ;;  %v479_v37 = vunpack.c.l.bf16 %v5977_v8  ;;  %5219 = vmatprep.subr.bf16.mxu0 %v5789_v53  ;;  %v5794_v61 = vld [vmem:[%s6578_s1 + $0x20] sm:$0xff]   ;;  %v5796_v63 = vld [vmem:[%s6578_s1 + $0x28] sm:$0xff]  }
  0x20   : > { %553 = vst [vmem:[#allocation3 + $0xd8] sm:$0x1] %v5899_v21  ;;  %554 = vst [vmem:[#allocation3 + $0xf0] sm:$0x1] %v5899_v21  ;;  %v480_v38 = vunpack.c.h.bf16 %v5977_v8  ;;  %v481_v39 = vunpack.c.l.bf16 %v5989_v9  ;;  %v482_v41 = vunpack.c.h.bf16 %v5989_v9  ;;  %v483_v42 = vunpack.c.l.bf16 %v5991_v10  ;;  %v5795_v62 = vld [vmem:[%s6578_s1 + $0x120] sm:$0xff]   ;;  %v5797_v16 = vld [vmem:[%s6578_s1 + $0x128] sm:$0xff]  }
  0x21   : > { %555 = vst [vmem:[#allocation3 + $0x108] sm:$0x1] %v5899_v21  ;;  %556 = vst [vmem:[#allocation3 + $0x120] sm:$0x1] %v5899_v21  ;;  %v484_v44 = vunpack.c.h.bf16 %v5991_v10  ;;  %v485_v45 = vunpack.c.l.bf16 %v5993_v11  ;;  %v486_v46 = vunpack.c.h.bf16 %v5993_v11  ;;  %v487_v47 = vunpack.c.l.bf16 %v5995_v12  ;;  %5028 = vmatpush3.bf16.msra.mxu1 %v5788_v48  ;;  %v5811_v43 = vld [vmem:[%s6578_s1 + $0x58] sm:$0xff]   ;;  %v5809_v48 = vld [vmem:[%s6578_s1 + $0x160] sm:$0xff]  }
  0x22   : > { %557 = vst [vmem:[#allocation3 + $0x138] sm:$0x1] %v5899_v21  ;;  %558 = vst [vmem:[#allocation3 + $0x150] sm:$0x1] %v5899_v21  ;;  %v488_v49 = vunpack.c.h.bf16 %v5995_v12  ;;  %v489_v50 = vunpack.c.l.bf16 %v5997_v13  ;;  %v490_v51 = vunpack.c.h.bf16 %v5997_v13  ;;  %v491_v52 = vunpack.c.l.bf16 %v5999_v14  ;;  %5220 = vmatpush3.bf16.msra.mxu0 %v5789_v53  ;;  %5029 = vmatprep.subr.bf16.mxu1 %v5790_v57  ;;  %v5810_v53 = vld [vmem:[%s6578_s1 + $0x168] sm:$0xff]  }
  0x23   : > { %559 = vst [vmem:[#allocation3 + $0x168] sm:$0x1] %v5899_v21  ;;  %560 = vst [vmem:[#allocation3 + $0x180] sm:$0x1] %v5899_v21  ;;  %v492_v54 = vunpack.c.h.bf16 %v5999_v14  ;;  %v493_v55 = vunpack.c.l.bf16 %v6001_v15  ;;  %v494_v56 = vunpack.c.h.bf16 %v6001_v15  ;;  %5221 = vmatprep.subr.bf16.mxu0 %v5791_v58  ;;  %vm4089_vm0 = vcmask 1040384  }
  0x24   : > { %563 = vst [vmem:[#allocation3 + $0x29] sm:$0x1] %v5899_v21  ;;  %564 = vst [vmem:[#allocation3 + $0x41] sm:$0x1] %v5899_v21 }
  0x25   : > { %565 = vst [vmem:[#allocation3 + $0x59] sm:$0x1] %v5899_v21  ;;  %566 = vst [vmem:[#allocation3 + $0x71] sm:$0x1] %v5899_v21  ;;  %5030 = vmatpush3.bf16.msra.mxu1 %v5790_v57  ;;  %v5812_v57 = vld [vmem:[%s6578_s1 + $0x170] sm:$0xff]  }
  0x26   : > { %567 = vst [vmem:[#allocation3 + $0x89] sm:$0x1] %v5899_v21  ;;  %568 = vst [vmem:[#allocation3 + $0xa1] sm:$0x1] %v5899_v21  ;;  %5222 = vmatpush3.bf16.msra.mxu0 %v5791_v58  ;;  %5031 = vmatprep.subr.bf16.mxu1 %v5792_v59 }
  0x27   : > { %569 = vst [vmem:[#allocation3 + $0xb9] sm:$0x1] %v5899_v21  ;;  %570 = vst [vmem:[#allocation3 + $0xd1] sm:$0x1] %v5899_v21  ;;  %5223 = vmatprep.subr.bf16.mxu0 %v5793_v60 }
  0x28   : > { %571 = vst [vmem:[#allocation3 + $0xe9] sm:$0x1] %v5899_v21  ;;  %572 = vst [vmem:[#allocation3 + $0x101] sm:$0x1] %v5899_v21 }
  0x29   : > { %573 = vst [vmem:[#allocation3 + $0x119] sm:$0x1] %v5899_v21  ;;  %574 = vst [vmem:[#allocation3 + $0x131] sm:$0x1] %v5899_v21  ;;  %5032 = vmatpush3.bf16.msra.mxu1 %v5792_v59 }
  0x2a   : > { %575 = vst [vmem:[#allocation3 + $0x149] sm:$0x1] %v5899_v21  ;;  %576 = vst [vmem:[#allocation3 + $0x161] sm:$0x1] %v5899_v21  ;;  %5224 = vmatpush3.bf16.msra.mxu0 %v5793_v60  ;;  %5033 = vmatprep.subr.bf16.mxu1 %v5794_v61 }
  0x2b   : > { %577 = vst [vmem:[#allocation3 + $0x179] sm:$0x1] %v5899_v21  ;;  %578 = vst [vmem:[#allocation3 + $0x191] sm:$0x1] %v5899_v21  ;;  %5225 = vmatprep.subr.bf16.mxu0 %v5795_v62 }
  0x2c   : > { %497 = vst [vmem:[#allocation3 + $0x1] sm:$0xff] %v461_v18  ;;  %498 = vst [vmem:[#allocation3 + $0x9] sm:$0xff] %v462_v19  ;;  %v5798_v19 = vld [vmem:[%s6578_s1 + $0x30] sm:$0xff]  }
  0x2d   : > { %499 = vst [vmem:[#allocation3 + $0x19] sm:$0xff] %v463_v20  ;;  %537 = vst [vmem:[#allocation3] sm:$0xff] %v5899_v21  ;;  %5034 = vmatpush3.bf16.msra.mxu1 %v5794_v61  ;;  %v5799_v20 = vld [vmem:[%s6578_s1 + $0x130] sm:$0xff]  }
  0x2e   : > { %538 = vst [vmem:[#allocation3 + $0x8] sm:$0xff] %v5899_v21  ;;  %539 = vst [vmem:[#allocation3 + $0x10] sm:$0x3] %v5899_v21  ;;  %5226 = vmatpush3.bf16.msra.mxu0 %v5795_v62  ;;  %5035 = vmatprep.subr.bf16.mxu1 %v5796_v63 }
  0x2f   : > { %500 = vst [vmem:[#allocation3 + $0x21] sm:$0xff] %v464_v22  ;;  %501 = vst [vmem:[#allocation3 + $0x31] sm:$0xff] %v465_v23  ;;  %5227 = vmatprep.subr.bf16.mxu0 %v5797_v16  ;;  %v5800_v22 = vld [vmem:[%s6578_s1 + $0x38] sm:$0xff]  }
  0x30   : > { %502 = vst [vmem:[#allocation3 + $0x39] sm:$0xff] %v466_v24  ;;  %503 = vst [vmem:[#allocation3 + $0x49] sm:$0xff] %v467_v25  ;;  %v5801_v23 = vld [vmem:[%s6578_s1 + $0x138] sm:$0xff]  }
  0x31   : > { %544 = vst [vmem:[#allocation3] sm:$0x1] %v5899_v21  ;;  %562 = vst [vmem:[#allocation3 + $0x11] sm:$0x1] %v5899_v21  ;;  %5036 = vmatpush3.bf16.msra.mxu1 %v5796_v63  ;;  %v5818_v63 = vld [vmem:[%s6578_s1 + $0x70] sm:$0xff]  }
  0x32   : > { %504 = vst [vmem:[#allocation3 + $0x51] sm:$0xff] %v468_v26  ;;  %505 = vst [vmem:[#allocation3 + $0x61] sm:$0xff] %v469_v27  ;;  %5228 = vmatpush3.bf16.msra.mxu0 %v5797_v16  ;;  %5037 = vmatprep.subr.bf16.mxu1 %v5798_v19  ;;  %v5802_v26 = vld [vmem:[%s6578_s1 + $0x40] sm:$0xff]  }
  0x33   : > { %506 = vst [vmem:[#allocation3 + $0x69] sm:$0xff] %v470_v28  ;;  %507 = vst [vmem:[#allocation3 + $0x79] sm:$0xff] %v471_v29  ;;  %5229 = vmatprep.subr.bf16.mxu0 %v5799_v20  ;;  %v5803_v27 = vld [vmem:[%s6578_s1 + $0x140] sm:$0xff]  }
  0x34   : > { %508 = vst [vmem:[#allocation3 + $0x81] sm:$0xff] %v472_v30  ;;  %509 = vst [vmem:[#allocation3 + $0x91] sm:$0xff] %v473_v31  ;;  %v622_v24 = vld [vmem:[#allocation3 + $0x18] sm:$0xff] }
  0x35   : > { %510 = vst [vmem:[#allocation3 + $0x99] sm:$0xff] %v474_v32  ;;  %511 = vst [vmem:[#allocation3 + $0xa9] sm:$0xff] %v475_v33  ;;  %5038 = vmatpush3.bf16.msra.mxu1 %v5798_v19  ;;  %v5804_v32 = vld [vmem:[%s6578_s1 + $0x148] sm:$0xff]  }
  0x36   : > { %512 = vst [vmem:[#allocation3 + $0xb1] sm:$0xff] %v476_v34  ;;  %513 = vst [vmem:[#allocation3 + $0xc1] sm:$0xff] %v477_v35  ;;  %v623_v25 = vld [vmem:[#allocation3 + $0x20] sm:$0xff]  ;;  %5230 = vmatpush3.bf16.msra.mxu0 %v5799_v20  ;;  %5039 = vmatprep.subr.bf16.mxu1 %v5800_v22  ;;  %v624_v28 = vld [vmem:[#allocation3 + $0x30] sm:$0xff] }
  0x37   : > { %514 = vst [vmem:[#allocation3 + $0xc9] sm:$0xff] %v478_v36  ;;  %515 = vst [vmem:[#allocation3 + $0xd9] sm:$0xff] %v479_v37  ;;  %5231 = vmatprep.subr.bf16.mxu0 %v5801_v23  ;;  %v625_v29 = vld [vmem:[#allocation3 + $0x38] sm:$0xff]  ;;  %v653_v30 = vpack.c.bf16 %v623_v25, %v622_v24  ;;  %v626_v33 = vld [vmem:[#allocation3 + $0x48] sm:$0xff]  ;;  %v496_v25 = vunpack.c.h.bf16 %v6006_v17 }
  0x38   : > { %516 = vst [vmem:[#allocation3 + $0xe1] sm:$0xff] %v480_v38  ;;  %517 = vst [vmem:[#allocation3 + $0xf1] sm:$0xff] %v481_v39  ;;  %v620_v15 = vld [vmem:[#allocation3] sm:$0xff]  ;;  %v6133_v31 = vpack.c.bf16 %v625_v29, %v624_v28  ;;  %v5805_v35 = vld [vmem:[%s6578_s1 + $0x48] sm:$0xff]  }
  0x39   : > { %518 = vst [vmem:[#allocation3 + $0xf9] sm:$0xff] %v482_v41  ;;  %519 = vst [vmem:[#allocation3 + $0x109] sm:$0xff] %v483_v42  ;;  %v652_v18 = vpack.c.bf16 %v5899_v21, %v620_v15  ;;  %5040 = vmatpush3.bf16.msra.mxu1 %v5800_v22  ;;  %v627_v34 = vld [vmem:[#allocation3 + $0x50] sm:$0xff]  ;;  %v628_v36 = vld [vmem:[#allocation3 + $0x60] sm:$0xff] }
  0x3a   : > { %520 = vst [vmem:[#allocation3 + $0x111] sm:$0xff] %v484_v44  ;;  %521 = vst [vmem:[#allocation3 + $0x121] sm:$0xff] %v485_v45  ;;  %5232 = vmatpush3.bf16.msra.mxu0 %v5801_v23  ;;  %5073 = vmatprep.subr.bf16.mxu1 %v5802_v26  ;;  %v629_v37 = vld [vmem:[#allocation3 + $0x68] sm:$0xff]  ;;  %v5808_v38 = vld [vmem:[%s6578_s1 + $0x50] sm:$0xff]   ;;  %v6150_v40 = vpack.c.bf16 %v627_v34, %v626_v33 }
  0x3b   : > { %522 = vst [vmem:[#allocation3 + $0x129] sm:$0xff] %v486_v46  ;;  %523 = vst [vmem:[#allocation3 + $0x139] sm:$0xff] %v487_v47  ;;  %5041 = vmatprep.mubr.bf16.mxu1 %v652_v18  ;;  %5265 = vmatprep.subr.bf16.mxu0 %v5803_v27  ;;  %v5806_v39 = vld [vmem:[%s6578_s1 + $0x150] sm:$0xff]   ;;  %v6152_v41 = vpack.c.bf16 %v629_v37, %v628_v36  ;;  %v5807_v42 = vld [vmem:[%s6578_s1 + $0x158] sm:$0xff]  }
  0x3c   : > { %524 = vst [vmem:[#allocation3 + $0x141] sm:$0xff] %v488_v49  ;;  %525 = vst [vmem:[#allocation3 + $0x151] sm:$0xff] %v489_v50  ;;  %5042 = vmatmul.mubr.bf16.vlgmr.msra.gmra.mrb[0].mxu1 %v653_v30  ;;  %v630_v44 = vld [vmem:[#allocation3 + $0x78] sm:$0xff]  ;;  %v631_v45 = vld [vmem:[#allocation3 + $0x80] sm:$0xff]  ;;  %v495_v49 = vunpack.c.l.bf16 %v6006_v17 }
  0x3d   : > { %526 = vst [vmem:[#allocation3 + $0x159] sm:$0xff] %v490_v51  ;;  %527 = vst [vmem:[#allocation3 + $0x169] sm:$0xff] %v491_v52  ;;  %5234 = vmatmul.mubr.bf16.vlgmr.msra.gmra.mrb[0].mxu0 %v5963_v1  ;;  %5074 = vmatpush3.bf16.msra.mxu1 %v5802_v26  ;;  %v632_v46 = vld [vmem:[#allocation3 + $0x90] sm:$0xff]  ;;  %v633_v47 = vld [vmem:[#allocation3 + $0x98] sm:$0xff]  ;;  %v6168_v50 = vpack.c.bf16 %v631_v45, %v630_v44 }
  0x3e   : > { %528 = vst [vmem:[#allocation3 + $0x171] sm:$0xff] %v492_v54  ;;  %529 = vst [vmem:[#allocation3 + $0x181] sm:$0xff] %v493_v55  ;;  %5266 = vmatpush3.bf16.msra.mxu0 %v5803_v27  ;;  %5045 = vmatprep.mubr.bf16.mxu1 %v6133_v31  ;;  %v5814_v51 = vld [vmem:[%s6578_s1 + $0x60] sm:$0xff]   ;;  %v6173_v52 = vpack.c.bf16 %v633_v47, %v632_v46  ;;  %v634_v54 = vld [vmem:[#allocation3 + $0xa8] sm:$0xff] }
  0x3f   : > { %530 = vst [vmem:[#allocation3 + $0x189] sm:$0xff] %v494_v56  ;;  %5267 = vmatprep.subr.bf16.mxu0 %v5804_v32  ;;  %5237 = vmatprep.mubr.bf16.mxu0 %v5965_v2  ;;  %531 = vst [vmem:[#allocation3 + $0x199] sm:$0xff] %v495_v49  ;;  %v5816_v55 = vld [vmem:[%s6578_s1 + $0x68] sm:$0xff]   ;;  %v635_v56 = vld [vmem:[#allocation3 + $0xb0] sm:$0xff] }
  0x40   : > { %5075 = vmatprep.subr.bf16.mxu1 %v5805_v35  ;;  %541 = vst [vmem:[#allocation3 + $0x198] sm:$0xff] %v5899_v21  ;;  %v636_v58 = vld [vmem:[#allocation3 + $0xc0] sm:$0xff]  ;;  %v637_v59 = vld [vmem:[#allocation3 + $0xc8] sm:$0xff]  ;;  %v6190_v62 = vpack.c.bf16 %v635_v56, %v634_v54  ;;  %v5813_v18 = vld [vmem:[%s6578_s1 + $0x178] sm:$0xff]  }
  0x41   : > { %5076 = vmatpush3.bf16.msra.mxu1 %v5805_v35  ;;  %561 = vst [vmem:[#allocation3 + $0x198] sm:$0x1] %v5899_v21  ;;  %v2470_v60 = vld [vmem:[#allocation3 + $0x1a] sm:$0xff]  ;;  %v2471_v61 = vld [vmem:[#allocation3 + $0x22] sm:$0xff]  ;;  %v6195_v15 = vpack.c.bf16 %v637_v59, %v636_v58  ;;  %v2472_v22 = vld [vmem:[#allocation3 + $0x32] sm:$0xff] }
  0x42   : > { %5268 = vmatpush3.bf16.msra.mxu0 %v5804_v32  ;;  %5077 = vmatprep.subr.bf16.mxu1 %v5808_v38  ;;  %v6197_v16 = vpack.c.bf16 %v2471_v61, %v2470_v60  ;;  %v638_v19 = vld [vmem:[#allocation3 + $0xd8] sm:$0xff]  ;;  %v639_v20 = vld [vmem:[#allocation3 + $0xe0] sm:$0xff]  ;;  %v640_v27 = vld [vmem:[#allocation3 + $0xf0] sm:$0xff]  ;;  %532 = vst [vmem:[#allocation3 + $0x1a1] sm:$0xff] %v496_v25 }
  0x43   : > { %5269 = vmatprep.subr.bf16.mxu0 %v5806_v39  ;;  %v2473_v23 = vld [vmem:[#allocation3 + $0x3a] sm:$0xff]  ;;  %v2474_v29 = vld [vmem:[#allocation3 + $0x4a] sm:$0xff]  ;;  %v2475_v30 = vld [vmem:[#allocation3 + $0x52] sm:$0xff]  ;;  %542 = vst [vmem:[#allocation3 + $0x1a0] sm:$0xff] %v5899_v21  ;;  %v6215_v17 = vpack.c.bf16 %v639_v20, %v638_v19 }
  0x44   : > { %5046 = vmatmul.mubr.bf16.gmra.mrb[4].mxu1 %v6150_v40  ;;  %v5820_v24 = vld [vmem:[%s6578_s1 + $0x78] sm:$0xff]   ;;  %v5815_v26 = vld [vmem:[%s6578_s1 + $0x180] sm:$0xff]   ;;  %543 = vst [vmem:[#allocation3 + $0x1a8] sm:$0x3] %v5899_v21  ;;  %v6223_v33 = vpack.c.bf16 %v2473_v23, %v2472_v22  ;;  %v6227_v35 = vpack.c.bf16 %v2475_v30, %v2474_v29  ;;  %v642_v36 = vld [vmem:[#allocation3 + $0x108] sm:$0xff] }
  0x45   : > { %5238 = vmatmul.mubr.bf16.gmra.mrb[4].mxu0 %v5967_v3  ;;  %5049 = vmatprep.mubr.bf16.mxu1 %v6152_v41  ;;  %v641_v28 = vld [vmem:[#allocation3 + $0xf8] sm:$0xff]  ;;  %v6220_v32 = vld [vmem:[%s6578_s1 + $0x80] sm:$0xff]   ;;  %579 = vst [vmem:[#allocation3 + $0x1a9] sm:$0x1] %v5899_v21  ;;  %v643_v37 = vld [vmem:[#allocation3 + $0x110] sm:$0xff] }
  0x46   : > { %5270 = vmatpush3.bf16.msra.mxu0 %v5806_v39  ;;  %5241 = vmatprep.mubr.bf16.mxu0 %v5969_v4  ;;  %v6225_v34 = vpack.c.bf16 %v641_v28, %v640_v27  ;;  %v2476_v39 = vld [vmem:[#allocation3 + $0x62] sm:$0xff]  ;;  %v2478_v44 = vld [vmem:[#allocation3 + $0x7a] sm:$0xff]  ;;  %v5819_v46 = vld [vmem:[%s6578_s1 + $0x190] sm:$0xff]   ;;  %v6240_v47 = vpack.c.bf16 %v643_v37, %v642_v36 }
  0x47   : > { %5271 = vmatprep.subr.bf16.mxu0 %v5807_v42  ;;  %5078 = vmatpush3.bf16.msra.mxu1 %v5808_v38  ;;  %v5817_v38 = vld [vmem:[%s6578_s1 + $0x188] sm:$0xff]   ;;  %v644_v21 = vld [vmem:[#allocation3 + $0x120] sm:$0xff]  ;;  %v2480_v56 = vld [vmem:[#allocation3 + $0x92] sm:$0xff] }
  0x48   : > { %5079 = vmatprep.subr.bf16.mxu1 %v5811_v43  ;;  %v2479_v45 = vld [vmem:[#allocation3 + $0x82] sm:$0xff]  ;;  %v648_v58 = vld [vmem:[#allocation3 + $0x150] sm:$0xff]  ;;  %v649_v59 = vld [vmem:[#allocation3 + $0x158] sm:$0xff] }
  0x49   : > { %v647_v54 = vld [vmem:[#allocation3 + $0x140] sm:$0xff]  ;;  %v2482_v60 = vld [vmem:[#allocation3 + $0xaa] sm:$0xff]  ;;  %v2483_v61 = vld [vmem:[#allocation3 + $0xb2] sm:$0xff]  ;;  %v6262_v20 = vpack.c.bf16 %v649_v59, %v648_v58 }
  0x4a   : > { %5272 = vmatpush3.bf16.msra.mxu0 %v5807_v42  ;;  %v2477_v42 = vld [vmem:[#allocation3 + $0x6a] sm:$0xff]  ;;  %v6264_v22 = vpack.c.bf16 %v2483_v61, %v2482_v60  ;;  %v989_v28 = vld [vmem:[#allocation3 + $0x1] sm:$0xff] }
  0x4b   : > { %5273 = vmatprep.subr.bf16.mxu0 %v5809_v48  ;;  %5080 = vmatpush3.bf16.msra.mxu1 %v5811_v43  ;;  %v645_v43 = vld [vmem:[#allocation3 + $0x128] sm:$0xff]  ;;  %v2486_v30 = vld [vmem:[#allocation3 + $0xda] sm:$0xff]  ;;  %v5827_v37 = vld [vmem:[%s6578_s1 + $0x1b0] sm:$0xff]  }
  0x4c   : > { %5050 = vmatmul.mubr.bf16.gmra.mrb[8].mxu1 %v6168_v50  ;;  %5081 = vmatprep.subr.bf16.mxu1 %v5814_v51  ;;  %v6244_v49 = vpack.c.bf16 %v645_v43, %v644_v21  ;;  %v650_v23 = vld [vmem:[#allocation3 + $0x168] sm:$0xff]  ;;  %v5829_v43 = vld [vmem:[%s6578_s1 + $0x1b8] sm:$0xff]   ;;  %v5826_v60 = vld [vmem:[%s6578_s1 + $0x90] sm:$0xff]  }
  0x4d   : > { %5242 = vmatmul.mubr.bf16.gmra.mrb[8].mxu0 %v5971_v5  ;;  %5053 = vmatprep.mubr.bf16.mxu1 %v6173_v52  ;;  %v5825_v25 = vld [vmem:[%s6578_s1 + $0x1a8] sm:$0xff]   ;;  %v2494_v61 = vld [vmem:[#allocation3 + $0x13a] sm:$0xff] }
  0x4e   : > { %5274 = vmatpush3.bf16.msra.mxu0 %v5809_v48  ;;  %5245 = vmatprep.mubr.bf16.mxu0 %v5973_v6  ;;  %v6242_v48 = vpack.c.bf16 %v2477_v42, %v2476_v39  ;;  %v2485_v27 = vld [vmem:[#allocation3 + $0xca] sm:$0xff]  ;;  %v2487_v36 = vld [vmem:[#allocation3 + $0xe2] sm:$0xff] }
  0x4f   : > { %5275 = vmatprep.subr.bf16.mxu0 %v5810_v53  ;;  %5082 = vmatpush3.bf16.msra.mxu1 %v5814_v51  ;;  %v6246_v51 = vpack.c.bf16 %v2479_v45, %v2478_v44  ;;  %v990_v29 = vld [vmem:[#allocation3 + $0x9] sm:$0xff]  ;;  %v6280_v21 = vpack.c.bf16 %v2487_v36, %v2486_v30  ;;  %v2488_v44 = vld [vmem:[#allocation3 + $0xf2] sm:$0xff]  ;;  %v2489_v45 = vld [vmem:[#allocation3 + $0xfa] sm:$0xff] }
  0x50   : > { %5083 = vmatprep.subr.bf16.mxu1 %v5816_v55  ;;  %v1021_v42 = vpack.c.bf16 %v990_v29, %v989_v28  ;;  %v2492_v58 = vld [vmem:[#allocation3 + $0x122] sm:$0xff]  ;;  %v2493_v59 = vld [vmem:[#allocation3 + $0x12a] sm:$0xff] }
  0x51   : > { %v2501_v30 = vld [vmem:[#allocation3 + $0x18a] sm:$0xff] }
  0x52   : > { %5276 = vmatpush3.bf16.msra.mxu0 %v5810_v53  ;;  %v646_v53 = vld [vmem:[#allocation3 + $0x138] sm:$0xff]  ;;  %v5834_v36 = vld [vmem:[%s6578_s1 + $0xb0] sm:$0xff]  }
  0x53   : > { %5277 = vmatprep.subr.bf16.mxu0 %v5812_v57  ;;  %5084 = vmatpush3.bf16.msra.mxu1 %v5816_v55  ;;  %v5821_v55 = vld [vmem:[%s6578_s1 + $0x198] sm:$0xff]  }
  0x54   : > { %5054 = vmatmul.mubr.bf16.gmra.mrb[12].mxu1 %v6190_v62  ;;  %5085 = vmatprep.subr.bf16.mxu1 %v5818_v63 }
  0x55   : > { %5246 = vmatmul.mubr.bf16.gmra.mrb[12].mxu0 %v5975_v7  ;;  %5057 = vmatprep.mubr.bf16.mxu1 %v6195_v15 }
  0x56   : > { %5278 = vmatpush3.bf16.msra.mxu0 %v5812_v57  ;;  %5281 = vmatprep.mubr.bf16.mxu0 %v6197_v16  ;;  %v2481_v57 = vld [vmem:[#allocation3 + $0x9a] sm:$0xff] }
  0x57   : > { %5279 = vmatprep.subr.bf16.mxu0 %v5813_v18  ;;  %5086 = vmatpush3.bf16.msra.mxu1 %v5818_v63  ;;  %v5823_v63 = vld [vmem:[%s6578_s1 + $0x1a0] sm:$0xff]   ;;  %v6260_v19 = vpack.c.bf16 %v2481_v57, %v2480_v56  ;;  %v5824_v57 = vld [vmem:[%s6578_s1 + $0x88] sm:$0xff]  }
  0x58   : > { %5087 = vmatprep.subr.bf16.mxu1 %v5820_v24 }
  0x5a   : > { %5280 = vmatpush3.bf16.msra.mxu0 %v5813_v18  ;;  %v6258_v18 = vpack.c.bf16 %v647_v54, %v646_v53  ;;  %v2491_v53 = vld [vmem:[#allocation3 + $0x112] sm:$0xff]  ;;  %v6291_v54 = vld [vmem:[%s6578_s1 + $0x1c0] sm:$0xff]  }
  0x5b   : > { %5313 = vmatprep.subr.bf16.mxu0 %v5815_v26  ;;  %5088 = vmatpush3.bf16.msra.mxu1 %v5820_v24  ;;  %v651_v24 = vld [vmem:[#allocation3 + $0x170] sm:$0xff] }
  0x5c   : > { %5058 = vmatmul.mubr.bf16.gmra.mrb[16].mxu1 %v6215_v17  ;;  %5121 = vmatprep.subr.bf16.mxu1 %v6220_v32 }
  0x5d   : > { %5282 = vmatmul.mubr.bf16.vlgmr.msra.gmra.mrb[0].mxu0 %v6223_v33  ;;  %5061 = vmatprep.mubr.bf16.mxu1 %v6225_v34 }
  0x5e   : > { %5314 = vmatpush3.bf16.msra.mxu0 %v5815_v26  ;;  %5285 = vmatprep.mubr.bf16.mxu0 %v6227_v35  ;;  %v2484_v26 = vld [vmem:[#allocation3 + $0xc2] sm:$0xff] }
  0x5f   : > { %5315 = vmatprep.subr.bf16.mxu0 %v5817_v38  ;;  %v6278_v39 = vpack.c.bf16 %v2485_v27, %v2484_v26  ;;  %v2499_v26 = vld [vmem:[#allocation3 + $0x172] sm:$0xff]  ;;  %v5830_v27 = vld [vmem:[%s6578_s1 + $0xa0] sm:$0xff]  }
  0x62   : > { %5316 = vmatpush3.bf16.msra.mxu0 %v5817_v38  ;;  %v6276_v38 = vpack.c.bf16 %v651_v24, %v650_v23  ;;  %v6309_v23 = vpack.c.bf16 %v2493_v59, %v2492_v58  ;;  %v2497_v24 = vld [vmem:[#allocation3 + $0x15a] sm:$0xff]  ;;  %v3219_v58 = vld [vmem:[#allocation3 + $0x91] sm:$0xff] }
  0x63   : > { %5317 = vmatprep.subr.bf16.mxu0 %v5819_v46  ;;  %v3220_v59 = vld [vmem:[#allocation3 + $0x99] sm:$0xff] }
  0x64   : > { %5062 = vmatmul.mubr.bf16.gmra.mrb[20].mxu1 %v6240_v47 }
  0x65   : > { %5286 = vmatmul.mubr.bf16.gmra.mrb[4].mxu0 %v6242_v48  ;;  %5065 = vmatprep.mubr.bf16.mxu1 %v6244_v49 }
  0x66   : > { %5289 = vmatprep.mubr.bf16.mxu0 %v6246_v51  ;;  %5318 = vmatpush3.bf16.msra.mxu0 %v5819_v46  ;;  %v2490_v46 = vld [vmem:[#allocation3 + $0x10a] sm:$0xff] }
  0x67   : > { %5319 = vmatprep.subr.bf16.mxu0 %v5821_v55  ;;  %v6295_v56 = vpack.c.bf16 %v2491_v53, %v2490_v46 }
  0x6a   : > { %5320 = vmatpush3.bf16.msra.mxu0 %v5821_v55  ;;  %v6293_v55 = vpack.c.bf16 %v2489_v45, %v2488_v44  ;;  %v3215_v44 = vld [vmem:[#allocation3 + $0x61] sm:$0xff]  ;;  %v3216_v45 = vld [vmem:[#allocation3 + $0x69] sm:$0xff] }
  0x6b   : > { %5321 = vmatprep.subr.bf16.mxu0 %v5823_v63  ;;  %v3245_v53 = vpack.c.bf16 %v3216_v45, %v3215_v44 }
  0x6c   : > { %5066 = vmatmul.mubr.bf16.gmra.mrb[24].mxu1 %v6258_v18 }
  0x6d   : > { %5290 = vmatmul.mubr.bf16.gmra.mrb[8].mxu0 %v6260_v19  ;;  %5069 = vmatprep.mubr.bf16.mxu1 %v6262_v20 }
  0x6e   : > { %5293 = vmatprep.mubr.bf16.mxu0 %v6264_v22  ;;  %5322 = vmatpush3.bf16.msra.mxu0 %v5823_v63  ;;  %v2495_v63 = vld [vmem:[#allocation3 + $0x142] sm:$0xff] }
  0x6f   : > { %5323 = vmatprep.subr.bf16.mxu0 %v5825_v25 }
  0x72   : > { %5324 = vmatpush3.bf16.msra.mxu0 %v5825_v25  ;;  %v2498_v25 = vld [vmem:[#allocation3 + $0x16a] sm:$0xff] }
  0x73   : > { %5325 = vmatprep.subr.bf16.mxu0 %v5827_v37  ;;  %v6325_v29 = vpack.c.bf16 %v2499_v26, %v2498_v25  ;;  %v5854_v25 = vld [vmem:[%s6578_s1 + $0x220] sm:$0xff]  }
  0x74   : > { %5070 = vmatmul.mubr.bf16.gmra.mrb[28].mxu1 %v6276_v38 }
  0x75   : > { %5294 = vmatmul.mubr.bf16.gmra.mrb[12].mxu0 %v6278_v39  ;;  %5089 = vmatprep.mubr.bf16.mxu1 %v1021_v42  ;;  %v5833_v42 = vld [vmem:[%s6578_s1 + $0x1c8] sm:$0xff]  }
  0x76   : > { %5297 = vmatprep.mubr.bf16.mxu0 %v6280_v21  ;;  %5326 = vmatpush3.bf16.msra.mxu0 %v5827_v37 }
  0x77   : > { %5327 = vmatprep.subr.bf16.mxu0 %v5829_v43 }
  0x7a   : > { %5328 = vmatpush3.bf16.msra.mxu0 %v5829_v43 }
  0x7b   : > { %5361 = vmatprep.subr.bf16.mxu0 %v6291_v54 }
  0x7c   : > { %5090 = vmatmul.mubr.bf16.vlgmr.msra.gmra.mrb[0].mxu1 %v5961_v0  ;;  %v6311_v0 = vpack.c.bf16 %v2495_v63, %v2494_v61  ;;  %v3247_v63 = vpack.c.bf16 %v3220_v59, %v3219_v58  ;;  %v3242_v58 = vld [vmem:[#allocation3 + $0x1a1] sm:$0xff]  ;;  %v1746_v59 = vld [vmem:[#allocation3 + $0xd8] sm:$0xff] }
  0x7d   : > { %5298 = vmatmul.mubr.bf16.gmra.mrb[16].mxu0 %v6293_v55  ;;  %5122 = vmatpush3.bf16.msra.mxu1 %v6220_v32  ;;  %v2496_v32 = vld [vmem:[#allocation3 + $0x152] sm:$0xff] }
  0x7e   : > { %5093 = vmatprep.mubr.bf16.mxu1 %v5963_v1  ;;  %5301 = vmatprep.mubr.bf16.mxu0 %v6295_v56  ;;  %v5828_v1 = vld [vmem:[%s6578_s1 + $0x98] sm:$0xff]   ;;  %v6323_v28 = vpack.c.bf16 %v2497_v24, %v2496_v32  ;;  %v3223_v32 = vld [vmem:[#allocation3 + $0xc1] sm:$0xff]  ;;  %v3224_v24 = vld [vmem:[#allocation3 + $0xc9] sm:$0xff] }
  0x7f   : > { %5123 = vmatprep.subr.bf16.mxu1 %v5824_v57 }
  0x81   : > { %5124 = vmatpush3.bf16.msra.mxu1 %v5824_v57  ;;  %v3218_v57 = vld [vmem:[#allocation3 + $0x81] sm:$0xff] }
  0x82   : > { %5125 = vmatprep.subr.bf16.mxu1 %v5826_v60 }
  0x84   : > { %5094 = vmatmul.mubr.bf16.gmra.mrb[4].mxu1 %v5965_v2  ;;  %v5832_v2 = vld [vmem:[%s6578_s1 + $0xa8] sm:$0xff]  }
  0x85   : > { %5302 = vmatmul.mubr.bf16.gmra.mrb[20].mxu0 %v6309_v23  ;;  %5097 = vmatprep.mubr.bf16.mxu1 %v5967_v3  ;;  %v2500_v3 = vld [vmem:[#allocation3 + $0x182] sm:$0xff] }
  0x86   : > { %5305 = vmatprep.mubr.bf16.mxu0 %v6311_v0  ;;  %5126 = vmatpush3.bf16.msra.mxu1 %v5826_v60  ;;  %v2517_v37 = vpack.c.bf16 %v2501_v30, %v2500_v3  ;;  %v5851_v60 = vld [vmem:[%s6578_s1 + $0x210] sm:$0xff]   ;;  %v1730_v3 = vld [vmem:[#allocation3 + $0x18] sm:$0xff]  ;;  %v1731_v30 = vld [vmem:[#allocation3 + $0x20] sm:$0xff] }
  0x87   : > { %5127 = vmatprep.subr.bf16.mxu1 %v5828_v1 }
  0x8a   : > { %5128 = vmatpush3.bf16.msra.mxu1 %v5828_v1  ;;  %v3222_v1 = vld [vmem:[#allocation3 + $0xb1] sm:$0xff] }
  0x8b   : > { %5129 = vmatprep.subr.bf16.mxu1 %v5830_v27 }
  0x8c   : > { %5098 = vmatmul.mubr.bf16.gmra.mrb[8].mxu1 %v5969_v4  ;;  %v5836_v4 = vld [vmem:[%s6578_s1 + $0xb8] sm:$0xff]  }
  0x8d   : > { %5306 = vmatmul.mubr.bf16.gmra.mrb[24].mxu0 %v6323_v28  ;;  %5101 = vmatprep.mubr.bf16.mxu1 %v5971_v5  ;;  %v5838_v5 = vld [vmem:[%s6578_s1 + $0xc0] sm:$0xff]  }
  0x8e   : > { %5309 = vmatprep.mubr.bf16.mxu0 %v6325_v29  ;;  %5130 = vmatpush3.bf16.msra.mxu1 %v5830_v27  ;;  %v3249_v27 = vpack.c.bf16 %v3224_v24, %v3223_v32  ;;  %v5867_v24 = vld [vmem:[%s6578_s1 + $0x130] sm:$0xff]  }
  0x8f   : > { %5131 = vmatprep.subr.bf16.mxu1 %v5832_v2 }
  0x92   : > { %5132 = vmatpush3.bf16.msra.mxu1 %v5832_v2  ;;  %v3226_v2 = vld [vmem:[#allocation3 + $0xe1] sm:$0xff] }
  0x93   : > { %5133 = vmatprep.subr.bf16.mxu1 %v5834_v36 }
  0x94   : > { %5102 = vmatmul.mubr.bf16.gmra.mrb[12].mxu1 %v5973_v6  ;;  %v5835_v6 = vld [vmem:[%s6578_s1 + $0x1d0] sm:$0xff]  }
  0x95   : > { %5310 = vmatmul.mubr.bf16.gmra.mrb[28].mxu0 %v2517_v37  ;;  %5105 = vmatprep.mubr.bf16.mxu1 %v5975_v7  ;;  %v5837_v7 = vld [vmem:[%s6578_s1 + $0x1d8] sm:$0xff]  }
  0x96   : > { %5329 = vmatprep.mubr.bf16.mxu0 %v6133_v31  ;;  %5134 = vmatpush3.bf16.msra.mxu1 %v5834_v36  ;;  %v5843_v31 = vld [vmem:[%s6578_s1 + $0x1f0] sm:$0xff]   ;;  %v3228_v37 = vld [vmem:[#allocation3 + $0xf9] sm:$0xff] }
  0x97   : > { %5135 = vmatprep.subr.bf16.mxu1 %v5836_v4  ;;  %v3227_v36 = vld [vmem:[#allocation3 + $0xf1] sm:$0xff] }
  0x9a   : > { %5136 = vmatpush3.bf16.msra.mxu1 %v5836_v4  ;;  %v5856_v4 = vld [vmem:[%s6578_s1 + $0x230] sm:$0xff]  }
  0x9b   : > { %5169 = vmatprep.subr.bf16.mxu1 %v5838_v5 }
  0x9c   : > { %5106 = vmatmul.mubr.bf16.gmra.mrb[16].mxu1 %v5977_v8  ;;  %v5839_v8 = vld [vmem:[%s6578_s1 + $0x1e0] sm:$0xff]  }
  0x9d   : > { %5330 = vmatmul.mubr.bf16.vlgmr.msra.gmra.mrb[0].mxu0 %v6150_v40  ;;  %5109 = vmatprep.mubr.bf16.mxu1 %v5989_v9  ;;  %v5841_v9 = vld [vmem:[%s6578_s1 + $0x1e8] sm:$0xff]  }
  0x9e   : > { %5362 = vmatpush3.bf16.msra.mxu0 %v6291_v54  ;;  %5333 = vmatprep.mubr.bf16.mxu0 %v6152_v41  ;;  %v5847_v41 = vld [vmem:[%s6578_s1 + $0x200] sm:$0xff]   ;;  %v5849_v54 = vld [vmem:[%s6578_s1 + $0x208] sm:$0xff]  }
  0x9f   : > { %5363 = vmatprep.subr.bf16.mxu0 %v5833_v42 }
  0xa2   : > { %5364 = vmatpush3.bf16.msra.mxu0 %v5833_v42  ;;  %v1762_v42 = vpack.c.bf16 %v1731_v30, %v1730_v3  ;;  %v3585_v3 = vld [vmem:[#allocation3 + $0x62] sm:$0xff]  ;;  %v3586_v30 = vld [vmem:[#allocation3 + $0x6a] sm:$0xff] }
  0xa3   : > { %5365 = vmatprep.subr.bf16.mxu0 %v5835_v6 }
  0xa4   : > { %5110 = vmatmul.mubr.bf16.gmra.mrb[20].mxu1 %v5991_v10  ;;  %v1359_v10 = vld [vmem:[#allocation3 + $0x2] sm:$0xff] }
  0xa5   : > { %5334 = vmatmul.mubr.bf16.gmra.mrb[4].mxu0 %v6168_v50  ;;  %5113 = vmatprep.mubr.bf16.mxu1 %v5993_v11  ;;  %v1360_v11 = vld [vmem:[#allocation3 + $0xa] sm:$0xff] }
  0xa6   : > { %5337 = vmatprep.mubr.bf16.mxu0 %v6173_v52  ;;  %5366 = vmatpush3.bf16.msra.mxu0 %v5835_v6  ;;  %v1391_v40 = vpack.c.bf16 %v1360_v11, %v1359_v10  ;;  %v5840_v50 = vld [vmem:[%s6578_s1 + $0xc8] sm:$0xff]   ;;  %v5842_v52 = vld [vmem:[%s6578_s1 + $0xd0] sm:$0xff]  }
  0xa7   : > { %5367 = vmatprep.subr.bf16.mxu0 %v5837_v7  ;;  %v1732_v6 = vld [vmem:[#allocation3 + $0x30] sm:$0xff]  ;;  %v1734_v10 = vld [vmem:[#allocation3 + $0x48] sm:$0xff] }
  0xa8   : > { %v1735_v11 = vld [vmem:[#allocation3 + $0x50] sm:$0xff] }
  0xaa   : > { %5368 = vmatpush3.bf16.msra.mxu0 %v5837_v7  ;;  %v1733_v7 = vld [vmem:[#allocation3 + $0x38] sm:$0xff] }
  0xab   : > { %5369 = vmatprep.subr.bf16.mxu0 %v5839_v8 }
  0xac   : > { %5114 = vmatmul.mubr.bf16.gmra.mrb[24].mxu1 %v5995_v12  ;;  %v5845_v12 = vld [vmem:[%s6578_s1 + $0x1f8] sm:$0xff]  }
  0xad   : > { %5338 = vmatmul.mubr.bf16.gmra.mrb[8].mxu0 %v6190_v62  ;;  %5117 = vmatprep.mubr.bf16.mxu1 %v5997_v13  ;;  %v5844_v62 = vld [vmem:[%s6578_s1 + $0xd8] sm:$0xff]  }
  0xae   : > { %5341 = vmatprep.mubr.bf16.mxu0 %v6195_v15  ;;  %5370 = vmatpush3.bf16.msra.mxu0 %v5839_v8  ;;  %v2869_v15 = vld [vmem:[#allocation3 + $0x180] sm:$0xff]  ;;  %v3229_v8 = vld [vmem:[#allocation3 + $0x109] sm:$0xff] }
  0xaf   : > { %5371 = vmatprep.subr.bf16.mxu0 %v5841_v9 }
  0xb2   : > { %5372 = vmatpush3.bf16.msra.mxu0 %v5841_v9  ;;  %v3230_v9 = vld [vmem:[#allocation3 + $0x111] sm:$0xff] }
  0xb3   : > { %5373 = vmatprep.subr.bf16.mxu0 %v5843_v31 }
  0xb4   : > { %5118 = vmatmul.mubr.bf16.gmra.mrb[28].mxu1 %v5999_v14 }
  0xb5   : > { %5342 = vmatmul.mubr.bf16.gmra.mrb[12].mxu0 %v6215_v17  ;;  %5137 = vmatprep.mubr.bf16.mxu1 %v1391_v40  ;;  %v5846_v17 = vld [vmem:[%s6578_s1 + $0xe0] sm:$0xff]   ;;  %v3232_v40 = vld [vmem:[#allocation3 + $0x129] sm:$0xff] }
  0xb6   : > { %5345 = vmatprep.mubr.bf16.mxu0 %v6225_v34  ;;  %5374 = vmatpush3.bf16.msra.mxu0 %v5843_v31  ;;  %v5848_v34 = vld [vmem:[%s6578_s1 + $0xe8] sm:$0xff]  }
  0xb7   : > { %5375 = vmatprep.subr.bf16.mxu0 %v5845_v12  ;;  %v3231_v31 = vld [vmem:[#allocation3 + $0x121] sm:$0xff] }
  0xba   : > { %5376 = vmatpush3.bf16.msra.mxu0 %v5845_v12  ;;  %v1763_v12 = vpack.c.bf16 %v1733_v7, %v1732_v6  ;;  %v1752_v6 = vld [vmem:[#allocation3 + $0x120] sm:$0xff]  ;;  %v1753_v7 = vld [vmem:[#allocation3 + $0x128] sm:$0xff] }
  0xbb   : > { %5409 = vmatprep.subr.bf16.mxu0 %v5847_v41 }
  0xbc   : > { %5138 = vmatmul.mubr.bf16.vlgmr.msra.gmra.mrb[0].mxu1 %v6197_v16  ;;  %v2870_v16 = vld [vmem:[#allocation3 + $0x188] sm:$0xff] }
  0xbd   : > { %5346 = vmatmul.mubr.bf16.gmra.mrb[16].mxu0 %v6240_v47  ;;  %5170 = vmatpush3.bf16.msra.mxu1 %v5838_v5  ;;  %v3211_v47 = vld [vmem:[#allocation3 + $0x31] sm:$0xff] }
  0xbe   : > { %5141 = vmatprep.mubr.bf16.mxu1 %v6223_v33  ;;  %5349 = vmatprep.mubr.bf16.mxu0 %v6244_v49  ;;  %v6406_v33 = vpack.c.bf16 %v2870_v16, %v2869_v15  ;;  %v5850_v49 = vld [vmem:[%s6578_s1 + $0xf0] sm:$0xff]   ;;  %v3233_v15 = vld [vmem:[#allocation3 + $0x139] sm:$0xff]  ;;  %v3234_v16 = vld [vmem:[#allocation3 + $0x141] sm:$0xff] }
  0xbf   : > { %5171 = vmatprep.subr.bf16.mxu1 %v5840_v50 }
  0xc1   : > { %5172 = vmatpush3.bf16.msra.mxu1 %v5840_v50  ;;  %v1764_v50 = vpack.c.bf16 %v1735_v11, %v1734_v10  ;;  %v1754_v10 = vld [vmem:[#allocation3 + $0x138] sm:$0xff]  ;;  %v1755_v11 = vld [vmem:[#allocation3 + $0x140] sm:$0xff] }
  0xc2   : > { %5173 = vmatprep.subr.bf16.mxu1 %v5842_v52 }
  0xc4   : > { %5142 = vmatmul.mubr.bf16.gmra.mrb[4].mxu1 %v6227_v35  ;;  %v2871_v35 = vld [vmem:[#allocation3 + $0x198] sm:$0xff] }
  0xc5   : > { %5350 = vmatmul.mubr.bf16.gmra.mrb[20].mxu0 %v6258_v18  ;;  %5145 = vmatprep.mubr.bf16.mxu1 %v6242_v48  ;;  %v3212_v48 = vld [vmem:[#allocation3 + $0x39] sm:$0xff]  ;;  %v5858_v18 = vld [vmem:[#allocation3 + $0x8] sm:$0xff] }
  0xc6   : > { %5353 = vmatprep.mubr.bf16.mxu0 %v6262_v20  ;;  %5174 = vmatpush3.bf16.msra.mxu1 %v5842_v52  ;;  %v2888_v20 = vpack.c.bf16 %v5858_v18, %v2871_v35  ;;  %v3243_v43 = vpack.c.bf16 %v3212_v48, %v3211_v47  ;;  %v1736_v52 = vld [vmem:[#allocation3 + $0x60] sm:$0xff]  ;;  %v5860_v35 = vld [vmem:[%s6578_s1 + $0x108] sm:$0xff]   ;;  %v6473_v48 = vpack.c.bf16 %v3234_v16, %v3233_v15  ;;  %v5861_v18 = vld [vmem:[%s6578_s1 + $0x110] sm:$0xff]  }
  0xc7   : > { %5175 = vmatprep.subr.bf16.mxu1 %v5844_v62  ;;  %v1756_v15 = vld [vmem:[#allocation3 + $0x150] sm:$0xff]  ;;  %v1757_v16 = vld [vmem:[#allocation3 + $0x158] sm:$0xff] }
  0xca   : > { %5176 = vmatpush3.bf16.msra.mxu1 %v5844_v62  ;;  %v1737_v62 = vld [vmem:[#allocation3 + $0x68] sm:$0xff] }
  0xcb   : > { %5177 = vmatprep.subr.bf16.mxu1 %v5846_v17  ;;  %v1765_v47 = vpack.c.bf16 %v1737_v62, %v1736_v52  ;;  %v1774_v52 = vpack.c.bf16 %v1755_v11, %v1754_v10 }
  0xcc   : > { %5146 = vmatmul.mubr.bf16.gmra.mrb[8].mxu1 %v6246_v51  ;;  %v5852_v51 = vld [vmem:[%s6578_s1 + $0xf8] sm:$0xff]  }
  0xcd   : > { %5354 = vmatmul.mubr.bf16.gmra.mrb[24].mxu0 %v6276_v38  ;;  %5149 = vmatprep.mubr.bf16.mxu1 %v6260_v19  ;;  %v3213_v19 = vld [vmem:[#allocation3 + $0x49] sm:$0xff]  ;;  %v3214_v38 = vld [vmem:[#allocation3 + $0x51] sm:$0xff] }
  0xce   : > { %5357 = vmatprep.mubr.bf16.mxu0 %v6406_v33  ;;  %5178 = vmatpush3.bf16.msra.mxu1 %v5846_v17  ;;  %v3244_v46 = vpack.c.bf16 %v3214_v38, %v3213_v19  ;;  %v1738_v17 = vld [vmem:[#allocation3 + $0x78] sm:$0xff]  ;;  %v1743_v19 = vld [vmem:[#allocation3 + $0xb0] sm:$0xff] }
  0xcf   : > { %5179 = vmatprep.subr.bf16.mxu1 %v5848_v34  ;;  %v5862_v38 = vld [vmem:[%s6578_s1 + $0x118] sm:$0xff]  }
  0xd2   : > { %5180 = vmatpush3.bf16.msra.mxu1 %v5848_v34  ;;  %v1739_v34 = vld [vmem:[#allocation3 + $0x80] sm:$0xff] }
  0xd3   : > { %5181 = vmatprep.subr.bf16.mxu1 %v5850_v49 }
  0xd4   : > { %5150 = vmatmul.mubr.bf16.gmra.mrb[12].mxu1 %v6264_v22  ;;  %v6429_v22 = vld [vmem:[%s6578_s1 + $0x100] sm:$0xff]  }
  0xd5   : > { %5358 = vmatmul.mubr.bf16.gmra.mrb[28].mxu0 %v2888_v20  ;;  %5153 = vmatprep.mubr.bf16.mxu1 %v6278_v39  ;;  %v3217_v39 = vld [vmem:[#allocation3 + $0x79] sm:$0xff]  ;;  %v1740_v20 = vld [vmem:[#allocation3 + $0x90] sm:$0xff] }
  0xd6   : > { %5377 = vmatprep.mubr.bf16.mxu0 %v3243_v43  ;;  %5182 = vmatpush3.bf16.msra.mxu1 %v5850_v49  ;;  %v3246_v61 = vpack.c.bf16 %v3218_v57, %v3217_v39  ;;  %v1766_v49 = vpack.c.bf16 %v1739_v34, %v1738_v17  ;;  %v1741_v43 = vld [vmem:[#allocation3 + $0x98] sm:$0xff]  ;;  %v1745_v39 = vld [vmem:[#allocation3 + $0xc8] sm:$0xff] }
  0xd7   : > { %5183 = vmatprep.subr.bf16.mxu1 %v5852_v51  ;;  %v1767_v44 = vpack.c.bf16 %v1741_v43, %v1740_v20  ;;  %v3241_v57 = vld [vmem:[#allocation3 + $0x199] sm:$0xff]  ;;  %v3591_v17 = vld [vmem:[#allocation3 + $0xaa] sm:$0xff]  ;;  %v1775_v20 = vpack.c.bf16 %v1757_v16, %v1756_v15 }
  0xd8   : > { %v3592_v34 = vld [vmem:[#allocation3 + $0xb2] sm:$0xff]  ;;  %v6513_v15 = vld [vmem:[%s6579_s2] ss:$0 sm:$0xff] }
  0xd9   : > { %v3618_v43 = vpack.c.bf16 %v3592_v34, %v3591_v17 }
  0xda   : > { %5184 = vmatpush3.bf16.msra.mxu1 %v5852_v51  ;;  %v1742_v51 = vld [vmem:[#allocation3 + $0xa8] sm:$0xff] }
  0xdb   : > { %5457 = vmatprep.subr.bf16.mxu1 %v6429_v22  ;;  %v1768_v45 = vpack.c.bf16 %v1743_v19, %v1742_v51 }
  0xdc   : > { %5154 = vmatmul.mubr.bf16.gmra.mrb[16].mxu1 %v6280_v21  ;;  %v5853_v21 = vld [vmem:[%s6578_s1 + $0x218] sm:$0xff]  }
  0xdd   : > { %5378 = vmatmul.mubr.bf16.vlgmr.msra.gmra.mrb[0].mxu0 %v3244_v46  ;;  %5157 = vmatprep.mubr.bf16.mxu1 %v6293_v55  ;;  %v3221_v55 = vld [vmem:[#allocation3 + $0xa9] sm:$0xff]  ;;  %v5863_v46 = vld [vmem:[#allocation3 + $0x181] sm:$0xff] }
  0xde   : > { %5410 = vmatpush3.bf16.msra.mxu0 %v5847_v41  ;;  %5381 = vmatprep.mubr.bf16.mxu0 %v3245_v53  ;;  %v3248_v26 = vpack.c.bf16 %v3222_v1, %v3221_v55  ;;  %v6463_v41 = vpack.c.bf16 %v3230_v9, %v3229_v8  ;;  %v5864_v53 = vld [vmem:[#allocation3 + $0x189] sm:$0xff]  ;;  %v3258_v1 = vpack.c.bf16 %v3242_v58, %v3241_v57  ;;  %v3587_v8 = vld [vmem:[#allocation3 + $0x7a] sm:$0xff] }
  0xdf   : > { %5411 = vmatprep.subr.bf16.mxu0 %v5849_v54  ;;  %v3588_v9 = vld [vmem:[#allocation3 + $0x82] sm:$0xff]  ;;  %v3602_v57 = vld [vmem:[#allocation3 + $0x12a] sm:$0xff] }
  0xe2   : > { %5412 = vmatpush3.bf16.msra.mxu0 %v5849_v54  ;;  %v3257_v54 = vpack.c.bf16 %v5864_v53, %v5863_v46  ;;  %v3598_v46 = vld [vmem:[#allocation3 + $0xfa] sm:$0xff] }
  0xe3   : > { %5413 = vmatprep.subr.bf16.mxu0 %v5851_v60 }
  0xe4   : > { %5158 = vmatmul.mubr.bf16.gmra.mrb[20].mxu1 %v6295_v56  ;;  %v5855_v56 = vld [vmem:[%s6578_s1 + $0x228] sm:$0xff]  }
  0xe5   : > { %5382 = vmatmul.mubr.bf16.gmra.mrb[4].mxu0 %v3246_v61  ;;  %5161 = vmatprep.mubr.bf16.mxu1 %v6309_v23  ;;  %v3225_v23 = vld [vmem:[#allocation3 + $0xd9] sm:$0xff] }
  0xe6   : > { %5385 = vmatprep.mubr.bf16.mxu0 %v3247_v63  ;;  %5414 = vmatpush3.bf16.msra.mxu0 %v5851_v60  ;;  %v6453_v5 = vpack.c.bf16 %v3226_v2, %v3225_v23  ;;  %v1747_v60 = vld [vmem:[#allocation3 + $0xe0] sm:$0xff]  ;;  %v3581_v61 = vld [vmem:[#allocation3 + $0x32] sm:$0xff]  ;;  %v1750_v23 = vld [vmem:[#allocation3 + $0x108] sm:$0xff] }
  0xe7   : > { %5415 = vmatprep.subr.bf16.mxu0 %v5853_v21  ;;  %v3582_v63 = vld [vmem:[#allocation3 + $0x3a] sm:$0xff]  ;;  %v1770_v32 = vpack.c.bf16 %v1747_v60, %v1746_v59  ;;  %v1751_v2 = vld [vmem:[#allocation3 + $0x110] sm:$0xff] }
  0xe8   : > { %v3603_v60 = vld [vmem:[#allocation3 + $0x13a] sm:$0xff] }
  0xea   : > { %5416 = vmatpush3.bf16.msra.mxu0 %v5853_v21  ;;  %v5866_v21 = vld [vmem:[%s6578_s1 + $0x128] sm:$0xff]  }
  0xeb   : > { %5417 = vmatprep.subr.bf16.mxu0 %v5854_v25 }
  0xec   : > { %5162 = vmatmul.mubr.bf16.gmra.mrb[24].mxu1 %v6311_v0  ;;  %v6455_v0 = vpack.c.bf16 %v3228_v37, %v3227_v36  ;;  %v5868_v36 = vld [vmem:[%s6578_s1 + $0x138] sm:$0xff]  }
  0xed   : > { %5386 = vmatmul.mubr.bf16.gmra.mrb[8].mxu0 %v3248_v26  ;;  %5165 = vmatprep.mubr.bf16.mxu1 %v6323_v28  ;;  %v5857_v28 = vld [vmem:[%s6578_s1 + $0x238] sm:$0xff]  }
  0xee   : > { %5389 = vmatprep.mubr.bf16.mxu0 %v3249_v27  ;;  %5418 = vmatpush3.bf16.msra.mxu0 %v5854_v25  ;;  %v1748_v25 = vld [vmem:[#allocation3 + $0xf0] sm:$0xff]  ;;  %v1749_v26 = vld [vmem:[#allocation3 + $0xf8] sm:$0xff] }
  0xef   : > { %5419 = vmatprep.subr.bf16.mxu0 %v5855_v56  ;;  %v3583_v27 = vld [vmem:[#allocation3 + $0x4a] sm:$0xff]  ;;  %v1771_v37 = vpack.c.bf16 %v1749_v26, %v1748_v25 }
  0xf0   : > { %v3610_v25 = vld [vmem:[#allocation3 + $0x18a] sm:$0xff] }
  0xf2   : > { %5420 = vmatpush3.bf16.msra.mxu0 %v5855_v56  ;;  %v3584_v56 = vld [vmem:[#allocation3 + $0x52] sm:$0xff] }
  0xf3   : > { %5421 = vmatprep.subr.bf16.mxu0 %v5856_v4 }
  0xf4   : > { %5166 = vmatmul.mubr.bf16.gmra.mrb[28].mxu1 %v6325_v29  ;;  %v6465_v29 = vpack.c.bf16 %v3232_v40, %v3231_v31  ;;  %v3589_v31 = vld [vmem:[#allocation3 + $0x92] sm:$0xff]  ;;  %v3590_v40 = vld [vmem:[#allocation3 + $0x9a] sm:$0xff] }
  0xf5   : > { %5390 = vmatmul.mubr.bf16.gmra.mrb[12].mxu0 %v6453_v5  ;;  %5185 = vmatprep.mubr.bf16.mxu1 %v1762_v42  ;;  %v1772_v42 = vpack.c.bf16 %v1751_v2, %v1750_v23  ;;  %v3617_v62 = vpack.c.bf16 %v3590_v40, %v3589_v31  ;;  %v2131_v2 = vld [vmem:[#allocation3 + $0x189] sm:$0xff] }
  0xf6   : > { %5393 = vmatprep.mubr.bf16.mxu0 %v6455_v0  ;;  %5422 = vmatpush3.bf16.msra.mxu0 %v5856_v4  ;;  %v3614_v4 = vpack.c.bf16 %v3584_v56, %v3583_v27 }
  0xf7   : > { %5423 = vmatprep.subr.bf16.mxu0 %v5857_v28 }
  0xfa   : > { %5424 = vmatpush3.bf16.msra.mxu0 %v5857_v28  ;;  %v3615_v28 = vpack.c.bf16 %v3586_v30, %v3585_v3  ;;  %v3612_v3 = vld [vmem:[#allocation3 + $0x1a2] sm:$0xff] }
  0xfc   : > { %5186 = vmatmul.mubr.bf16.vlgmr.msra.gmra.mrb[0].mxu1 %v1763_v12  ;;  %v1773_v12 = vpack.c.bf16 %v1753_v7, %v1752_v6 }
  0xfd   : > { %5394 = vmatmul.mubr.bf16.gmra.mrb[16].mxu0 %v6463_v41  ;;  %5465 = vmatpush3.bf16.msra.mxu1 %v6429_v22  ;;  %v5865_v22 = vld [vmem:[%s6578_s1 + $0x120] sm:$0xff]  }
  0xfe   : > { %5189 = vmatprep.mubr.bf16.mxu1 %v1764_v50  ;;  %5397 = vmatprep.mubr.bf16.mxu0 %v6465_v29  ;;  %v3616_v50 = vpack.c.bf16 %v3588_v9, %v3587_v8 }
  0xff   : > { %5458 = vmatprep.subr.bf16.mxu1 %v5860_v35 }
 0x101   : > { %5466 = vmatpush3.bf16.msra.mxu1 %v5860_v35  ;;  %v1758_v35 = vld [vmem:[#allocation3 + $0x168] sm:$0xff] }
 0x102   : > { %5459 = vmatprep.subr.bf16.mxu1 %v5861_v18 }
 0x104   : > { %5190 = vmatmul.mubr.bf16.gmra.mrb[4].mxu1 %v1765_v47  ;;  %v1759_v47 = vld [vmem:[#allocation3 + $0x170] sm:$0xff] }
 0x105   : > { %5398 = vmatmul.mubr.bf16.gmra.mrb[20].mxu0 %v6473_v48  ;;  %5193 = vmatprep.mubr.bf16.mxu1 %v1766_v49  ;;  %v3593_v49 = vld [vmem:[#allocation3 + $0xc2] sm:$0xff]  ;;  %v1776_v51 = vpack.c.bf16 %v1759_v47, %v1758_v35 }
 0x106   : > { %5401 = vmatprep.mubr.bf16.mxu0 %v5997_v13  ;;  %5467 = vmatpush3.bf16.msra.mxu1 %v5861_v18  ;;  %v1744_v13 = vld [vmem:[#allocation3 + $0xc0] sm:$0xff]  ;;  %v3594_v18 = vld [vmem:[#allocation3 + $0xca] sm:$0xff] }
 0x107   : > { %5460 = vmatprep.subr.bf16.mxu1 %v5862_v38  ;;  %v1769_v55 = vpack.c.bf16 %v1745_v39, %v1744_v13  ;;  %v3619_v19 = vpack.c.bf16 %v3594_v18, %v3593_v49  ;;  %v3600_v13 = vld [vmem:[#allocation3 + $0x112] sm:$0xff]  ;;  %v3601_v39 = vld [vmem:[#allocation3 + $0x122] sm:$0xff] }
 0x108   : > { %v3623_v59 = vpack.c.bf16 %v3602_v57, %v3601_v39 }
 0x10a   : > { %5468 = vmatpush3.bf16.msra.mxu1 %v5862_v38  ;;  %v3595_v38 = vld [vmem:[#allocation3 + $0xda] sm:$0xff] }
 0x10b   : > { %5461 = vmatprep.subr.bf16.mxu1 %v5865_v22 }
 0x10c   : > { %5194 = vmatmul.mubr.bf16.gmra.mrb[8].mxu1 %v1767_v44  ;;  %v3596_v44 = vld [vmem:[#allocation3 + $0xe2] sm:$0xff] }
 0x10d   : > { %5402 = vmatmul.mubr.bf16.gmra.mrb[24].mxu0 %v5999_v14  ;;  %5197 = vmatprep.mubr.bf16.mxu1 %v1768_v45  ;;  %v3613_v14 = vpack.c.bf16 %v3582_v63, %v3581_v61  ;;  %v3597_v45 = vld [vmem:[#allocation3 + $0xf2] sm:$0xff]  ;;  %v3620_v53 = vpack.c.bf16 %v3596_v44, %v3595_v38  ;;  %v3604_v61 = vld [vmem:[#allocation3 + $0x142] sm:$0xff] }
 0x10e   : > { %5405 = vmatprep.mubr.bf16.mxu0 %v3257_v54  ;;  %5469 = vmatpush3.bf16.msra.mxu1 %v5865_v22  ;;  %v3621_v54 = vpack.c.bf16 %v3598_v46, %v3597_v45  ;;  %v3599_v22 = vld [vmem:[#allocation3 + $0x10a] sm:$0xff]  ;;  %v3605_v63 = vld [vmem:[#allocation3 + $0x152] sm:$0xff] }
 0x10f   : > { %5462 = vmatprep.subr.bf16.mxu1 %v5866_v21  ;;  %v3622_v58 = vpack.c.bf16 %v3600_v13, %v3599_v22 }
 0x112   : > { %5470 = vmatpush3.bf16.msra.mxu1 %v5866_v21  ;;  %v3624_v21 = vpack.c.bf16 %v3604_v61, %v3603_v60 }
 0x113   : > { %5463 = vmatprep.subr.bf16.mxu1 %v5867_v24 }
 0x114   : > { %5198 = vmatmul.mubr.bf16.gmra.mrb[12].mxu1 %v1769_v55 }
 0x115   : > { %5406 = vmatmul.mubr.bf16.gmra.mrb[28].mxu0 %v3258_v1  ;;  %5201 = vmatprep.mubr.bf16.mxu1 %v1770_v32  ;;  %v2127_v1 = vld [vmem:[#allocation3 + $0x159] sm:$0xff]  ;;  %v3607_v32 = vld [vmem:[#allocation3 + $0x16a] sm:$0xff] }
 0x116   : > { %5425 = vmatprep.mubr.bf16.mxu0 %v3613_v14  ;;  %5471 = vmatpush3.bf16.msra.mxu1 %v5867_v24  ;;  %v2128_v14 = vld [vmem:[#allocation3 + $0x169] sm:$0xff]  ;;  %v2129_v24 = vld [vmem:[#allocation3 + $0x171] sm:$0xff] }
 0x117   : > { %5464 = vmatprep.subr.bf16.mxu1 %v5868_v36  ;;  %v2146_v56 = vpack.c.bf16 %v2129_v24, %v2128_v14 }
 0x11a   : > { %5472 = vmatpush3.bf16.msra.mxu1 %v5868_v36 }
 0x11c   : > { %5202 = vmatmul.mubr.bf16.gmra.mrb[16].mxu1 %v1771_v37 }
 0x11d   : > { %5426 = vmatmul.mubr.bf16.vlgmr.msra.gmra.mrb[0].mxu0 %v3614_v4  ;;  %5205 = vmatprep.mubr.bf16.mxu1 %v1772_v42 }
 0x11e   : > { %5429 = vmatprep.mubr.bf16.mxu0 %v3615_v28 }
 0x124   : > { %5206 = vmatmul.mubr.bf16.gmra.mrb[20].mxu1 %v1773_v12 }
 0x125   : > { %5430 = vmatmul.mubr.bf16.gmra.mrb[4].mxu0 %v3616_v50  ;;  %5209 = vmatprep.mubr.bf16.mxu1 %v1774_v52 }
 0x126   : > { %5433 = vmatprep.mubr.bf16.mxu0 %v3617_v62 }
 0x12c   : > { %5210 = vmatmul.mubr.bf16.gmra.mrb[24].mxu1 %v1775_v20 }
 0x12d   : > { %5434 = vmatmul.mubr.bf16.gmra.mrb[8].mxu0 %v3618_v43  ;;  %5213 = vmatprep.mubr.bf16.mxu1 %v1776_v51 }
 0x12e   : > { %5437 = vmatprep.mubr.bf16.mxu0 %v3619_v19 }
 0x134   : > { %5214 = vmatmul.mubr.bf16.gmra.mrb[28].mxu1 %v6406_v33  ;;  %v3606_v33 = vld [vmem:[#allocation3 + $0x15a] sm:$0xff] }
 0x135   : > { %5438 = vmatmul.mubr.bf16.gmra.mrb[12].mxu0 %v3620_v53  ;;  %5249 = vmatprep.mubr.bf16.mxu1 %v6453_v5  ;;  %v3625_v55 = vpack.c.bf16 %v3606_v33, %v3605_v63  ;;  %v2126_v5 = vld [vmem:[#allocation3 + $0x151] sm:$0xff] }
 0x136   : > { %5441 = vmatprep.mubr.bf16.mxu0 %v3621_v54  ;;  %v2145_v26 = vpack.c.bf16 %v2127_v1, %v2126_v5 }
 0x13c   : > { %5250 = vmatmul.mubr.bf16.vlgmr.msra.gmra.mrb[16].mxu1 %v6455_v0  ;;  %v3608_v0 = vld [vmem:[#allocation3 + $0x172] sm:$0xff] }
 0x13d   : > { %5442 = vmatmul.mubr.bf16.gmra.mrb[16].mxu0 %v3622_v58  ;;  %5253 = vmatprep.mubr.bf16.mxu1 %v6463_v41  ;;  %v3609_v41 = vld [vmem:[#allocation3 + $0x182] sm:$0xff]  ;;  %v3626_v27 = vpack.c.bf16 %v3608_v0, %v3607_v32 }
 0x13e   : > { %5445 = vmatprep.mubr.bf16.mxu0 %v3623_v59  ;;  %v3627_v23 = vpack.c.bf16 %v3610_v25, %v3609_v41 }
 0x144   : > { %5254 = vmatmul.mubr.bf16.gmra.mrb[20].mxu1 %v6465_v29  ;;  %v2130_v29 = vld [vmem:[#allocation3 + $0x181] sm:$0xff] }
 0x145   : > { %5446 = vmatmul.mubr.bf16.gmra.mrb[20].mxu0 %v3624_v21  ;;  %5257 = vmatprep.mubr.bf16.mxu1 %v6473_v48  ;;  %v3611_v48 = vld [vmem:[#allocation3 + $0x19a] sm:$0xff]  ;;  %v2147_v30 = vpack.c.bf16 %v2131_v2, %v2130_v29 }
 0x146   : > { %5449 = vmatprep.mubr.bf16.mxu0 %v3625_v55  ;;  %v3628_v36 = vpack.c.bf16 %v3612_v3, %v3611_v48 }
 0x14c   : > { %5258 = vmatmul.mubr.bf16.gmra.mrb[24].mxu1 %v2145_v26 }
 0x14d   : > { %5450 = vmatmul.mubr.bf16.gmra.mrb[24].mxu0 %v3626_v27  ;;  %5261 = vmatprep.mubr.bf16.mxu1 %v2146_v56 }
 0x14e   : > { %5453 = vmatprep.mubr.bf16.mxu0 %v3627_v23 }
 0x154   : > { %5262 = vmatmul.mubr.bf16.gmra.mrb[28].mxu1 %v2147_v30 }
 0x155   : > { %5454 = vmatmul.mubr.bf16.gmra.mrb[28].mxu0 %v3628_v36 }
 0x1cf   : > { %v5187_v37 = vpop.f32.mrb[0].mxu1 }
 0x1d0   : > { %v1909_v4 = vpop.f32.mrb[1].mxu1  ;;  %v5473_v16 = vadd.f32 %v5187_v37, %v6513_v15 }
 0x1d1   : > { %v5188_v42 = vpop.f32.mrb[2].mxu1  ;;  %v5475_v17 = vadd.f32 %v6513_v15, %v1909_v4 }
 0x1d2   : > { %v1912_v28 = vpop.f32.mrb[3].mxu1  ;;  %v5477_v35 = vadd.f32 %v5188_v42, %v6513_v15 }
 0x1d3   : > { %v5479_v18 = vadd.f32 %v6513_v15, %v1912_v28 }
 0x1d7   : > { %v5191_v6 = vpop.f32.mrb[4].mxu1 }
 0x1d8   : > { %v1925_v7 = vpop.f32.mrb[5].mxu1  ;;  %v5481_v22 = vadd.f32 %v5191_v6, %v6513_v15 }
 0x1d9   : > { %v5192_v8 = vpop.f32.mrb[6].mxu1  ;;  %v5483_v13 = vadd.f32 %v6513_v15, %v1925_v7 }
 0x1da   : > { %v1928_v9 = vpop.f32.mrb[7].mxu1  ;;  %v5485_v60 = vadd.f32 %v5192_v8, %v6513_v15 }
 0x1db   : > { %v5487_v61 = vadd.f32 %v6513_v15, %v1928_v9 }
 0x1df   : > { %v5195_v10 = vpop.f32.mrb[8].mxu1 }
 0x1e0   : > { %v1941_v11 = vpop.f32.mrb[9].mxu1  ;;  %v5489_v48 = vadd.f32 %v5195_v10, %v6513_v15 }
 0x1e1   : > { %v5196_v31 = vpop.f32.mrb[10].mxu1  ;;  %v5491_v3 = vadd.f32 %v6513_v15, %v1941_v11 }
 0x1e2   : > { %v1944_v40 = vpop.f32.mrb[11].mxu1  ;;  %v5493_v42 = vadd.f32 %v5196_v31, %v6513_v15 }
 0x1e3   : > { %v5495_v28 = vadd.f32 %v6513_v15, %v1944_v40 }
 0x1e7   : > { %v6502_v12 = vpop.f32.mrb[12].mxu1 }
 0x1e8   : > { %v6504_v50 = vpop.f32.mrb[13].mxu1 }
 0x1e9   : > { %v6506_v52 = vpop.f32.mrb[14].mxu1 }
 0x1ea   : > { %v6508_v62 = vpop.f32.mrb[15].mxu1 }
 0x1f0   : > { %v5427_v34 = vpop.f32.mrb[0].mxu0 }
 0x1f1   : > { %v5474_v47 = vadd.f32 %v5473_v16, %v5427_v34  ;;  %v3760_v49 = vpop.f32.mrb[1].mxu0 }
 0x1f2   : > { %v5476_v20 = vadd.f32 %v5475_v17, %v3760_v49  ;;  %v5428_v43 = vpop.f32.mrb[2].mxu0 }
 0x1f3   : > { %v5478_v51 = vadd.f32 %v5477_v35, %v5428_v43  ;;  %v3763_v19 = vpop.f32.mrb[3].mxu0  ;;  %v4022_v39 = vmul.f32 %v5474_v47, %v5474_v47 }
 0x1f4   : > { %v5480_v38 = vadd.f32 %v5479_v18, %v3763_v19  ;;  %v4020_v45 = vmul.f32 %v5476_v20, %v5476_v20  ;;  %v5497_v19 = vadd.f32 %v6502_v12, %v6513_v15 }
 0x1f5   : > { %v4721_v44 = vpack.c.bf16 %v5478_v51, %v5474_v47  ;;  %v4023_v21 = vmul.f32 %v5478_v51, %v5478_v51 }
 0x1f6   : > { %v3983_v46 = vadd.f32 %v5480_v38, %v5476_v20  ;;  %v4021_v53 = vmul.f32 %v5480_v38, %v5480_v38  ;;  %v4716_v54 = vpack.c.bf16 %v5480_v38, %v5476_v20  ;;  %v5499_v38 = vadd.f32 %v6513_v15, %v6504_v50 }
 0x1f7   : > { %4794 = vst [vmem:[%s5982_s7 + $0x8] sm:$0xff] %v4721_v44  }
 0x1f8   : > { %v3984_v57 = vadd.f32 %v5474_v47, %v3983_v46  ;;  %v4052_v58 = vadd.f32 %v4021_v53, %v4020_v45  ;;  %4717 = vst [vmem:[%s5982_s7] sm:$0xff] %v4716_v54   ;;  %v5431_v59 = vpop.f32.mrb[4].mxu0  ;;  %v5501_v54 = vadd.f32 %v6506_v52, %v6513_v15 }
 0x1f9   : > { %v5482_v63 = vadd.f32 %v5481_v22, %v5431_v59  ;;  %v3776_v33 = vpop.f32.mrb[5].mxu0  ;;  %v5503_v22 = vadd.f32 %v6513_v15, %v6508_v62 }
 0x1fa   : > { %v4053_v55 = vadd.f32 %v4052_v58, %v4022_v39  ;;  %v5484_v5 = vadd.f32 %v5483_v13, %v3776_v33  ;;  %v3985_v1 = vadd.f32 %v5478_v51, %v3984_v57  ;;  %v5432_v32 = vpop.f32.mrb[6].mxu0 }
 0x1fb   : > { %v5486_v0 = vadd.f32 %v5485_v60, %v5432_v32  ;;  %v3779_v14 = vpop.f32.mrb[7].mxu0  ;;  %v4026_v30 = vmul.f32 %v5482_v63, %v5482_v63 }
 0x1fc   : > { %v3986_v24 = vadd.f32 %v5484_v5, %v3985_v1  ;;  %v4024_v41 = vmul.f32 %v5484_v5, %v5484_v5  ;;  %v4054_v25 = vadd.f32 %v4053_v55, %v4023_v21  ;;  %v5488_v26 = vadd.f32 %v5487_v61, %v3779_v14 }
 0x1fd   : > { %v4731_v27 = vpack.c.bf16 %v5486_v0, %v5482_v63  ;;  %v4027_v8 = vmul.f32 %v5486_v0, %v5486_v0 }
 0x1fe   : > { %v4055_v56 = vadd.f32 %v4054_v25, %v4024_v41  ;;  %v3987_v23 = vadd.f32 %v5488_v26, %v3986_v24  ;;  %v4025_v29 = vmul.f32 %v5488_v26, %v5488_v26  ;;  %v4726_v2 = vpack.c.bf16 %v5488_v26, %v5484_v5 }
 0x1ff   : > { %4796 = vst [vmem:[%s5982_s7 + $0x18] sm:$0xff] %v4731_v27  }
 0x200   : > { %v3988_v36 = vadd.f32 %v5482_v63, %v3987_v23  ;;  %v4056_v37 = vadd.f32 %v4055_v56, %v4025_v29  ;;  %4795 = vst [vmem:[%s5982_s7 + $0x10] sm:$0xff] %v4726_v2   ;;  %v5435_v4 = vpop.f32.mrb[8].mxu0 }
 0x201   : > { %v5490_v6 = vadd.f32 %v5489_v48, %v5435_v4  ;;  %v3792_v7 = vpop.f32.mrb[9].mxu0 }
 0x202   : > { %v4057_v9 = vadd.f32 %v4056_v37, %v4026_v30  ;;  %v5492_v16 = vadd.f32 %v5491_v3, %v3792_v7  ;;  %v3989_v17 = vadd.f32 %v5486_v0, %v3988_v36  ;;  %v5436_v10 = vpop.f32.mrb[10].mxu0 }
 0x203   : > { %v5494_v34 = vadd.f32 %v5493_v42, %v5436_v10  ;;  %v3795_v35 = vpop.f32.mrb[11].mxu0  ;;  %v4030_v44 = vmul.f32 %v5490_v6, %v5490_v6 }
 0x204   : > { %v3990_v11 = vadd.f32 %v5492_v16, %v3989_v17  ;;  %v4028_v47 = vmul.f32 %v5492_v16, %v5492_v16  ;;  %v4058_v49 = vadd.f32 %v4057_v9, %v4027_v8  ;;  %v5496_v18 = vadd.f32 %v5495_v28, %v3795_v35 }
 0x205   : > { %v4741_v20 = vpack.c.bf16 %v5494_v34, %v5490_v6  ;;  %v4031_v57 = vmul.f32 %v5494_v34, %v5494_v34 }
 0x206   : > { %v4059_v43 = vadd.f32 %v4058_v49, %v4028_v47  ;;  %v3991_v31 = vadd.f32 %v5496_v18, %v3990_v11  ;;  %v4029_v51 = vmul.f32 %v5496_v18, %v5496_v18  ;;  %v4736_v40 = vpack.c.bf16 %v5496_v18, %v5492_v16 }
 0x207   : > { %4798 = vst [vmem:[%s5982_s7 + $0x28] sm:$0xff] %v4741_v20  }
 0x208   : > { %v3992_v45 = vadd.f32 %v5490_v6, %v3991_v31  ;;  %v4060_v46 = vadd.f32 %v4059_v43, %v4029_v51  ;;  %4797 = vst [vmem:[%s5982_s7 + $0x20] sm:$0xff] %v4736_v40   ;;  %v5439_v53 = vpop.f32.mrb[12].mxu0 }
 0x209   : > { %v5498_v13 = vadd.f32 %v5497_v19, %v5439_v53  ;;  %v3808_v39 = vpop.f32.mrb[13].mxu0 }
 0x20a   : > { %v4061_v12 = vadd.f32 %v4060_v46, %v4030_v44  ;;  %v5500_v58 = vadd.f32 %v5499_v38, %v3808_v39  ;;  %v3993_v59 = vadd.f32 %v5494_v34, %v3992_v45  ;;  %v5440_v60 = vpop.f32.mrb[14].mxu0 }
 0x20b   : > { %v5502_v50 = vadd.f32 %v5501_v54, %v5440_v60  ;;  %v3811_v61 = vpop.f32.mrb[15].mxu0  ;;  %v4034_v14 = vmul.f32 %v5498_v13, %v5498_v13 }
 0x20c   : > { %v3994_v63 = vadd.f32 %v5500_v58, %v3993_v59  ;;  %v4032_v33 = vmul.f32 %v5500_v58, %v5500_v58  ;;  %v4062_v21 = vadd.f32 %v4061_v12, %v4031_v57  ;;  %v5504_v55 = vadd.f32 %v5503_v22, %v3811_v61 }
 0x20d   : > { %v4751_v5 = vpack.c.bf16 %v5502_v50, %v5498_v13  ;;  %v4035_v56 = vmul.f32 %v5502_v50, %v5502_v50 }
 0x20e   : > { %v4063_v52 = vadd.f32 %v4062_v21, %v4032_v33  ;;  %v3995_v1 = vadd.f32 %v5504_v55, %v3994_v63  ;;  %v4033_v32 = vmul.f32 %v5504_v55, %v5504_v55  ;;  %v4746_v62 = vpack.c.bf16 %v5504_v55, %v5500_v58 }
 0x20f   : > { %4800 = vst [vmem:[%s5982_s7 + $0x38] sm:$0xff] %v4751_v5   ;;  %v5251_v0 = vpop.f32.mrb[16].mxu1 }
 0x210   : > { %v3996_v24 = vadd.f32 %v5498_v13, %v3995_v1  ;;  %v4064_v41 = vadd.f32 %v4063_v52, %v4033_v32  ;;  %4799 = vst [vmem:[%s5982_s7 + $0x30] sm:$0xff] %v4746_v62   ;;  %v5505_v25 = vadd.f32 %v5251_v0, %v6513_v15  ;;  %v5443_v26 = vpop.f32.mrb[16].mxu0  ;;  %v2343_v27 = vpop.f32.mrb[17].mxu1 }
 0x211   : > { %v5507_v23 = vadd.f32 %v6513_v15, %v2343_v27  ;;  %v3824_v29 = vpop.f32.mrb[17].mxu0  ;;  %v5252_v2 = vpop.f32.mrb[18].mxu1 }
 0x212   : > { %v4065_v48 = vadd.f32 %v4064_v41, %v4034_v14  ;;  %v5506_v3 = vadd.f32 %v5505_v25, %v5443_v26  ;;  %v3997_v30 = vadd.f32 %v5502_v50, %v3996_v24  ;;  %v5509_v36 = vadd.f32 %v5252_v2, %v6513_v15  ;;  %v5444_v37 = vpop.f32.mrb[18].mxu0  ;;  %v2346_v4 = vpop.f32.mrb[19].mxu1 }
 0x213   : > { %v5508_v42 = vadd.f32 %v5507_v23, %v3824_v29  ;;  %v5511_v28 = vadd.f32 %v6513_v15, %v2346_v4  ;;  %v3827_v6 = vpop.f32.mrb[19].mxu0 }
 0x214   : > { %v4066_v7 = vadd.f32 %v4065_v48, %v4035_v56  ;;  %v5510_v8 = vadd.f32 %v5509_v36, %v5444_v37  ;;  %v4038_v31 = vmul.f32 %v5506_v3, %v5506_v3 }
 0x215   : > { %v3998_v9 = vadd.f32 %v5508_v42, %v3997_v30  ;;  %v4036_v16 = vmul.f32 %v5508_v42, %v5508_v42  ;;  %v5512_v17 = vadd.f32 %v5511_v28, %v3827_v6 }
 0x216   : > { %v4761_v10 = vpack.c.bf16 %v5510_v8, %v5506_v3  ;;  %v4039_v45 = vmul.f32 %v5510_v8, %v5510_v8 }
 0x217   : > { %v4067_v34 = vadd.f32 %v4066_v7, %v4036_v16  ;;  %v3999_v35 = vadd.f32 %v5512_v17, %v3998_v9  ;;  %v4037_v11 = vmul.f32 %v5512_v17, %v5512_v17  ;;  %v4756_v47 = vpack.c.bf16 %v5512_v17, %v5508_v42  ;;  %v5255_v49 = vpop.f32.mrb[20].mxu1 }
 0x218   : > { %4802 = vst [vmem:[%s5982_s7 + $0x48] sm:$0xff] %v4761_v10   ;;  %v5513_v18 = vadd.f32 %v5255_v49, %v6513_v15  ;;  %v5447_v20 = vpop.f32.mrb[20].mxu0  ;;  %v2359_v43 = vpop.f32.mrb[21].mxu1 }
 0x219   : > { %v4000_v51 = vadd.f32 %v5506_v3, %v3999_v35  ;;  %v4068_v40 = vadd.f32 %v4067_v34, %v4037_v11  ;;  %4801 = vst [vmem:[%s5982_s7 + $0x40] sm:$0xff] %v4756_v47   ;;  %v5515_v19 = vadd.f32 %v6513_v15, %v2359_v43  ;;  %v3840_v38 = vpop.f32.mrb[21].mxu0  ;;  %v5256_v44 = vpop.f32.mrb[22].mxu1 }
 0x21a   : > { %v5514_v46 = vadd.f32 %v5513_v18, %v5447_v20  ;;  %v5517_v53 = vadd.f32 %v5256_v44, %v6513_v15  ;;  %v5448_v54 = vpop.f32.mrb[22].mxu0  ;;  %v2362_v22 = vpop.f32.mrb[23].mxu1 }
 0x21b   : > { %v4069_v13 = vadd.f32 %v4068_v40, %v4038_v31  ;;  %v5516_v39 = vadd.f32 %v5515_v19, %v3840_v38  ;;  %v4001_v57 = vadd.f32 %v5510_v8, %v4000_v51  ;;  %v5519_v12 = vadd.f32 %v6513_v15, %v2362_v22  ;;  %v3843_v58 = vpop.f32.mrb[23].mxu0 }
 0x21c   : > { %v5518_v59 = vadd.f32 %v5517_v53, %v5448_v54  ;;  %v4042_v14 = vmul.f32 %v5514_v46, %v5514_v46 }
 0x21d   : > { %v4002_v60 = vadd.f32 %v5516_v39, %v4001_v57  ;;  %v4040_v50 = vmul.f32 %v5516_v39, %v5516_v39  ;;  %v4070_v61 = vadd.f32 %v4069_v13, %v4039_v45  ;;  %v5520_v63 = vadd.f32 %v5519_v12, %v3843_v58 }
 0x21e   : > { %v4771_v33 = vpack.c.bf16 %v5518_v59, %v5514_v46  ;;  %v4043_v56 = vmul.f32 %v5518_v59, %v5518_v59 }
 0x21f   : > { %v4071_v21 = vadd.f32 %v4070_v61, %v4040_v50  ;;  %v4003_v55 = vadd.f32 %v5520_v63, %v4002_v60  ;;  %v4041_v5 = vmul.f32 %v5520_v63, %v5520_v63  ;;  %v4766_v52 = vpack.c.bf16 %v5520_v63, %v5516_v39  ;;  %v5259_v1 = vpop.f32.mrb[24].mxu1 }
 0x220   : > { %4804 = vst [vmem:[%s5982_s7 + $0x58] sm:$0xff] %v4771_v33   ;;  %v5521_v32 = vadd.f32 %v5259_v1, %v6513_v15  ;;  %v5451_v62 = vpop.f32.mrb[24].mxu0  ;;  %v2375_v0 = vpop.f32.mrb[25].mxu1 }
 0x221   : > { %v4004_v24 = vadd.f32 %v5514_v46, %v4003_v55  ;;  %v4072_v41 = vadd.f32 %v4071_v21, %v4041_v5  ;;  %4803 = vst [vmem:[%s5982_s7 + $0x50] sm:$0xff] %v4766_v52   ;;  %v5523_v25 = vadd.f32 %v6513_v15, %v2375_v0  ;;  %v3856_v26 = vpop.f32.mrb[25].mxu0  ;;  %v5260_v27 = vpop.f32.mrb[26].mxu1 }
 0x222   : > { %v5522_v23 = vadd.f32 %v5521_v32, %v5451_v62  ;;  %v5525_v29 = vadd.f32 %v5260_v27, %v6513_v15  ;;  %v5452_v2 = vpop.f32.mrb[26].mxu0  ;;  %v2378_v48 = vpop.f32.mrb[27].mxu1 }
 0x223   : > { %v4073_v3 = vadd.f32 %v4072_v41, %v4042_v14  ;;  %v5524_v30 = vadd.f32 %v5523_v25, %v3856_v26  ;;  %v4005_v36 = vadd.f32 %v5518_v59, %v4004_v24  ;;  %v5527_v37 = vadd.f32 %v6513_v15, %v2378_v48  ;;  %v3859_v4 = vpop.f32.mrb[27].mxu0 }
 0x224   : > { %v5526_v42 = vadd.f32 %v5525_v29, %v5452_v2  ;;  %v4046_v18 = vmul.f32 %v5522_v23, %v5522_v23 }
 0x225   : > { %v4006_v28 = vadd.f32 %v5524_v30, %v4005_v36  ;;  %v4044_v6 = vmul.f32 %v5524_v30, %v5524_v30  ;;  %v4074_v7 = vadd.f32 %v4073_v3, %v4043_v56  ;;  %v5528_v8 = vadd.f32 %v5527_v37, %v3859_v4 }
 0x226   : > { %v4781_v9 = vpack.c.bf16 %v5526_v42, %v5522_v23  ;;  %v4047_v19 = vmul.f32 %v5526_v42, %v5526_v42 }
 0x227   : > { %v4075_v16 = vadd.f32 %v4074_v7, %v4044_v6  ;;  %v4007_v17 = vadd.f32 %v5528_v8, %v4006_v28  ;;  %v4045_v10 = vmul.f32 %v5528_v8, %v5528_v8  ;;  %v4776_v34 = vpack.c.bf16 %v5528_v8, %v5524_v30  ;;  %v5263_v35 = vpop.f32.mrb[28].mxu1 }
 0x228   : > { %4806 = vst [vmem:[%s5982_s7 + $0x68] sm:$0xff] %v4781_v9   ;;  %v5529_v11 = vadd.f32 %v5263_v35, %v6513_v15  ;;  %v5455_v47 = vpop.f32.mrb[28].mxu0  ;;  %v2391_v49 = vpop.f32.mrb[29].mxu1 }
 0x229   : > { %v4008_v20 = vadd.f32 %v5522_v23, %v4007_v17  ;;  %v4076_v43 = vadd.f32 %v4075_v16, %v4045_v10  ;;  %4805 = vst [vmem:[%s5982_s7 + $0x60] sm:$0xff] %v4776_v34   ;;  %v5531_v31 = vadd.f32 %v6513_v15, %v2391_v49  ;;  %v3872_v51 = vpop.f32.mrb[29].mxu0  ;;  %v5264_v40 = vpop.f32.mrb[30].mxu1 }
 0x22a   : > { %v5530_v38 = vadd.f32 %v5529_v11, %v5455_v47  ;;  %v5533_v44 = vadd.f32 %v5264_v40, %v6513_v15  ;;  %v5456_v45 = vpop.f32.mrb[30].mxu0  ;;  %v2394_v46 = vpop.f32.mrb[31].mxu1 }
 0x22b   : > { %v4077_v53 = vadd.f32 %v4076_v43, %v4046_v18  ;;  %v5532_v54 = vadd.f32 %v5531_v31, %v3872_v51  ;;  %v4009_v22 = vadd.f32 %v5526_v42, %v4008_v20  ;;  %v5535_v13 = vadd.f32 %v6513_v15, %v2394_v46  ;;  %v3875_v39 = vpop.f32.mrb[31].mxu0 }
 0x22c   : > { %v5534_v57 = vadd.f32 %v5533_v44, %v5456_v45  ;;  %v4050_v55 = vmul.f32 %v5530_v38, %v5530_v38 }
 0x22d   : > { %v4010_v12 = vadd.f32 %v5532_v54, %v4009_v22  ;;  %v4048_v58 = vmul.f32 %v5532_v54, %v5532_v54  ;;  %v4078_v59 = vadd.f32 %v4077_v53, %v4047_v19  ;;  %v5536_v60 = vadd.f32 %v5535_v13, %v3875_v39 }
 0x22e   : > { %v4791_v50 = vpack.c.bf16 %v5534_v57, %v5530_v38  ;;  %v4051_v1 = vmul.f32 %v5534_v57, %v5534_v57 }
 0x22f   : > { %v4079_v61 = vadd.f32 %v4078_v59, %v4048_v58  ;;  %v4011_v63 = vadd.f32 %v5536_v60, %v4010_v12  ;;  %v4049_v33 = vmul.f32 %v5536_v60, %v5536_v60  ;;  %v4786_v21 = vpack.c.bf16 %v5536_v60, %v5532_v54 }
 0x230   : > { %4808 = vst [vmem:[%s5982_s7 + $0x78] sm:$0xff] %v4791_v50  }
 0x231   : > { %v4012_v5 = vadd.f32 %v5530_v38, %v4011_v63  ;;  %v4080_v52 = vadd.f32 %v4079_v61, %v4049_v33  ;;  %4807 = vst [vmem:[%s5982_s7 + $0x70] sm:$0xff] %v4786_v21  }
 0x233   : > { %v4013_v32 = vadd.f32 %v5534_v57, %v4012_v5  ;;  %v4081_v15 = vadd.f32 %v4080_v52, %v4050_v55 }
 0x235   : > { %v4014_v62 = vrot.slane %v4013_v32, 4  ;;  %v4082_v0 = vadd.f32 %v4081_v15, %v4051_v1 }
 0x237   : > { %v4015_v14 = vadd.f32 %v4014_v62, %v4013_v32  ;;  %v4083_v24 = vrot.slane %v4082_v0, 4 }
 0x239   : > { %v4016_v41 = vrot.slane %v4015_v14, 2  ;;  %v4084_v25 = vadd.f32 %v4083_v24, %v4082_v0 }
 0x23b   : > { %v4017_v26 = vadd.f32 %v4016_v41, %v4015_v14  ;;  %v4085_v27 = vrot.slane %v4084_v25, 2 }
 0x23d   : > { %v4018_v56 = vrot.slane %v4017_v26, 1  ;;  %v4086_v23 = vadd.f32 %v4085_v27, %v4084_v25 }
 0x23f   : > { %v4087_v29 = vrot.slane %v4086_v23, 1  ;;  %v4019_v2 = vadd.f32 %v4018_v56, %v4017_v26 }
 0x241   : > { %v4088_v48 = vadd.f32 %v4087_v29, %v4086_v23 }
 0x243   : > { %v4090_v3 = vsel %vm4089_vm0, %v4019_v2, %v4088_v48 }
 0x244   : > { %4091 = vst [vmem:[%s5987_s10] sm:$0x3] %v4090_v3 }
 0x245 PF: > { %s17_s23 = sadd.s32 1, %s5897_s23   ;;  %s6584_s21 = smov %s5893_s22 }
 0x246   : > { %p14_p5 = scmp.ge.s32.totalorder %s17_s23, 4   ;;  %s6585_s22 = smov %s6587_s3 }
 0x248   :  { %16 = sbr.rel (!%p14_p5) target bundleno = 2 (0x2), region = 225 }
 0x24f   :  { %4304 = vsyncmov [#allocation5] }
 0x252   :  { %s4305_s7 = vpop.sfrf %4304 }
 0x253   :  { %p4673_p6 = scmp.ne.s32.totalorder %s4305_s7, 0 }
 0x255   :  { %4309 = shalt.err (%p4673_p6)  }
 0x256   :  { %4311 = vsyncmov [#allocation5 + $0x1] }
 0x259   :  { %s4312_s8 = vpop.sfrf %4311 }
 0x25a   :  { %p4674_p7 = scmp.ne.s32.totalorder %s4312_s8, 0 }
 0x25c   :  { %4316 = shalt.err (%p4674_p7)  }
 0x25d   :  { %4318 = vsyncmov [#allocation5 + $0x2] }
 0x260   :  { %s4319_s10 = vpop.sfrf %4318 }
 0x261   :  { %p4675_p8 = scmp.ne.s32.totalorder %s4319_s10, 0 }
 0x263   :  { %4323 = shalt.err (%p4675_p8)  }

</bundles_post_ra>
